<compile_context>
chip_gen: v7x
topology: tpu7x:2x2x1
jax: 0.10.0
libtpu: 0.0.40
codegen_flags: <defaults>
</compile_context>

<pallas_src>
import functools

import jax
import jax.numpy as jnp
from jax.experimental import pallas as pl
from jax.experimental.pallas import tpu as pltpu

in_dim = 1
n_class = 10

LANES = 128  # all out-channel / FC dims are padded to this for lane-dense stores


# ----------------------------------------------------------------------------
# Pallas kernels
# ----------------------------------------------------------------------------
def _conv_relu_pool_kernel(p_ref, w_ref, b_ref, o_ref):
    """Fused conv-as-matmul + bias + ReLU + 2x2 average pool.

    p_ref: [4, TM, K] bf16  -- im2col patches; block q holds the patches of the
                               conv-output pixels that share a pooling window.
    w_ref: [K, 128]  bf16, b_ref: [1, 128] f32, o_ref: [TM, 128] f32.
    """
    w = w_ref[...]
    b = b_ref[...]
    acc = jnp.zeros(o_ref.shape, jnp.float32)
    for q in range(4):
        y = jnp.dot(p_ref[q], w, preferred_element_type=jnp.float32) + b
        acc = acc + jnp.maximum(y, 0.0)
    o_ref[...] = acc * 0.25


def _tail_kernel(p2_ref, w2_ref, b2_ref, wf1_ref, bf1_ref, wf2_ref, bf2_ref,
                 wf3_ref, bf3_ref, o_ref, pool_ref, *, batch):
    """conv2 + bias + ReLU + 2x2 avg-pool + fc1 + fc2 + fc3, fully fused.

    p2_ref : [4, 25*B, 150] bf16 (rows ordered (spatial r, batch b))
    w2_ref : [150, 128] bf16        b2_ref : [1, 128] f32
    wf1_ref: [25*128, 128] bf16 (block r = weights for spatial position r)
    wf2_ref/wf3_ref: [128, 128] bf16, biases [1, 128] f32
    o_ref  : [B, 128] f32           pool_ref: VMEM scratch [25*B, 128] f32
    """
    n = o_ref.shape[-1]

    # conv2 + bias + ReLU + fused 2x2 average pool.
    w2 = w2_ref[...]
    b2 = b2_ref[...]
    pooled = jnp.zeros((pool_ref.shape[0], n), jnp.float32)
    for q in range(4):
        y = jnp.dot(p2_ref[q], w2, preferred_element_type=jnp.float32) + b2
        pooled = pooled + jnp.maximum(y, 0.0)
    pool_ref[...] = pooled * 0.25  # [25*B, 128]; rows (spatial r, batch b)

    # fc1: the NCHW flatten is decomposed into 25 small dots (one per spatial
    # position); channels stay on the lane axis the whole time.
    acc = jnp.zeros((batch, n), jnp.float32)
    for r in range(25):
        a_r = pool_ref[pl.ds(r * batch, batch), :].astype(jnp.bfloat16)
        acc = acc + jnp.dot(a_r, wf1_ref[pl.ds(r * n, n), :],
                            preferred_element_type=jnp.float32)
    h1 = jnp.maximum(acc + bf1_ref[...], 0.0)                       # [B, 128]

    # fc2 + ReLU, fc3 -- intermediates never leave VMEM.
    h2 = jnp.maximum(
        jnp.dot(h1.astype(jnp.bfloat16), wf2_ref[...],
                preferred_element_type=jnp.float32) + bf2_ref[...], 0.0)
    out = jnp.dot(h2.astype(jnp.bfloat16), wf3_ref[...],
                  preferred_element_type=jnp.float32) + bf3_ref[...]
    o_ref[...] = out


# ----------------------------------------------------------------------------
# Wrappers around pallas_call
# ----------------------------------------------------------------------------
def _pick_tile(m, cap=512):
    """Largest multiple-of-8 divisor of m that is <= cap (falls back to m)."""
    if m <= cap:
        return m
    best = None
    for t in range(8, cap + 1, 8):
        if m % t == 0:
            best = t
    return best if best is not None else m


def conv_relu_pool(p, w, b):
    """p: [4, M, K] bf16, w: [K, 128] bf16, b: [1, 128] f32 -> [M, 128] f32."""
    _, m, k = p.shape
    nn = w.shape[1]
    tm = _pick_tile(m)
    grid = (m // tm,)
    return pl.pallas_call(
        _conv_relu_pool_kernel,
        out_shape=jax.ShapeDtypeStruct((m, nn), jnp.float32),
        grid=grid,
        in_specs=[
            pl.BlockSpec((4, tm, k), lambda i: (0, i, 0)),
            pl.BlockSpec((k, nn), lambda i: (0, 0)),
            pl.BlockSpec((1, nn), lambda i: (0, 0)),
        ],
        out_specs=pl.BlockSpec((tm, nn), lambda i: (i, 0)),
        compiler_params=pltpu.CompilerParams(
            dimension_semantics=("parallel",)),
    )(p, w, b)


def lenet_tail(p2, w2, b2, wf1s, bf1, wf2, bf2, wf3, bf3, batch):
    _, p2rows, k2 = p2.shape
    nn = LANES
    kernel = functools.partial(_tail_kernel, batch=batch)
    return pl.pallas_call(
        kernel,
        out_shape=jax.ShapeDtypeStruct((batch, nn), jnp.float32),
        grid=(1,),
        in_specs=[
            pl.BlockSpec((4, p2rows, k2), lambda i: (0, 0, 0)),
            pl.BlockSpec((k2, nn), lambda i: (0, 0)),
            pl.BlockSpec((1, nn), lambda i: (0, 0)),
            pl.BlockSpec((25 * nn, nn), lambda i: (0, 0)),
            pl.BlockSpec((1, nn), lambda i: (0, 0)),
            pl.BlockSpec((nn, nn), lambda i: (0, 0)),
            pl.BlockSpec((1, nn), lambda i: (0, 0)),
            pl.BlockSpec((nn, nn), lambda i: (0, 0)),
            pl.BlockSpec((1, nn), lambda i: (0, 0)),
        ],
        out_specs=pl.BlockSpec((batch, nn), lambda i: (0, 0)),
        scratch_shapes=[pltpu.VMEM((p2rows, nn), jnp.float32)],
    )(p2, w2, b2, wf1s, bf1, wf2, bf2, wf3, bf3)


# ----------------------------------------------------------------------------
# Glue: im2col with the rows grouped into the 4 pooling-offset blocks
# ----------------------------------------------------------------------------
def _im2col_pool_blocks(x, kh, kw, order):
    """x: [B, H, W, C] NHWC.  Valid conv (stride 1) patches, regrouped so a
    2x2 average pool becomes the mean of the 4 leading blocks.

    Returns [4, B*(OH//2)*(OW//2), kh*kw*C]; block q = di*2+dj holds the
    patches of conv-output pixels (2i+di, 2j+dj).
    order="bij": rows (b, i, j); order="ijb": rows (i, j, b).
    Row content is ordered (ky, kx, c) -- the weights are permuted to match.
    """
    B, H, W, C = x.shape
    OH, OW = H - kh + 1, W - kw + 1
    PH, PW = OH // 2, OW // 2
    cols = jnp.stack([x[:, ky:ky + OH, kx:kx + OW, :]
                      for ky in range(kh) for kx in range(kw)],
                     axis=3)                                  # [B,OH,OW,kh*kw,C]
    K = kh * kw * C
    patches = cols.reshape(B, OH, OW, K)
    pr = patches.reshape(B, PH, 2, PW, 2, K)
    if order == "bij":
        p = pr.transpose(2, 4, 0, 1, 3, 5)                    # (di,dj,b,i,j,K)
    else:  # "ijb"
        p = pr.transpose(2, 4, 1, 3, 0, 5)                    # (di,dj,i,j,b,K)
    return p.reshape(4, B * PH * PW, K)


# ----------------------------------------------------------------------------
# Parameter preparation (one-time padding / permutation to TPU-friendly layout)
# ----------------------------------------------------------------------------
def prepare_params(params):
    (w1, b1, w2, b2, wf1, bf1, wf2, bf2, wf3, bf3) = params
    F = LANES

    # conv1 weights: [6,1,5,5] -> rows (ky,kx,cin), cols padded to 128.
    w1r = w1.transpose(2, 3, 1, 0).reshape(25 * w1.shape[1], w1.shape[0])
    w1p = jnp.zeros((w1r.shape[0], F), jnp.float32).at[:, :6].set(w1r)
    b1p = jnp.zeros((1, F), jnp.float32).at[0, :6].set(b1)

    # conv2 weights: [16,6,5,5] -> rows (ky,kx,cin), cols padded to 128.
    w2r = w2.transpose(2, 3, 1, 0).reshape(25 * w2.shape[1], w2.shape[0])
    w2p = jnp.zeros((w2r.shape[0], F), jnp.float32).at[:, :16].set(w2r)
    b2p = jnp.zeros((1, F), jnp.float32).at[0, :16].set(b2)

    # fc1: wf1 [120, 400], PyTorch flatten order (c, i, j).  Restack as
    # [25*128, 128]: block r holds the [cin_pad, out_pad] weights for spatial
    # position r = i*5+j (absorbs the NCHW flatten into the weights).
    wf1_t = wf1.T.reshape(16, 25, 120).transpose(1, 0, 2)       # [r, c, n]
    wf1s = jnp.zeros((25, F, F), jnp.float32).at[:, :16, :120].set(wf1_t)
    wf1s = wf1s.reshape(25 * F, F)
    bf1p = jnp.zeros((1, F), jnp.float32).at[0, :120].set(bf1)

    wf2p = jnp.zeros((F, F), jnp.float32).at[:120, :84].set(wf2.T)
    bf2p = jnp.zeros((1, F), jnp.float32).at[0, :84].set(bf2)
    wf3p = jnp.zeros((F, F), jnp.float32).at[:84, :n_class].set(wf3.T)
    bf3p = jnp.zeros((1, F), jnp.float32).at[0, :n_class].set(bf3)

    bf16 = jnp.bfloat16
    return (w1p.astype(bf16), b1p, w2p.astype(bf16), b2p,
            wf1s.astype(bf16), bf1p, wf2p.astype(bf16), bf2p,
            wf3p.astype(bf16), bf3p)


# ----------------------------------------------------------------------------
# LeNet5 forward
# ----------------------------------------------------------------------------
def lenet5_forward(x, prepped):
    (w1p, b1p, w2p, b2p, wf1s, bf1p, wf2p, bf2p, wf3p, bf3p) = prepped
    B = x.shape[0]

    # NCHW -> NHWC once, pad for conv1's padding=2.
    xh = jnp.transpose(x, (0, 2, 3, 1))
    xh = jnp.pad(xh, ((0, 0), (2, 2), (2, 2), (0, 0)))

    # conv1 + ReLU + avg_pool (one pallas_call, tiled over pooled rows).
    p1 = _im2col_pool_blocks(xh, 5, 5, order="bij").astype(jnp.bfloat16)
    o1 = conv_relu_pool(p1, w1p, b1p)                  # [B*14*14, 128]
    a1 = o1.reshape(B, 14, 14, LANES)[:, :, :, :6]     # real conv1 channels

    # conv2 + ReLU + avg_pool + fc1 + fc2 + fc3 (single fused pallas_call).
    p2 = _im2col_pool_blocks(a1, 5, 5, order="ijb").astype(jnp.bfloat16)
    logits = lenet_tail(p2, w2p, b2p, wf1s, bf1p, wf2p, bf2p, wf3p, bf3p, B)
    return logits[:, :n_class]


def init_params(key, in_dim=1, n_class=10):
    ks = jax.random.split(key, 10)
    s = 0.1
    w1 = jax.random.normal(ks[0], (6, in_dim, 5, 5), jnp.float32) * s
    b1 = jax.random.normal(ks[1], (6,), jnp.float32) * s
    w2 = jax.random.normal(ks[2], (16, 6, 5, 5), jnp.float32) * s
    b2 = jax.random.normal(ks[3], (16,), jnp.float32) * s
    wf1 = jax.random.normal(ks[4], (120, 5 * 5 * 16), jnp.float32) * s
    bf1 = jax.random.normal(ks[5], (120,), jnp.float32) * s
    wf2 = jax.random.normal(ks[6], (84, 120), jnp.float32) * s
    bf2 = jax.random.normal(ks[7], (84,), jnp.float32) * s
    wf3 = jax.random.normal(ks[8], (n_class, 84), jnp.float32) * s
    bf3 = jax.random.normal(ks[9], (n_class,), jnp.float32) * s
    return (w1, b1, w2, b2, wf1, bf1, wf2, bf2, wf3, bf3)


if __name__ == "__main__":
    key = jax.random.PRNGKey(0)
    kx, kp = jax.random.split(key)

    # LeNet5's fc1 (16*5*5 = 400) implies a 28x28 single-channel input (MNIST).
    B, C, H, W = 2, in_dim, 28, 28
    x = jax.random.normal(kx, (B, C, H, W), jnp.float32)

    params = init_params(kp, in_dim=C, n_class=n_class)
    prepped = prepare_params(params)   # one-time pad/permute to TPU layout

    fwd = jax.jit(lenet5_forward)
    out = jax.block_until_ready(fwd(x, prepped))
    assert out.shape == (B, n_class), out.shape
    print("KERNEL_OK")
</pallas_src>

<mosaic_0001>
module attributes {stable_mosaic.version = 11 : i64} {
  func.func @_conv_relu_pool_kernel(%arg0: i32, %arg1: memref<4x392x25xbf16, #tpu.memory_space<vmem>>, %arg2: memref<25x128xbf16, #tpu.memory_space<vmem>>, %arg3: memref<1x128xf32, #tpu.memory_space<vmem>>, %arg4: memref<392x128xf32, #tpu.memory_space<vmem>>) attributes {dimension_semantics = [#tpu.dimension_semantics<parallel>], iteration_bounds = array<i64: 1>, scalar_prefetch = 0 : i64, scratch_operands = 0 : i64, tpu.core_type = #tpu.core_type<tc>, window_params = [{transform_indices = @transform_0, window_bounds = array<i64: 4, 392, 25>}, {pipeline_mode = #tpu.pipeline_mode<synchronous>, transform_indices = @transform_1, window_bounds = array<i64: 25, 128>}, {pipeline_mode = #tpu.pipeline_mode<synchronous>, transform_indices = @transform_2, window_bounds = array<i64: 1, 128>}, {transform_indices = @transform_3, window_bounds = array<i64: 392, 128>}]} {
    %c0 = arith.constant 0 : index
    %c0_0 = arith.constant 0 : index
    %0 = vector.load %arg2[%c0, %c0_0] : memref<25x128xbf16, #tpu.memory_space<vmem>>, vector<25x128xbf16>
    %c0_1 = arith.constant 0 : index
    %c0_2 = arith.constant 0 : index
    %1 = vector.load %arg3[%c0_1, %c0_2] : memref<1x128xf32, #tpu.memory_space<vmem>>, vector<1x128xf32>
    %cst = arith.constant 0.000000e+00 : f32
    %2 = vector.broadcast %cst : f32 to vector<392x128xf32>
    %c0_3 = arith.constant 0 : index
    %c0_4 = arith.constant 0 : index
    %c0_5 = arith.constant 0 : index
    %3 = vector.load %arg1[%c0_3, %c0_4, %c0_5] : memref<4x392x25xbf16, #tpu.memory_space<vmem>>, vector<1x392x25xbf16>
    %4 = vector.shape_cast %3 : vector<1x392x25xbf16> to vector<392x25xbf16>
    %cst_6 = arith.constant dense<0.000000e+00> : vector<392x128xf32>
    %5 = tpu.matmul %4, %0, %cst_6 {dimension_numbers = #tpu.dot_dimension_numbers<[1], [0], [0], [1], [0, 0, 1, 1], [], []>} : vector<392x25xbf16>, vector<25x128xbf16>, vector<392x128xf32> -> vector<392x128xf32>
    %6 = vector.broadcast %1 : vector<1x128xf32> to vector<392x128xf32>
    %7 = arith.addf %5, %6 : vector<392x128xf32>
    %cst_7 = arith.constant 0.000000e+00 : f32
    %8 = vector.broadcast %cst_7 : f32 to vector<392x128xf32>
    %9 = arith.maximumf %7, %8 : vector<392x128xf32>
    %10 = arith.addf %2, %9 : vector<392x128xf32>
    %c1 = arith.constant 1 : index
    %c0_8 = arith.constant 0 : index
    %c0_9 = arith.constant 0 : index
    %11 = vector.load %arg1[%c1, %c0_8, %c0_9] : memref<4x392x25xbf16, #tpu.memory_space<vmem>>, vector<1x392x25xbf16>
    %12 = vector.shape_cast %11 : vector<1x392x25xbf16> to vector<392x25xbf16>
    %cst_10 = arith.constant dense<0.000000e+00> : vector<392x128xf32>
    %13 = tpu.matmul %12, %0, %cst_10 {dimension_numbers = #tpu.dot_dimension_numbers<[1], [0], [0], [1], [0, 0, 1, 1], [], []>} : vector<392x25xbf16>, vector<25x128xbf16>, vector<392x128xf32> -> vector<392x128xf32>
    %14 = vector.broadcast %1 : vector<1x128xf32> to vector<392x128xf32>
    %15 = arith.addf %13, %14 : vector<392x128xf32>
    %cst_11 = arith.constant 0.000000e+00 : f32
    %16 = vector.broadcast %cst_11 : f32 to vector<392x128xf32>
    %17 = arith.maximumf %15, %16 : vector<392x128xf32>
    %18 = arith.addf %10, %17 : vector<392x128xf32>
    %c2 = arith.constant 2 : index
    %c0_12 = arith.constant 0 : index
    %c0_13 = arith.constant 0 : index
    %19 = vector.load %arg1[%c2, %c0_12, %c0_13] : memref<4x392x25xbf16, #tpu.memory_space<vmem>>, vector<1x392x25xbf16>
    %20 = vector.shape_cast %19 : vector<1x392x25xbf16> to vector<392x25xbf16>
    %cst_14 = arith.constant dense<0.000000e+00> : vector<392x128xf32>
    %21 = tpu.matmul %20, %0, %cst_14 {dimension_numbers = #tpu.dot_dimension_numbers<[1], [0], [0], [1], [0, 0, 1, 1], [], []>} : vector<392x25xbf16>, vector<25x128xbf16>, vector<392x128xf32> -> vector<392x128xf32>
    %22 = vector.broadcast %1 : vector<1x128xf32> to vector<392x128xf32>
    %23 = arith.addf %21, %22 : vector<392x128xf32>
    %cst_15 = arith.constant 0.000000e+00 : f32
    %24 = vector.broadcast %cst_15 : f32 to vector<392x128xf32>
    %25 = arith.maximumf %23, %24 : vector<392x128xf32>
    %26 = arith.addf %18, %25 : vector<392x128xf32>
    %c3 = arith.constant 3 : index
    %c0_16 = arith.constant 0 : index
    %c0_17 = arith.constant 0 : index
    %27 = vector.load %arg1[%c3, %c0_16, %c0_17] : memref<4x392x25xbf16, #tpu.memory_space<vmem>>, vector<1x392x25xbf16>
    %28 = vector.shape_cast %27 : vector<1x392x25xbf16> to vector<392x25xbf16>
    %cst_18 = arith.constant dense<0.000000e+00> : vector<392x128xf32>
    %29 = tpu.matmul %28, %0, %cst_18 {dimension_numbers = #tpu.dot_dimension_numbers<[1], [0], [0], [1], [0, 0, 1, 1], [], []>} : vector<392x25xbf16>, vector<25x128xbf16>, vector<392x128xf32> -> vector<392x128xf32>
    %30 = vector.broadcast %1 : vector<1x128xf32> to vector<392x128xf32>
    %31 = arith.addf %29, %30 : vector<392x128xf32>
    %cst_19 = arith.constant 0.000000e+00 : f32
    %32 = vector.broadcast %cst_19 : f32 to vector<392x128xf32>
    %33 = arith.maximumf %31, %32 : vector<392x128xf32>
    %34 = arith.addf %26, %33 : vector<392x128xf32>
    %cst_20 = arith.constant 2.500000e-01 : f32
    %35 = vector.broadcast %cst_20 : f32 to vector<392x128xf32>
    %36 = arith.mulf %34, %35 : vector<392x128xf32>
    %c0_21 = arith.constant 0 : index
    %c0_22 = arith.constant 0 : index
    %37 = vector.load %arg4[%c0_21, %c0_22] : memref<392x128xf32, #tpu.memory_space<vmem>>, vector<392x128xf32>
    tpu.vector_store %arg4[%c0_21, %c0_22], %36 {strides = array<i32>} : memref<392x128xf32, #tpu.memory_space<vmem>>, vector<392x128xf32>,
    return
  }
  func.func @transform_0(%arg0: i32) -> (i32, i32, i32) {
    %c0_i32 = arith.constant 0 : i32
    %c0_i32_0 = arith.constant 0 : i32
    %c0_i32_1 = arith.constant 0 : i32
    return %c0_i32, %arg0, %c0_i32_0 : i32, i32, i32
  }
  func.func @transform_1(%arg0: i32) -> (i32, i32) {
    %c0_i32 = arith.constant 0 : i32
    %c0_i32_0 = arith.constant 0 : i32
    %c0_i32_1 = arith.constant 0 : i32
    return %c0_i32, %c0_i32_0 : i32, i32
  }
  func.func @transform_2(%arg0: i32) -> (i32, i32) {
    %c0_i32 = arith.constant 0 : i32
    %c0_i32_0 = arith.constant 0 : i32
    %c0_i32_1 = arith.constant 0 : i32
    return %c0_i32, %c0_i32_0 : i32, i32
  }
  func.func @transform_3(%arg0: i32) -> (i32, i32) {
    %c0_i32 = arith.constant 0 : i32
    %c0_i32_0 = arith.constant 0 : i32
    return %arg0, %c0_i32 : i32, i32
  }
}

module attributes {stable_mosaic.version = 11 : i64} {
  func.func @_tail_kernel(%arg0: i32, %arg1: memref<4x50x150xbf16, #tpu.memory_space<vmem>>, %arg2: memref<150x128xbf16, #tpu.memory_space<vmem>>, %arg3: memref<1x128xf32, #tpu.memory_space<vmem>>, %arg4: memref<3200x128xbf16, #tpu.memory_space<vmem>>, %arg5: memref<1x128xf32, #tpu.memory_space<vmem>>, %arg6: memref<128x128xbf16, #tpu.memory_space<vmem>>, %arg7: memref<1x128xf32, #tpu.memory_space<vmem>>, %arg8: memref<128x128xbf16, #tpu.memory_space<vmem>>, %arg9: memref<1x128xf32, #tpu.memory_space<vmem>>, %arg10: memref<2x128xf32, #tpu.memory_space<vmem>>, %arg11: memref<50x128xf32, #tpu.memory_space<vmem>>) attributes {dimension_semantics = [#tpu.dimension_semantics<arbitrary>], iteration_bounds = array<i64: 1>, scalar_prefetch = 0 : i64, scratch_operands = 1 : i64, tpu.core_type = #tpu.core_type<tc>, window_params = [{pipeline_mode = #tpu.pipeline_mode<synchronous>, transform_indices = @transform_0, window_bounds = array<i64: 4, 50, 150>}, {pipeline_mode = #tpu.pipeline_mode<synchronous>, transform_indices = @transform_1, window_bounds = array<i64: 150, 128>}, {pipeline_mode = #tpu.pipeline_mode<synchronous>, transform_indices = @transform_2, window_bounds = array<i64: 1, 128>}, {pipeline_mode = #tpu.pipeline_mode<synchronous>, transform_indices = @transform_3, window_bounds = array<i64: 3200, 128>}, {pipeline_mode = #tpu.pipeline_mode<synchronous>, transform_indices = @transform_4, window_bounds = array<i64: 1, 128>}, {pipeline_mode = #tpu.pipeline_mode<synchronous>, transform_indices = @transform_5, window_bounds = array<i64: 128, 128>}, {pipeline_mode = #tpu.pipeline_mode<synchronous>, transform_indices = @transform_6, window_bounds = array<i64: 1, 128>}, {pipeline_mode = #tpu.pipeline_mode<synchronous>, transform_indices = @transform_7, window_bounds = array<i64: 128, 128>}, {pipeline_mode = #tpu.pipeline_mode<synchronous>, transform_indices = @transform_8, window_bounds = array<i64: 1, 128>}, {pipeline_mode = #tpu.pipeline_mode<synchronous>, transform_indices = @transform_9, window_bounds = array<i64: 2, 128>}]} {
    %c0 = arith.constant 0 : index
    %c0_0 = arith.constant 0 : index
    %0 = vector.load %arg2[%c0, %c0_0] : memref<150x128xbf16, #tpu.memory_space<vmem>>, vector<150x128xbf16>
    %c0_1 = arith.constant 0 : index
    %c0_2 = arith.constant 0 : index
    %1 = vector.load %arg3[%c0_1, %c0_2] : memref<1x128xf32, #tpu.memory_space<vmem>>, vector<1x128xf32>
    %cst = arith.constant 0.000000e+00 : f32
    %2 = vector.broadcast %cst : f32 to vector<50x128xf32>
    %c0_3 = arith.constant 0 : index
    %c0_4 = arith.constant 0 : index
    %c0_5 = arith.constant 0 : index
    %3 = vector.load %arg1[%c0_3, %c0_4, %c0_5] : memref<4x50x150xbf16, #tpu.memory_space<vmem>>, vector<1x50x150xbf16>
    %4 = vector.shape_cast %3 : vector<1x50x150xbf16> to vector<50x150xbf16>
    %cst_6 = arith.constant dense<0.000000e+00> : vector<50x128xf32>
    %5 = tpu.matmul %4, %0, %cst_6 {dimension_numbers = #tpu.dot_dimension_numbers<[1], [0], [0], [1], [0, 0, 1, 1], [], []>} : vector<50x150xbf16>, vector<150x128xbf16>, vector<50x128xf32> -> vector<50x128xf32>
    %6 = vector.broadcast %1 : vector<1x128xf32> to vector<50x128xf32>
    %7 = arith.addf %5, %6 : vector<50x128xf32>
    %cst_7 = arith.constant 0.000000e+00 : f32
    %8 = vector.broadcast %cst_7 : f32 to vector<50x128xf32>
    %9 = arith.maximumf %7, %8 : vector<50x128xf32>
    %10 = arith.addf %2, %9 : vector<50x128xf32>
    %c1 = arith.constant 1 : index
    %c0_8 = arith.constant 0 : index
    %c0_9 = arith.constant 0 : index
    %11 = vector.load %arg1[%c1, %c0_8, %c0_9] : memref<4x50x150xbf16, #tpu.memory_space<vmem>>, vector<1x50x150xbf16>
    %12 = vector.shape_cast %11 : vector<1x50x150xbf16> to vector<50x150xbf16>
    %cst_10 = arith.constant dense<0.000000e+00> : vector<50x128xf32>
    %13 = tpu.matmul %12, %0, %cst_10 {dimension_numbers = #tpu.dot_dimension_numbers<[1], [0], [0], [1], [0, 0, 1, 1], [], []>} : vector<50x150xbf16>, vector<150x128xbf16>, vector<50x128xf32> -> vector<50x128xf32>
    %14 = vector.broadcast %1 : vector<1x128xf32> to vector<50x128xf32>
    %15 = arith.addf %13, %14 : vector<50x128xf32>
    %cst_11 = arith.constant 0.000000e+00 : f32
    %16 = vector.broadcast %cst_11 : f32 to vector<50x128xf32>
    %17 = arith.maximumf %15, %16 : vector<50x128xf32>
    %18 = arith.addf %10, %17 : vector<50x128xf32>
    %c2 = arith.constant 2 : index
    %c0_12 = arith.constant 0 : index
    %c0_13 = arith.constant 0 : index
    %19 = vector.load %arg1[%c2, %c0_12, %c0_13] : memref<4x50x150xbf16, #tpu.memory_space<vmem>>, vector<1x50x150xbf16>
    %20 = vector.shape_cast %19 : vector<1x50x150xbf16> to vector<50x150xbf16>
    %cst_14 = arith.constant dense<0.000000e+00> : vector<50x128xf32>
    %21 = tpu.matmul %20, %0, %cst_14 {dimension_numbers = #tpu.dot_dimension_numbers<[1], [0], [0], [1], [0, 0, 1, 1], [], []>} : vector<50x150xbf16>, vector<150x128xbf16>, vector<50x128xf32> -> vector<50x128xf32>
    %22 = vector.broadcast %1 : vector<1x128xf32> to vector<50x128xf32>
    %23 = arith.addf %21, %22 : vector<50x128xf32>
    %cst_15 = arith.constant 0.000000e+00 : f32
    %24 = vector.broadcast %cst_15 : f32 to vector<50x128xf32>
    %25 = arith.maximumf %23, %24 : vector<50x128xf32>
    %26 = arith.addf %18, %25 : vector<50x128xf32>
    %c3 = arith.constant 3 : index
    %c0_16 = arith.constant 0 : index
    %c0_17 = arith.constant 0 : index
    %27 = vector.load %arg1[%c3, %c0_16, %c0_17] : memref<4x50x150xbf16, #tpu.memory_space<vmem>>, vector<1x50x150xbf16>
    %28 = vector.shape_cast %27 : vector<1x50x150xbf16> to vector<50x150xbf16>
    %cst_18 = arith.constant dense<0.000000e+00> : vector<50x128xf32>
    %29 = tpu.matmul %28, %0, %cst_18 {dimension_numbers = #tpu.dot_dimension_numbers<[1], [0], [0], [1], [0, 0, 1, 1], [], []>} : vector<50x150xbf16>, vector<150x128xbf16>, vector<50x128xf32> -> vector<50x128xf32>
    %30 = vector.broadcast %1 : vector<1x128xf32> to vector<50x128xf32>
    %31 = arith.addf %29, %30 : vector<50x128xf32>
    %cst_19 = arith.constant 0.000000e+00 : f32
    %32 = vector.broadcast %cst_19 : f32 to vector<50x128xf32>
    %33 = arith.maximumf %31, %32 : vector<50x128xf32>
    %34 = arith.addf %26, %33 : vector<50x128xf32>
    %cst_20 = arith.constant 2.500000e-01 : f32
    %35 = vector.broadcast %cst_20 : f32 to vector<50x128xf32>
    %36 = arith.mulf %34, %35 : vector<50x128xf32>
    %c0_21 = arith.constant 0 : index
    %c0_22 = arith.constant 0 : index
    %37 = vector.load %arg11[%c0_21, %c0_22] : memref<50x128xf32, #tpu.memory_space<vmem>>, vector<50x128xf32>
    tpu.vector_store %arg11[%c0_21, %c0_22], %36 {strides = array<i32>} : memref<50x128xf32, #tpu.memory_space<vmem>>, vector<50x128xf32>,
    %cst_23 = arith.constant 0.000000e+00 : f32
    %38 = vector.broadcast %cst_23 : f32 to vector<2x128xf32>
    %c0_24 = arith.constant 0 : index
    %c0_25 = arith.constant 0 : index
    %39 = vector.load %arg11[%c0_24, %c0_25] : memref<50x128xf32, #tpu.memory_space<vmem>>, vector<2x128xf32>
    %40 = arith.truncf %39 : vector<2x128xf32> to vector<2x128xbf16>
    %c0_26 = arith.constant 0 : index
    %c0_27 = arith.constant 0 : index
    %41 = vector.load %arg4[%c0_26, %c0_27] : memref<3200x128xbf16, #tpu.memory_space<vmem>>, vector<128x128xbf16>
    %cst_28 = arith.constant dense<0.000000e+00> : vector<2x128xf32>
    %42 = tpu.matmul %40, %41, %cst_28 {dimension_numbers = #tpu.dot_dimension_numbers<[1], [0], [0], [1], [0, 0, 1, 1], [], []>} : vector<2x128xbf16>, vector<128x128xbf16>, vector<2x128xf32> -> vector<2x128xf32>
    %43 = arith.addf %38, %42 : vector<2x128xf32>
    %c2_29 = arith.constant 2 : index
    %c0_30 = arith.constant 0 : index
    %44 = vector.load %arg11[%c2_29, %c0_30] : memref<50x128xf32, #tpu.memory_space<vmem>>, vector<2x128xf32>
    %45 = arith.truncf %44 : vector<2x128xf32> to vector<2x128xbf16>
    %c128 = arith.constant 128 : index
    %c0_31 = arith.constant 0 : index
    %46 = vector.load %arg4[%c128, %c0_31] : memref<3200x128xbf16, #tpu.memory_space<vmem>>, vector<128x128xbf16>
    %cst_32 = arith.constant dense<0.000000e+00> : vector<2x128xf32>
    %47 = tpu.matmul %45, %46, %cst_32 {dimension_numbers = #tpu.dot_dimension_numbers<[1], [0], [0], [1], [0, 0, 1, 1], [], []>} : vector<2x128xbf16>, vector<128x128xbf16>, vector<2x128xf32> -> vector<2x128xf32>
    %48 = arith.addf %43, %47 : vector<2x128xf32>
    %c4 = arith.constant 4 : index
    %c0_33 = arith.constant 0 : index
    %49 = vector.load %arg11[%c4, %c0_33] : memref<50x128xf32, #tpu.memory_space<vmem>>, vector<2x128xf32>
    %50 = arith.truncf %49 : vector<2x128xf32> to vector<2x128xbf16>
    %c256 = arith.constant 256 : index
    %c0_34 = arith.constant 0 : index
    %51 = vector.load %arg4[%c256, %c0_34] : memref<3200x128xbf16, #tpu.memory_space<vmem>>, vector<128x128xbf16>
    %cst_35 = arith.constant dense<0.000000e+00> : vector<2x128xf32>
    %52 = tpu.matmul %50, %51, %cst_35 {dimension_numbers = #tpu.dot_dimension_numbers<[1], [0], [0], [1], [0, 0, 1, 1], [], []>} : vector<2x128xbf16>, vector<128x128xbf16>, vector<2x128xf32> -> vector<2x128xf32>
    %53 = arith.addf %48, %52 : vector<2x128xf32>
    %c6 = arith.constant 6 : index
    %c0_36 = arith.constant 0 : index
    %54 = vector.load %arg11[%c6, %c0_36] : memref<50x128xf32, #tpu.memory_space<vmem>>, vector<2x128xf32>
    %55 = arith.truncf %54 : vector<2x128xf32> to vector<2x128xbf16>
    %c384 = arith.constant 384 : index
    %c0_37 = arith.constant 0 : index
    %56 = vector.load %arg4[%c384, %c0_37] : memref<3200x128xbf16, #tpu.memory_space<vmem>>, vector<128x128xbf16>
    %cst_38 = arith.constant dense<0.000000e+00> : vector<2x128xf32>
    %57 = tpu.matmul %55, %56, %cst_38 {dimension_numbers = #tpu.dot_dimension_numbers<[1], [0], [0], [1], [0, 0, 1, 1], [], []>} : vector<2x128xbf16>, vector<128x128xbf16>, vector<2x128xf32> -> vector<2x128xf32>
    %58 = arith.addf %53, %57 : vector<2x128xf32>
    %c8 = arith.constant 8 : index
    %c0_39 = arith.constant 0 : index
    %59 = vector.load %arg11[%c8, %c0_39] : memref<50x128xf32, #tpu.memory_space<vmem>>, vector<2x128xf32>
    %60 = arith.truncf %59 : vector<2x128xf32> to vector<2x128xbf16>
    %c512 = arith.constant 512 : index
    %c0_40 = arith.constant 0 : index
    %61 = vector.load %arg4[%c512, %c0_40] : memref<3200x128xbf16, #tpu.memory_space<vmem>>, vector<128x128xbf16>
    %cst_41 = arith.constant dense<0.000000e+00> : vector<2x128xf32>
    %62 = tpu.matmul %60, %61, %cst_41 {dimension_numbers = #tpu.dot_dimension_numbers<[1], [0], [0], [1], [0, 0, 1, 1], [], []>} : vector<2x128xbf16>, vector<128x128xbf16>, vector<2x128xf32> -> vector<2x128xf32>
    %63 = arith.addf %58, %62 : vector<2x128xf32>
    %c10 = arith.constant 10 : index
    %c0_42 = arith.constant 0 : index
    %64 = vector.load %arg11[%c10, %c0_42] : memref<50x128xf32, #tpu.memory_space<vmem>>, vector<2x128xf32>
    %65 = arith.truncf %64 : vector<2x128xf32> to vector<2x128xbf16>
    %c640 = arith.constant 640 : index
    %c0_43 = arith.constant 0 : index
    %66 = vector.load %arg4[%c640, %c0_43] : memref<3200x128xbf16, #tpu.memory_space<vmem>>, vector<128x128xbf16>
    %cst_44 = arith.constant dense<0.000000e+00> : vector<2x128xf32>
    %67 = tpu.matmul %65, %66, %cst_44 {dimension_numbers = #tpu.dot_dimension_numbers<[1], [0], [0], [1], [0, 0, 1, 1], [], []>} : vector<2x128xbf16>, vector<128x128xbf16>, vector<2x128xf32> -> vector<2x128xf32>
    %68 = arith.addf %63, %67 : vector<2x128xf32>
    %c12 = arith.constant 12 : index
    %c0_45 = arith.constant 0 : index
    %69 = vector.load %arg11[%c12, %c0_45] : memref<50x128xf32, #tpu.memory_space<vmem>>, vector<2x128xf32>
    %70 = arith.truncf %69 : vector<2x128xf32> to vector<2x128xbf16>
    %c768 = arith.constant 768 : index
    %c0_46 = arith.constant 0 : index
    %71 = vector.load %arg4[%c768, %c0_46] : memref<3200x128xbf16, #tpu.memory_space<vmem>>, vector<128x128xbf16>
    %cst_47 = arith.constant dense<0.000000e+00> : vector<2x128xf32>
    %72 = tpu.matmul %70, %71, %cst_47 {dimension_numbers = #tpu.dot_dimension_numbers<[1], [0], [0], [1], [0, 0, 1, 1], [], []>} : vector<2x128xbf16>, vector<128x128xbf16>, vector<2x128xf32> -> vector<2x128xf32>
    %73 = arith.addf %68, %72 : vector<2x128xf32>
    %c14 = arith.constant 14 : index
    %c0_48 = arith.constant 0 : index
    %74 = vector.load %arg11[%c14, %c0_48] : memref<50x128xf32, #tpu.memory_space<vmem>>, vector<2x128xf32>
    %75 = arith.truncf %74 : vector<2x128xf32> to vector<2x128xbf16>
    %c896 = arith.constant 896 : index
    %c0_49 = arith.constant 0 : index
    %76 = vector.load %arg4[%c896, %c0_49] : memref<3200x128xbf16, #tpu.memory_space<vmem>>, vector<128x128xbf16>
    %cst_50 = arith.constant dense<0.000000e+00> : vector<2x128xf32>
    %77 = tpu.matmul %75, %76, %cst_50 {dimension_numbers = #tpu.dot_dimension_numbers<[1], [0], [0], [1], [0, 0, 1, 1], [], []>} : vector<2x128xbf16>, vector<128x128xbf16>, vector<2x128xf32> -> vector<2x128xf32>
    %78 = arith.addf %73, %77 : vector<2x128xf32>
    %c16 = arith.constant 16 : index
    %c0_51 = arith.constant 0 : index
    %79 = vector.load %arg11[%c16, %c0_51] : memref<50x128xf32, #tpu.memory_space<vmem>>, vector<2x128xf32>
    %80 = arith.truncf %79 : vector<2x128xf32> to vector<2x128xbf16>
    %c1024 = arith.constant 1024 : index
    %c0_52 = arith.constant 0 : index
    %81 = vector.load %arg4[%c1024, %c0_52] : memref<3200x128xbf16, #tpu.memory_space<vmem>>, vector<128x128xbf16>
    %cst_53 = arith.constant dense<0.000000e+00> : vector<2x128xf32>
    %82 = tpu.matmul %80, %81, %cst_53 {dimension_numbers = #tpu.dot_dimension_numbers<[1], [0], [0], [1], [0, 0, 1, 1], [], []>} : vector<2x128xbf16>, vector<128x128xbf16>, vector<2x128xf32> -> vector<2x128xf32>
    %83 = arith.addf %78, %82 : vector<2x128xf32>
    %c18 = arith.constant 18 : index
    %c0_54 = arith.constant 0 : index
    %84 = vector.load %arg11[%c18, %c0_54] : memref<50x128xf32, #tpu.memory_space<vmem>>, vector<2x128xf32>
    %85 = arith.truncf %84 : vector<2x128xf32> to vector<2x128xbf16>
    %c1152 = arith.constant 1152 : index
    %c0_55 = arith.constant 0 : index
    %86 = vector.load %arg4[%c1152, %c0_55] : memref<3200x128xbf16, #tpu.memory_space<vmem>>, vector<128x128xbf16>
    %cst_56 = arith.constant dense<0.000000e+00> : vector<2x128xf32>
    %87 = tpu.matmul %85, %86, %cst_56 {dimension_numbers = #tpu.dot_dimension_numbers<[1], [0], [0], [1], [0, 0, 1, 1], [], []>} : vector<2x128xbf16>, vector<128x128xbf16>, vector<2x128xf32> -> vector<2x128xf32>
    %88 = arith.addf %83, %87 : vector<2x128xf32>
    %c20 = arith.constant 20 : index
    %c0_57 = arith.constant 0 : index
    %89 = vector.load %arg11[%c20, %c0_57] : memref<50x128xf32, #tpu.memory_space<vmem>>, vector<2x128xf32>
    %90 = arith.truncf %89 : vector<2x128xf32> to vector<2x128xbf16>
    %c1280 = arith.constant 1280 : index
    %c0_58 = arith.constant 0 : index
    %91 = vector.load %arg4[%c1280, %c0_58] : memref<3200x128xbf16, #tpu.memory_space<vmem>>, vector<128x128xbf16>
    %cst_59 = arith.constant dense<0.000000e+00> : vector<2x128xf32>
    %92 = tpu.matmul %90, %91, %cst_59 {dimension_numbers = #tpu.dot_dimension_numbers<[1], [0], [0], [1], [0, 0, 1, 1], [], []>} : vector<2x128xbf16>, vector<128x128xbf16>, vector<2x128xf32> -> vector<2x128xf32>
    %93 = arith.addf %88, %92 : vector<2x128xf32>
    %c22 = arith.constant 22 : index
    %c0_60 = arith.constant 0 : index
    %94 = vector.load %arg11[%c22, %c0_60] : memref<50x128xf32, #tpu.memory_space<vmem>>, vector<2x128xf32>
    %95 = arith.truncf %94 : vector<2x128xf32> to vector<2x128xbf16>
    %c1408 = arith.constant 1408 : index
    %c0_61 = arith.constant 0 : index
    %96 = vector.load %arg4[%c1408, %c0_61] : memref<3200x128xbf16, #tpu.memory_space<vmem>>, vector<128x128xbf16>
    %cst_62 = arith.constant dense<0.000000e+00> : vector<2x128xf32>
    %97 = tpu.matmul %95, %96, %cst_62 {dimension_numbers = #tpu.dot_dimension_numbers<[1], [0], [0], [1], [0, 0, 1, 1], [], []>} : vector<2x128xbf16>, vector<128x128xbf16>, vector<2x128xf32> -> vector<2x128xf32>
    %98 = arith.addf %93, %97 : vector<2x128xf32>
    %c24 = arith.constant 24 : index
    %c0_63 = arith.constant 0 : index
    %99 = vector.load %arg11[%c24, %c0_63] : memref<50x128xf32, #tpu.memory_space<vmem>>, vector<2x128xf32>
    %100 = arith.truncf %99 : vector<2x128xf32> to vector<2x128xbf16>
    %c1536 = arith.constant 1536 : index
    %c0_64 = arith.constant 0 : index
    %101 = vector.load %arg4[%c1536, %c0_64] : memref<3200x128xbf16, #tpu.memory_space<vmem>>, vector<128x128xbf16>
    %cst_65 = arith.constant dense<0.000000e+00> : vector<2x128xf32>
    %102 = tpu.matmul %100, %101, %cst_65 {dimension_numbers = #tpu.dot_dimension_numbers<[1], [0], [0], [1], [0, 0, 1, 1], [], []>} : vector<2x128xbf16>, vector<128x128xbf16>, vector<2x128xf32> -> vector<2x128xf32>
    %103 = arith.addf %98, %102 : vector<2x128xf32>
    %c26 = arith.constant 26 : index
    %c0_66 = arith.constant 0 : index
    %104 = vector.load %arg11[%c26, %c0_66] : memref<50x128xf32, #tpu.memory_space<vmem>>, vector<2x128xf32>
    %105 = arith.truncf %104 : vector<2x128xf32> to vector<2x128xbf16>
    %c1664 = arith.constant 1664 : index
    %c0_67 = arith.constant 0 : index
    %106 = vector.load %arg4[%c1664, %c0_67] : memref<3200x128xbf16, #tpu.memory_space<vmem>>, vector<128x128xbf16>
    %cst_68 = arith.constant dense<0.000000e+00> : vector<2x128xf32>
    %107 = tpu.matmul %105, %106, %cst_68 {dimension_numbers = #tpu.dot_dimension_numbers<[1], [0], [0], [1], [0, 0, 1, 1], [], []>} : vector<2x128xbf16>, vector<128x128xbf16>, vector<2x128xf32> -> vector<2x128xf32>
    %108 = arith.addf %103, %107 : vector<2x128xf32>
    %c28 = arith.constant 28 : index
    %c0_69 = arith.constant 0 : index
    %109 = vector.load %arg11[%c28, %c0_69] : memref<50x128xf32, #tpu.memory_space<vmem>>, vector<2x128xf32>
    %110 = arith.truncf %109 : vector<2x128xf32> to vector<2x128xbf16>
    %c1792 = arith.constant 1792 : index
    %c0_70 = arith.constant 0 : index
    %111 = vector.load %arg4[%c1792, %c0_70] : memref<3200x128xbf16, #tpu.memory_space<vmem>>, vector<128x128xbf16>
    %cst_71 = arith.constant dense<0.000000e+00> : vector<2x128xf32>
    %112 = tpu.matmul %110, %111, %cst_71 {dimension_numbers = #tpu.dot_dimension_numbers<[1], [0], [0], [1], [0, 0, 1, 1], [], []>} : vector<2x128xbf16>, vector<128x128xbf16>, vector<2x128xf32> -> vector<2x128xf32>
    %113 = arith.addf %108, %112 : vector<2x128xf32>
    %c30 = arith.constant 30 : index
    %c0_72 = arith.constant 0 : index
    %114 = vector.load %arg11[%c30, %c0_72] : memref<50x128xf32, #tpu.memory_space<vmem>>, vector<2x128xf32>
    %115 = arith.truncf %114 : vector<2x128xf32> to vector<2x128xbf16>
    %c1920 = arith.constant 1920 : index
    %c0_73 = arith.constant 0 : index
    %116 = vector.load %arg4[%c1920, %c0_73] : memref<3200x128xbf16, #tpu.memory_space<vmem>>, vector<128x128xbf16>
    %cst_74 = arith.constant dense<0.000000e+00> : vector<2x128xf32>
    %117 = tpu.matmul %115, %116, %cst_74 {dimension_numbers = #tpu.dot_dimension_numbers<[1], [0], [0], [1], [0, 0, 1, 1], [], []>} : vector<2x128xbf16>, vector<128x128xbf16>, vector<2x128xf32> -> vector<2x128xf32>
    %118 = arith.addf %113, %117 : vector<2x128xf32>
    %c32 = arith.constant 32 : index
    %c0_75 = arith.constant 0 : index
    %119 = vector.load %arg11[%c32, %c0_75] : memref<50x128xf32, #tpu.memory_space<vmem>>, vector<2x128xf32>
    %120 = arith.truncf %119 : vector<2x128xf32> to vector<2x128xbf16>
    %c2048 = arith.constant 2048 : index
    %c0_76 = arith.constant 0 : index
    %121 = vector.load %arg4[%c2048, %c0_76] : memref<3200x128xbf16, #tpu.memory_space<vmem>>, vector<128x128xbf16>
    %cst_77 = arith.constant dense<0.000000e+00> : vector<2x128xf32>
    %122 = tpu.matmul %120, %121, %cst_77 {dimension_numbers = #tpu.dot_dimension_numbers<[1], [0], [0], [1], [0, 0, 1, 1], [], []>} : vector<2x128xbf16>, vector<128x128xbf16>, vector<2x128xf32> -> vector<2x128xf32>
    %123 = arith.addf %118, %122 : vector<2x128xf32>
    %c34 = arith.constant 34 : index
    %c0_78 = arith.constant 0 : index
    %124 = vector.load %arg11[%c34, %c0_78] : memref<50x128xf32, #tpu.memory_space<vmem>>, vector<2x128xf32>
    %125 = arith.truncf %124 : vector<2x128xf32> to vector<2x128xbf16>
    %c2176 = arith.constant 2176 : index
    %c0_79 = arith.constant 0 : index
    %126 = vector.load %arg4[%c2176, %c0_79] : memref<3200x128xbf16, #tpu.memory_space<vmem>>, vector<128x128xbf16>
    %cst_80 = arith.constant dense<0.000000e+00> : vector<2x128xf32>
    %127 = tpu.matmul %125, %126, %cst_80 {dimension_numbers = #tpu.dot_dimension_numbers<[1], [0], [0], [1], [0, 0, 1, 1], [], []>} : vector<2x128xbf16>, vector<128x128xbf16>, vector<2x128xf32> -> vector<2x128xf32>
    %128 = arith.addf %123, %127 : vector<2x128xf32>
    %c36 = arith.constant 36 : index
    %c0_81 = arith.constant 0 : index
    %129 = vector.load %arg11[%c36, %c0_81] : memref<50x128xf32, #tpu.memory_space<vmem>>, vector<2x128xf32>
    %130 = arith.truncf %129 : vector<2x128xf32> to vector<2x128xbf16>
    %c2304 = arith.constant 2304 : index
    %c0_82 = arith.constant 0 : index
    %131 = vector.load %arg4[%c2304, %c0_82] : memref<3200x128xbf16, #tpu.memory_space<vmem>>, vector<128x128xbf16>
    %cst_83 = arith.constant dense<0.000000e+00> : vector<2x128xf32>
    %132 = tpu.matmul %130, %131, %cst_83 {dimension_numbers = #tpu.dot_dimension_numbers<[1], [0], [0], [1], [0, 0, 1, 1], [], []>} : vector<2x128xbf16>, vector<128x128xbf16>, vector<2x128xf32> -> vector<2x128xf32>
    %133 = arith.addf %128, %132 : vector<2x128xf32>
    %c38 = arith.constant 38 : index
    %c0_84 = arith.constant 0 : index
    %134 = vector.load %arg11[%c38, %c0_84] : memref<50x128xf32, #tpu.memory_space<vmem>>, vector<2x128xf32>
    %135 = arith.truncf %134 : vector<2x128xf32> to vector<2x128xbf16>
    %c2432 = arith.constant 2432 : index
    %c0_85 = arith.constant 0 : index
    %136 = vector.load %arg4[%c2432, %c0_85] : memref<3200x128xbf16, #tpu.memory_space<vmem>>, vector<128x128xbf16>
    %cst_86 = arith.constant dense<0.000000e+00> : vector<2x128xf32>
    %137 = tpu.matmul %135, %136, %cst_86 {dimension_numbers = #tpu.dot_dimension_numbers<[1], [0], [0], [1], [0, 0, 1, 1], [], []>} : vector<2x128xbf16>, vector<128x128xbf16>, vector<2x128xf32> -> vector<2x128xf32>
    %138 = arith.addf %133, %137 : vector<2x128xf32>
    %c40 = arith.constant 40 : index
    %c0_87 = arith.constant 0 : index
    %139 = vector.load %arg11[%c40, %c0_87] : memref<50x128xf32, #tpu.memory_space<vmem>>, vector<2x128xf32>
    %140 = arith.truncf %139 : vector<2x128xf32> to vector<2x128xbf16>
    %c2560 = arith.constant 2560 : index
    %c0_88 = arith.constant 0 : index
    %141 = vector.load %arg4[%c2560, %c0_88] : memref<3200x128xbf16, #tpu.memory_space<vmem>>, vector<128x128xbf16>
    %cst_89 = arith.constant dense<0.000000e+00> : vector<2x128xf32>
    %142 = tpu.matmul %140, %141, %cst_89 {dimension_numbers = #tpu.dot_dimension_numbers<[1], [0], [0], [1], [0, 0, 1, 1], [], []>} : vector<2x128xbf16>, vector<128x128xbf16>, vector<2x128xf32> -> vector<2x128xf32>
    %143 = arith.addf %138, %142 : vector<2x128xf32>
    %c42 = arith.constant 42 : index
    %c0_90 = arith.constant 0 : index
    %144 = vector.load %arg11[%c42, %c0_90] : memref<50x128xf32, #tpu.memory_space<vmem>>, vector<2x128xf32>
    %145 = arith.truncf %144 : vector<2x128xf32> to vector<2x128xbf16>
    %c2688 = arith.constant 2688 : index
    %c0_91 = arith.constant 0 : index
    %146 = vector.load %arg4[%c2688, %c0_91] : memref<3200x128xbf16, #tpu.memory_space<vmem>>, vector<128x128xbf16>
    %cst_92 = arith.constant dense<0.000000e+00> : vector<2x128xf32>
    %147 = tpu.matmul %145, %146, %cst_92 {dimension_numbers = #tpu.dot_dimension_numbers<[1], [0], [0], [1], [0, 0, 1, 1], [], []>} : vector<2x128xbf16>, vector<128x128xbf16>, vector<2x128xf32> -> vector<2x128xf32>
    %148 = arith.addf %143, %147 : vector<2x128xf32>
    %c44 = arith.constant 44 : index
    %c0_93 = arith.constant 0 : index
    %149 = vector.load %arg11[%c44, %c0_93] : memref<50x128xf32, #tpu.memory_space<vmem>>, vector<2x128xf32>
    %150 = arith.truncf %149 : vector<2x128xf32> to vector<2x128xbf16>
    %c2816 = arith.constant 2816 : index
    %c0_94 = arith.constant 0 : index
    %151 = vector.load %arg4[%c2816, %c0_94] : memref<3200x128xbf16, #tpu.memory_space<vmem>>, vector<128x128xbf16>
    %cst_95 = arith.constant dense<0.000000e+00> : vector<2x128xf32>
    %152 = tpu.matmul %150, %151, %cst_95 {dimension_numbers = #tpu.dot_dimension_numbers<[1], [0], [0], [1], [0, 0, 1, 1], [], []>} : vector<2x128xbf16>, vector<128x128xbf16>, vector<2x128xf32> -> vector<2x128xf32>
    %153 = arith.addf %148, %152 : vector<2x128xf32>
    %c46 = arith.constant 46 : index
    %c0_96 = arith.constant 0 : index
    %154 = vector.load %arg11[%c46, %c0_96] : memref<50x128xf32, #tpu.memory_space<vmem>>, vector<2x128xf32>
    %155 = arith.truncf %154 : vector<2x128xf32> to vector<2x128xbf16>
    %c2944 = arith.constant 2944 : index
    %c0_97 = arith.constant 0 : index
    %156 = vector.load %arg4[%c2944, %c0_97] : memref<3200x128xbf16, #tpu.memory_space<vmem>>, vector<128x128xbf16>
    %cst_98 = arith.constant dense<0.000000e+00> : vector<2x128xf32>
    %157 = tpu.matmul %155, %156, %cst_98 {dimension_numbers = #tpu.dot_dimension_numbers<[1], [0], [0], [1], [0, 0, 1, 1], [], []>} : vector<2x128xbf16>, vector<128x128xbf16>, vector<2x128xf32> -> vector<2x128xf32>
    %158 = arith.addf %153, %157 : vector<2x128xf32>
    %c48 = arith.constant 48 : index
    %c0_99 = arith.constant 0 : index
    %159 = vector.load %arg11[%c48, %c0_99] : memref<50x128xf32, #tpu.memory_space<vmem>>, vector<2x128xf32>
    %160 = arith.truncf %159 : vector<2x128xf32> to vector<2x128xbf16>
    %c3072 = arith.constant 3072 : index
    %c0_100 = arith.constant 0 : index
    %161 = vector.load %arg4[%c3072, %c0_100] : memref<3200x128xbf16, #tpu.memory_space<vmem>>, vector<128x128xbf16>
    %cst_101 = arith.constant dense<0.000000e+00> : vector<2x128xf32>
    %162 = tpu.matmul %160, %161, %cst_101 {dimension_numbers = #tpu.dot_dimension_numbers<[1], [0], [0], [1], [0, 0, 1, 1], [], []>} : vector<2x128xbf16>, vector<128x128xbf16>, vector<2x128xf32> -> vector<2x128xf32>
    %163 = arith.addf %158, %162 : vector<2x128xf32>
    %c0_102 = arith.constant 0 : index
    %c0_103 = arith.constant 0 : index
    %164 = vector.load %arg5[%c0_102, %c0_103] : memref<1x128xf32, #tpu.memory_space<vmem>>, vector<1x128xf32>
    %165 = vector.broadcast %164 : vector<1x128xf32> to vector<2x128xf32>
    %166 = arith.addf %163, %165 : vector<2x128xf32>
    %cst_104 = arith.constant 0.000000e+00 : f32
    %167 = vector.broadcast %cst_104 : f32 to vector<2x128xf32>
    %168 = arith.maximumf %166, %167 : vector<2x128xf32>
    %169 = arith.truncf %168 : vector<2x128xf32> to vector<2x128xbf16>
    %c0_105 = arith.constant 0 : index
    %c0_106 = arith.constant 0 : index
    %170 = vector.load %arg6[%c0_105, %c0_106] : memref<128x128xbf16, #tpu.memory_space<vmem>>, vector<128x128xbf16>
    %cst_107 = arith.constant dense<0.000000e+00> : vector<2x128xf32>
    %171 = tpu.matmul %169, %170, %cst_107 {dimension_numbers = #tpu.dot_dimension_numbers<[1], [0], [0], [1], [0, 0, 1, 1], [], []>} : vector<2x128xbf16>, vector<128x128xbf16>, vector<2x128xf32> -> vector<2x128xf32>
    %c0_108 = arith.constant 0 : index
    %c0_109 = arith.constant 0 : index
    %172 = vector.load %arg7[%c0_108, %c0_109] : memref<1x128xf32, #tpu.memory_space<vmem>>, vector<1x128xf32>
    %173 = vector.broadcast %172 : vector<1x128xf32> to vector<2x128xf32>
    %174 = arith.addf %171, %173 : vector<2x128xf32>
    %cst_110 = arith.constant 0.000000e+00 : f32
    %175 = vector.broadcast %cst_110 : f32 to vector<2x128xf32>
    %176 = arith.maximumf %174, %175 : vector<2x128xf32>
    %177 = arith.truncf %176 : vector<2x128xf32> to vector<2x128xbf16>
    %c0_111 = arith.constant 0 : index
    %c0_112 = arith.constant 0 : index
    %178 = vector.load %arg8[%c0_111, %c0_112] : memref<128x128xbf16, #tpu.memory_space<vmem>>, vector<128x128xbf16>
    %cst_113 = arith.constant dense<0.000000e+00> : vector<2x128xf32>
    %179 = tpu.matmul %177, %178, %cst_113 {dimension_numbers = #tpu.dot_dimension_numbers<[1], [0], [0], [1], [0, 0, 1, 1], [], []>} : vector<2x128xbf16>, vector<128x128xbf16>, vector<2x128xf32> -> vector<2x128xf32>
    %c0_114 = arith.constant 0 : index
    %c0_115 = arith.constant 0 : index
    %180 = vector.load %arg9[%c0_114, %c0_115] : memref<1x128xf32, #tpu.memory_space<vmem>>, vector<1x128xf32>
    %181 = vector.broadcast %180 : vector<1x128xf32> to vector<2x128xf32>
    %182 = arith.addf %179, %181 : vector<2x128xf32>
    %c0_116 = arith.constant 0 : index
    %c0_117 = arith.constant 0 : index
    %183 = vector.load %arg10[%c0_116, %c0_117] : memref<2x128xf32, #tpu.memory_space<vmem>>, vector<2x128xf32>
    tpu.vector_store %arg10[%c0_116, %c0_117], %182 {strides = array<i32>} : memref<2x128xf32, #tpu.memory_space<vmem>>, vector<2x128xf32>,
    return
  }
  func.func @transform_0(%arg0: i32) -> (i32, i32, i32) {
    %c0_i32 = arith.constant 0 : i32
    %c0_i32_0 = arith.constant 0 : i32
    %c0_i32_1 = arith.constant 0 : i32
    %c0_i32_2 = arith.constant 0 : i32
    return %c0_i32, %c0_i32_0, %c0_i32_1 : i32, i32, i32
  }
  func.func @transform_1(%arg0: i32) -> (i32, i32) {
    %c0_i32 = arith.constant 0 : i32
    %c0_i32_0 = arith.constant 0 : i32
    %c0_i32_1 = arith.constant 0 : i32
    return %c0_i32, %c0_i32_0 : i32, i32
  }
  func.func @transform_2(%arg0: i32) -> (i32, i32) {
    %c0_i32 = arith.constant 0 : i32
    %c0_i32_0 = arith.constant 0 : i32
    %c0_i32_1 = arith.constant 0 : i32
    return %c0_i32, %c0_i32_0 : i32, i32
  }
  func.func @transform_3(%arg0: i32) -> (i32, i32) {
    %c0_i32 = arith.constant 0 : i32
    %c0_i32_0 = arith.constant 0 : i32
    %c0_i32_1 = arith.constant 0 : i32
    return %c0_i32, %c0_i32_0 : i32, i32
  }
  func.func @transform_4(%arg0: i32) -> (i32, i32) {
    %c0_i32 = arith.constant 0 : i32
    %c0_i32_0 = arith.constant 0 : i32
    %c0_i32_1 = arith.constant 0 : i32
    return %c0_i32, %c0_i32_0 : i32, i32
  }
  func.func @transform_5(%arg0: i32) -> (i32, i32) {
    %c0_i32 = arith.constant 0 : i32
    %c0_i32_0 = arith.constant 0 : i32
    %c0_i32_1 = arith.constant 0 : i32
    return %c0_i32, %c0_i32_0 : i32, i32
  }
  func.func @transform_6(%arg0: i32) -> (i32, i32) {
    %c0_i32 = arith.constant 0 : i32
    %c0_i32_0 = arith.constant 0 : i32
    %c0_i32_1 = arith.constant 0 : i32
    return %c0_i32, %c0_i32_0 : i32, i32
  }
  func.func @transform_7(%arg0: i32) -> (i32, i32) {
    %c0_i32 = arith.constant 0 : i32
    %c0_i32_0 = arith.constant 0 : i32
    %c0_i32_1 = arith.constant 0 : i32
    return %c0_i32, %c0_i32_0 : i32, i32
  }
  func.func @transform_8(%arg0: i32) -> (i32, i32) {
    %c0_i32 = arith.constant 0 : i32
    %c0_i32_0 = arith.constant 0 : i32
    %c0_i32_1 = arith.constant 0 : i32
    return %c0_i32, %c0_i32_0 : i32, i32
  }
  func.func @transform_9(%arg0: i32) -> (i32, i32) {
    %c0_i32 = arith.constant 0 : i32
    %c0_i32_0 = arith.constant 0 : i32
    %c0_i32_1 = arith.constant 0 : i32
    return %c0_i32, %c0_i32_0 : i32, i32
  }
}

</mosaic_0001>

<bundles_post_ra>
// kernel: lenet5_forward.2
= control target key start
LH: loop header
LB: loop body
LE: loop exit
PB: predicated region body
PF: predicated region fallthrough
CT: control target
= control target key end

     0   :  { %vm285_vm0 = vcmask 1043456   ;;  %vm286_vm1 = vcmask 1044480   ;;  %v3439_v0 = vmov 0.0   ;;  %v3440_v2 = vmov 65535   ;;  %s4581_s1 = inlined_call_operand.vmem [shape: bf16[25,128], index: 1, kind: input, shape index: {}]   ;;  %s4582_s0 = inlined_call_operand.vmem [shape: bf16[4,392,25], index: 0, kind: input, shape index: {}]   ;;  %s4583_s2 = inlined_call_operand.vmem [shape: f32[1,128], index: 2, kind: input, shape index: {}]   ;;  %s4584_s3 = inlined_call_operand.vmem [shape: f32[392,128], index: 3, kind: output, shape index: {}]  }
   0x1   :  { %2916 = vmatprep.subr.bf16.mxu0 %v3439_v0  ;;  %3020 = vmatprep.subr.bf16.mxu1 %v3439_v0  ;;  %v3335_v1 = vld [vmem:[%s4581_s1] sm:$0xff]   ;;  %v287_v3 = vsel %vm285_vm0, 4294967295, %v3440_v2  ;;  %v3336_v4 = vld [vmem:[%s4581_s1 + $0x8] sm:$0x1f]   ;;  %vm3441_vm2 = vmmov 0   ;;  %vm209_vm3 = vcmask 203776  }
   0x2   :  { %2917 = vmatpush3.bf16.msra.mxu0 %v3335_v1  ;;  %3021 = vmatpush3.bf16.msra.mxu1 %v3335_v1  ;;  %v288_v5 = vsel %vm286_vm1, %v287_v3, 0  ;;  %v3337_v7 = vld [vmem:[%s4582_s0] sm:$0xff]   ;;  %v3339_v9 = vld [vmem:[%s4582_s0 + $0x8] sm:$0xff]   ;;  %v3341_v11 = vld [vmem:[%s4582_s0 + $0x10] sm:$0xff]  }
   0x3   :  { %2918 = vmatprep.subr.bf16.mxu0 %v3439_v0  ;;  %3022 = vmatprep.subr.bf16.mxu1 %v3439_v0  ;;  %v290_v6 = vand.u32 %v3336_v4, %v288_v5  ;;  %v3338_v8 = vld [vmem:[%s4582_s0 + $0xc4] sm:$0xff]   ;;  %v3340_v10 = vld [vmem:[%s4582_s0 + $0xcc] sm:$0xff]   ;;  %v3342_v12 = vld [vmem:[%s4582_s0 + $0xd4] sm:$0xff]  }
   0x4   :  { %2920 = vmatprep.mubr.msk.bf16.mxu0 %vm3441_vm2, %v3439_v0  ;;  %3024 = vmatprep.mubr.msk.bf16.mxu1 %vm3441_vm2, %v3439_v0  ;;  %v3343_v13 = vld [vmem:[%s4582_s0 + $0x18] sm:$0xff]   ;;  %v3345_v15 = vld [vmem:[%s4582_s0 + $0x20] sm:$0xff]   ;;  %v3347_v17 = vld [vmem:[%s4582_s0 + $0x28] sm:$0xff]  }
   0x5   :  { %v3344_v14 = vld [vmem:[%s4582_s0 + $0xdc] sm:$0xff]   ;;  %v3346_v16 = vld [vmem:[%s4582_s0 + $0xe4] sm:$0xff]   ;;  %v3348_v18 = vld [vmem:[%s4582_s0 + $0xec] sm:$0xff]  }
   0x6   :  { %2919 = vmatpush3.bf16.msra.mxu0 %v290_v6  ;;  %3023 = vmatpush3.bf16.msra.mxu1 %v290_v6  ;;  %v3349_v19 = vld [vmem:[%s4582_s0 + $0x30] sm:$0xff]   ;;  %v3351_v21 = vld [vmem:[%s4582_s0 + $0x38] sm:$0xff]   ;;  %v3353_v23 = vld [vmem:[%s4582_s0 + $0x40] sm:$0xff]  }
   0x7   :  { %3124 = vmatprep.subr.bf16.mxu0 %v3439_v0  ;;  %3228 = vmatprep.subr.bf16.mxu1 %v3439_v0  ;;  %v3350_v20 = vld [vmem:[%s4582_s0 + $0xf4] sm:$0xff]   ;;  %v3352_v22 = vld [vmem:[%s4582_s0 + $0xfc] sm:$0xff]   ;;  %v3354_v24 = vld [vmem:[%s4582_s0 + $0x104] sm:$0xff]  }
   0x8   :  { %v3355_v25 = vld [vmem:[%s4582_s0 + $0x48] sm:$0xff]   ;;  %v3357_v27 = vld [vmem:[%s4582_s0 + $0x50] sm:$0xff]   ;;  %v3359_v29 = vld [vmem:[%s4582_s0 + $0x58] sm:$0xff]  }
   0x9   :  { %2921 = vmatmul.mubr.msk.bf16.vlgmr.msra.gmra.mrb[0].mxu0 %vm209_vm3, %v3337_v7  ;;  %3025 = vmatmul.mubr.msk.bf16.vlgmr.msra.gmra.mrb[0].mxu1 %vm209_vm3, %v3338_v8  ;;  %v3356_v26 = vld [vmem:[%s4582_s0 + $0x10c] sm:$0xff]   ;;  %v3358_v28 = vld [vmem:[%s4582_s0 + $0x114] sm:$0xff]   ;;  %v3360_v30 = vld [vmem:[%s4582_s0 + $0x11c] sm:$0xff]  }
   0xa   :  { %3125 = vmatpush3.bf16.msra.mxu0 %v3335_v1  ;;  %3229 = vmatpush3.bf16.msra.mxu1 %v3335_v1  ;;  %v3361_v31 = vld [vmem:[%s4582_s0 + $0x60] sm:$0xff]   ;;  %v3363_v33 = vld [vmem:[%s4582_s0 + $0x68] sm:$0xff]   ;;  %v3365_v35 = vld [vmem:[%s4582_s0 + $0x70] sm:$0xff]  }
   0xb   :  { %2924 = vmatprep.mubr.msk.bf16.mxu0 %vm3441_vm2, %v3439_v0  ;;  %3028 = vmatprep.mubr.msk.bf16.mxu1 %vm3441_vm2, %v3439_v0  ;;  %v3362_v32 = vld [vmem:[%s4582_s0 + $0x124] sm:$0xff]   ;;  %v3364_v34 = vld [vmem:[%s4582_s0 + $0x12c] sm:$0xff]   ;;  %v3366_v36 = vld [vmem:[%s4582_s0 + $0x134] sm:$0xff]  }
   0xc   :  { %3126 = vmatprep.subr.bf16.mxu0 %v3439_v0  ;;  %3230 = vmatprep.subr.bf16.mxu1 %v3439_v0  ;;  %v3367_v37 = vld [vmem:[%s4582_s0 + $0x78] sm:$0xff]   ;;  %v3369_v39 = vld [vmem:[%s4582_s0 + $0x80] sm:$0xff]   ;;  %v3371_v41 = vld [vmem:[%s4582_s0 + $0x88] sm:$0xff]  }
   0xd   :  { %v3368_v38 = vld [vmem:[%s4582_s0 + $0x13c] sm:$0xff]   ;;  %v3370_v40 = vld [vmem:[%s4582_s0 + $0x144] sm:$0xff]   ;;  %v3372_v42 = vld [vmem:[%s4582_s0 + $0x14c] sm:$0xff]  }
   0xe   :  { %3127 = vmatpush3.bf16.msra.mxu0 %v290_v6  ;;  %3231 = vmatpush3.bf16.msra.mxu1 %v290_v6  ;;  %v3373_v43 = vld [vmem:[%s4582_s0 + $0x90] sm:$0xff]   ;;  %v3375_v45 = vld [vmem:[%s4582_s0 + $0x98] sm:$0xff]   ;;  %v3377_v47 = vld [vmem:[%s4582_s0 + $0xa0] sm:$0xff]  }
   0xf   :  { %v3374_v44 = vld [vmem:[%s4582_s0 + $0x154] sm:$0xff]   ;;  %v3376_v46 = vld [vmem:[%s4582_s0 + $0x15c] sm:$0xff]   ;;  %v3378_v48 = vld [vmem:[%s4582_s0 + $0x164] sm:$0xff]  }
  0x10   :  { %v3379_v49 = vld [vmem:[%s4582_s0 + $0xa8] sm:$0xff]   ;;  %v3381_v51 = vld [vmem:[%s4582_s0 + $0xb0] sm:$0xff]   ;;  %v3383_v53 = vld [vmem:[%s4582_s0 + $0xb8] sm:$0xff]  }
  0x11   :  { %2925 = vmatmul.mubr.msk.bf16.gmra.mrb[4].mxu0 %vm209_vm3, %v3339_v9  ;;  %3029 = vmatmul.mubr.msk.bf16.gmra.mrb[4].mxu1 %vm209_vm3, %v3340_v10  ;;  %v3380_v50 = vld [vmem:[%s4582_s0 + $0x16c] sm:$0xff]   ;;  %v3382_v52 = vld [vmem:[%s4582_s0 + $0x174] sm:$0xff]   ;;  %v3384_v54 = vld [vmem:[%s4582_s0 + $0x17c] sm:$0xff]  }
  0x12   :  { %2928 = vmatprep.mubr.msk.bf16.mxu0 %vm3441_vm2, %v3439_v0  ;;  %3032 = vmatprep.mubr.msk.bf16.mxu1 %vm3441_vm2, %v3439_v0  ;;  %v3385_v55 = vld [vmem:[%s4582_s0 + $0xc0] ss:$0 sps:$4 sm:$0xff]   ;;  %v3386_v56 = vld [vmem:[%s4582_s0 + $0x184] ss:$0 sps:$4 sm:$0xff]   ;;  %v3387_v57 = vld [vmem:[%s4582_s0 + $0x188] sm:$0xff]  }
  0x13   :  { %v3388_v58 = vld [vmem:[%s4582_s0 + $0x24c] sm:$0xff]   ;;  %v3390_v60 = vld [vmem:[%s4582_s0 + $0x254] sm:$0xff]   ;;  %v3803_v61 = vld [vmem:[%s4583_s2] ss:$0 sm:$0xff] }
  0x14   :  { %v3389_v59 = vld [vmem:[%s4582_s0 + $0x190] sm:$0xff]   ;;  %v3391_v5 = vld [vmem:[%s4582_s0 + $0x198] sm:$0xff]  }
  0x15   :  { %v3392_v6 = vld [vmem:[%s4582_s0 + $0x25c] sm:$0xff]  }
  0x19   :  { %2929 = vmatmul.mubr.msk.bf16.gmra.mrb[8].mxu0 %vm209_vm3, %v3341_v11  ;;  %3033 = vmatmul.mubr.msk.bf16.gmra.mrb[8].mxu1 %vm209_vm3, %v3342_v12 }
  0x1a   :  { %2932 = vmatprep.mubr.msk.bf16.mxu0 %vm3441_vm2, %v3439_v0  ;;  %3036 = vmatprep.mubr.msk.bf16.mxu1 %vm3441_vm2, %v3439_v0 }
  0x21   :  { %2933 = vmatmul.mubr.msk.bf16.gmra.mrb[12].mxu0 %vm209_vm3, %v3343_v13  ;;  %3037 = vmatmul.mubr.msk.bf16.gmra.mrb[12].mxu1 %vm209_vm3, %v3344_v14 }
  0x22   :  { %2936 = vmatprep.mubr.msk.bf16.mxu0 %vm3441_vm2, %v3439_v0  ;;  %3040 = vmatprep.mubr.msk.bf16.mxu1 %vm3441_vm2, %v3439_v0 }
  0x29   :  { %2937 = vmatmul.mubr.msk.bf16.gmra.mrb[16].mxu0 %vm209_vm3, %v3345_v15  ;;  %3041 = vmatmul.mubr.msk.bf16.gmra.mrb[16].mxu1 %vm209_vm3, %v3346_v16 }
  0x2a   :  { %2940 = vmatprep.mubr.msk.bf16.mxu0 %vm3441_vm2, %v3439_v0  ;;  %3044 = vmatprep.mubr.msk.bf16.mxu1 %vm3441_vm2, %v3439_v0 }
  0x31   :  { %2941 = vmatmul.mubr.msk.bf16.gmra.mrb[20].mxu0 %vm209_vm3, %v3347_v17  ;;  %3045 = vmatmul.mubr.msk.bf16.gmra.mrb[20].mxu1 %vm209_vm3, %v3348_v18 }
  0x32   :  { %2944 = vmatprep.mubr.msk.bf16.mxu0 %vm3441_vm2, %v3439_v0  ;;  %3048 = vmatprep.mubr.msk.bf16.mxu1 %vm3441_vm2, %v3439_v0 }
  0x39   :  { %2945 = vmatmul.mubr.msk.bf16.gmra.mrb[24].mxu0 %vm209_vm3, %v3349_v19  ;;  %3049 = vmatmul.mubr.msk.bf16.gmra.mrb[24].mxu1 %vm209_vm3, %v3350_v20 }
  0x3a   :  { %2948 = vmatprep.mubr.msk.bf16.mxu0 %vm3441_vm2, %v3439_v0  ;;  %3052 = vmatprep.mubr.msk.bf16.mxu1 %vm3441_vm2, %v3439_v0 }
  0x41   :  { %2949 = vmatmul.mubr.msk.bf16.gmra.mrb[28].mxu0 %vm209_vm3, %v3351_v21  ;;  %3053 = vmatmul.mubr.msk.bf16.gmra.mrb[28].mxu1 %vm209_vm3, %v3352_v22 }
  0x42   :  { %2952 = vmatprep.mubr.msk.bf16.mxu0 %vm3441_vm2, %v3439_v0  ;;  %3056 = vmatprep.mubr.msk.bf16.mxu1 %vm3441_vm2, %v3439_v0 }
  0x49   :  { %2953 = vmatmul.mubr.msk.bf16.gmra.mrb[32].mxu0 %vm209_vm3, %v3353_v23  ;;  %3057 = vmatmul.mubr.msk.bf16.gmra.mrb[32].mxu1 %vm209_vm3, %v3354_v24 }
  0x4a   :  { %2956 = vmatprep.mubr.msk.bf16.mxu0 %vm3441_vm2, %v3439_v0  ;;  %3060 = vmatprep.mubr.msk.bf16.mxu1 %vm3441_vm2, %v3439_v0 }
  0x51   :  { %2957 = vmatmul.mubr.msk.bf16.gmra.mrb[36].mxu0 %vm209_vm3, %v3355_v25  ;;  %3061 = vmatmul.mubr.msk.bf16.gmra.mrb[36].mxu1 %vm209_vm3, %v3356_v26  ;;  %v3393_v25 = vld [vmem:[%s4582_s0 + $0x1a0] sm:$0xff]  }
  0x52   :  { %2960 = vmatprep.mubr.msk.bf16.mxu0 %vm3441_vm2, %v3439_v0  ;;  %3064 = vmatprep.mubr.msk.bf16.mxu1 %vm3441_vm2, %v3439_v0  ;;  %v3394_v26 = vld [vmem:[%s4582_s0 + $0x264] sm:$0xff]  }
  0x59   :  { %2961 = vmatmul.mubr.msk.bf16.gmra.mrb[40].mxu0 %vm209_vm3, %v3357_v27  ;;  %3065 = vmatmul.mubr.msk.bf16.gmra.mrb[40].mxu1 %vm209_vm3, %v3358_v28 }
  0x5a   :  { %2964 = vmatprep.mubr.msk.bf16.mxu0 %vm3441_vm2, %v3439_v0  ;;  %3068 = vmatprep.mubr.msk.bf16.mxu1 %vm3441_vm2, %v3439_v0 }
  0x61   :  { %2965 = vmatmul.mubr.msk.bf16.gmra.mrb[44].mxu0 %vm209_vm3, %v3359_v29  ;;  %3069 = vmatmul.mubr.msk.bf16.gmra.mrb[44].mxu1 %vm209_vm3, %v3360_v30 }
  0x62   :  { %2968 = vmatprep.mubr.msk.bf16.mxu0 %vm3441_vm2, %v3439_v0  ;;  %3072 = vmatprep.mubr.msk.bf16.mxu1 %vm3441_vm2, %v3439_v0 }
  0x69   :  { %2969 = vmatmul.mubr.msk.bf16.gmra.mrb[48].mxu0 %vm209_vm3, %v3361_v31  ;;  %3073 = vmatmul.mubr.msk.bf16.gmra.mrb[48].mxu1 %vm209_vm3, %v3362_v32 }
  0x6a   :  { %2972 = vmatprep.mubr.msk.bf16.mxu0 %vm3441_vm2, %v3439_v0  ;;  %3076 = vmatprep.mubr.msk.bf16.mxu1 %vm3441_vm2, %v3439_v0 }
  0x71   :  { %2973 = vmatmul.mubr.msk.bf16.gmra.mrb[52].mxu0 %vm209_vm3, %v3363_v33  ;;  %3077 = vmatmul.mubr.msk.bf16.gmra.mrb[52].mxu1 %vm209_vm3, %v3364_v34 }
  0x72   :  { %2976 = vmatprep.mubr.msk.bf16.mxu0 %vm3441_vm2, %v3439_v0  ;;  %3080 = vmatprep.mubr.msk.bf16.mxu1 %vm3441_vm2, %v3439_v0 }
  0x79   :  { %2977 = vmatmul.mubr.msk.bf16.gmra.mrb[56].mxu0 %vm209_vm3, %v3365_v35  ;;  %3081 = vmatmul.mubr.msk.bf16.gmra.mrb[56].mxu1 %vm209_vm3, %v3366_v36 }
  0x7a   :  { %2980 = vmatprep.mubr.msk.bf16.mxu0 %vm3441_vm2, %v3439_v0  ;;  %3084 = vmatprep.mubr.msk.bf16.mxu1 %vm3441_vm2, %v3439_v0 }
  0x81   :  { %2981 = vmatmul.mubr.msk.bf16.gmra.mrb[60].mxu0 %vm209_vm3, %v3367_v37  ;;  %3085 = vmatmul.mubr.msk.bf16.gmra.mrb[60].mxu1 %vm209_vm3, %v3368_v38 }
  0x82   :  { %2984 = vmatprep.mubr.msk.bf16.mxu0 %vm3441_vm2, %v3439_v0  ;;  %3088 = vmatprep.mubr.msk.bf16.mxu1 %vm3441_vm2, %v3439_v0 }
  0x89   :  { %2985 = vmatmul.mubr.msk.bf16.gmra.mrb[64].mxu0 %vm209_vm3, %v3369_v39  ;;  %3089 = vmatmul.mubr.msk.bf16.gmra.mrb[64].mxu1 %vm209_vm3, %v3370_v40 }
  0x8a   :  { %2988 = vmatprep.mubr.msk.bf16.mxu0 %vm3441_vm2, %v3439_v0  ;;  %3092 = vmatprep.mubr.msk.bf16.mxu1 %vm3441_vm2, %v3439_v0 }
  0x91   :  { %2989 = vmatmul.mubr.msk.bf16.gmra.mrb[68].mxu0 %vm209_vm3, %v3371_v41  ;;  %3093 = vmatmul.mubr.msk.bf16.gmra.mrb[68].mxu1 %vm209_vm3, %v3372_v42 }
  0x92   :  { %2992 = vmatprep.mubr.msk.bf16.mxu0 %vm3441_vm2, %v3439_v0  ;;  %3096 = vmatprep.mubr.msk.bf16.mxu1 %vm3441_vm2, %v3439_v0 }
  0x99   :  { %2993 = vmatmul.mubr.msk.bf16.gmra.mrb[72].mxu0 %vm209_vm3, %v3373_v43  ;;  %3097 = vmatmul.mubr.msk.bf16.gmra.mrb[72].mxu1 %vm209_vm3, %v3374_v44 }
  0x9a   :  { %2996 = vmatprep.mubr.msk.bf16.mxu0 %vm3441_vm2, %v3439_v0  ;;  %3100 = vmatprep.mubr.msk.bf16.mxu1 %vm3441_vm2, %v3439_v0 }
  0xa1   :  { %2997 = vmatmul.mubr.msk.bf16.gmra.mrb[76].mxu0 %vm209_vm3, %v3375_v45  ;;  %3101 = vmatmul.mubr.msk.bf16.gmra.mrb[76].mxu1 %vm209_vm3, %v3376_v46  ;;  %v3395_v45 = vld [vmem:[%s4582_s0 + $0x1a8] sm:$0xff]  }
  0xa2   :  { %3000 = vmatprep.mubr.msk.bf16.mxu0 %vm3441_vm2, %v3439_v0  ;;  %3104 = vmatprep.mubr.msk.bf16.mxu1 %vm3441_vm2, %v3439_v0  ;;  %v3396_v46 = vld [vmem:[%s4582_s0 + $0x26c] sm:$0xff]  }
  0xa9   :  { %3001 = vmatmul.mubr.msk.bf16.gmra.mrb[80].mxu0 %vm209_vm3, %v3377_v47  ;;  %3105 = vmatmul.mubr.msk.bf16.gmra.mrb[80].mxu1 %vm209_vm3, %v3378_v48 }
  0xaa   :  { %3004 = vmatprep.mubr.msk.bf16.mxu0 %vm3441_vm2, %v3439_v0  ;;  %3108 = vmatprep.mubr.msk.bf16.mxu1 %vm3441_vm2, %v3439_v0 }
  0xb1   :  { %3005 = vmatmul.mubr.msk.bf16.gmra.mrb[84].mxu0 %vm209_vm3, %v3379_v49  ;;  %3109 = vmatmul.mubr.msk.bf16.gmra.mrb[84].mxu1 %vm209_vm3, %v3380_v50 }
  0xb2   :  { %3008 = vmatprep.mubr.msk.bf16.mxu0 %vm3441_vm2, %v3439_v0  ;;  %3112 = vmatprep.mubr.msk.bf16.mxu1 %vm3441_vm2, %v3439_v0 }
  0xb9   :  { %3009 = vmatmul.mubr.msk.bf16.gmra.mrb[88].mxu0 %vm209_vm3, %v3381_v51  ;;  %3113 = vmatmul.mubr.msk.bf16.gmra.mrb[88].mxu1 %vm209_vm3, %v3382_v52 }
  0xba   :  { %3012 = vmatprep.mubr.msk.bf16.mxu0 %vm3441_vm2, %v3439_v0  ;;  %3116 = vmatprep.mubr.msk.bf16.mxu1 %vm3441_vm2, %v3439_v0 }
  0xc1   :  { %3013 = vmatmul.mubr.msk.bf16.gmra.mrb[92].mxu0 %vm209_vm3, %v3383_v53  ;;  %3117 = vmatmul.mubr.msk.bf16.gmra.mrb[92].mxu1 %vm209_vm3, %v3384_v54 }
  0xc2   :  { %3016 = vmatprep.mubr.msk.bf16.mxu0 %vm3441_vm2, %v3439_v0  ;;  %3120 = vmatprep.mubr.msk.bf16.mxu1 %vm3441_vm2, %v3439_v0 }
  0xc9   :  { %3017 = vmatmul.mubr.msk.bf16.gmra.mrb[96].mxu0 %vm209_vm3, %v3385_v55  ;;  %3121 = vmatmul.mubr.msk.bf16.gmra.mrb[96].mxu1 %vm209_vm3, %v3386_v56 }
  0xca   :  { %3128 = vmatprep.mubr.msk.bf16.mxu0 %vm3441_vm2, %v3439_v0  ;;  %3232 = vmatprep.mubr.msk.bf16.mxu1 %vm3441_vm2, %v3439_v0 }
  0xd1   :  { %3129 = vmatmul.mubr.msk.bf16.vlgmr.msra.gmra.mrb[100].mxu0 %vm209_vm3, %v3387_v57  ;;  %3233 = vmatmul.mubr.msk.bf16.vlgmr.msra.gmra.mrb[100].mxu1 %vm209_vm3, %v3388_v58 }
  0xd2   :  { %3132 = vmatprep.mubr.msk.bf16.mxu0 %vm3441_vm2, %v3439_v0  ;;  %3236 = vmatprep.mubr.msk.bf16.mxu1 %vm3441_vm2, %v3439_v0 }
  0xd9   :  { %3133 = vmatmul.mubr.msk.bf16.gmra.mrb[104].mxu0 %vm209_vm3, %v3389_v59  ;;  %3237 = vmatmul.mubr.msk.bf16.gmra.mrb[104].mxu1 %vm209_vm3, %v3390_v60 }
  0xda   :  { %3136 = vmatprep.mubr.msk.bf16.mxu0 %vm3441_vm2, %v3439_v0  ;;  %3240 = vmatprep.mubr.msk.bf16.mxu1 %vm3441_vm2, %v3439_v0 }
  0xdc   :  { %v326_v62 = vpop.f32.mrb[0].mxu0  ;;  %v904_v63 = vpop.f32.mrb[0].mxu1 }
  0xdd   :  { %v327_v1 = vadd.f32 %v3803_v61, %v326_v62  ;;  %v905_v2 = vadd.f32 %v3803_v61, %v904_v63  ;;  %v2922_v3 = vpop.f32.mrb[1].mxu0  ;;  %v3026_v4 = vpop.f32.mrb[1].mxu1 }
  0xde   :  { %v329_v7 = vpop.f32.mrb[2].mxu0  ;;  %v907_v8 = vpop.f32.mrb[2].mxu1  ;;  %v3397_v3 = vld [vmem:[%s4582_s0 + $0x1b0] sm:$0xff]  }
  0xdf   :  { %v524_v9 = vmax.f32 %v327_v1, 0.0  ;;  %v1102_v10 = vmax.f32 %v905_v2, 0.0  ;;  %v330_v11 = vadd.f32 %v3803_v61, %v329_v7  ;;  %v908_v12 = vadd.f32 %v3803_v61, %v907_v8  ;;  %v2923_v13 = vpop.f32.mrb[3].mxu0  ;;  %v3027_v14 = vpop.f32.mrb[3].mxu1  ;;  %v3398_v4 = vld [vmem:[%s4582_s0 + $0x274] sm:$0xff]  }
  0xe1   :  { %v3819_v15 = vadd.f32 %v1102_v10, %v524_v9  ;;  %v525_v16 = vmax.f32 %v330_v11, 0.0  ;;  %v1103_v17 = vmax.f32 %v908_v12, 0.0  ;;  %3137 = vmatmul.mubr.msk.bf16.gmra.mrb[108].mxu0 %vm209_vm3, %v3391_v5  ;;  %3241 = vmatmul.mubr.msk.bf16.gmra.mrb[108].mxu1 %vm209_vm3, %v3392_v6 }
  0xe2   :  { %3140 = vmatprep.mubr.msk.bf16.mxu0 %vm3441_vm2, %v3439_v0  ;;  %3244 = vmatprep.mubr.msk.bf16.mxu1 %vm3441_vm2, %v3439_v0 }
  0xe3   :  { %v3827_v18 = vadd.f32 %v1103_v17, %v525_v16 }
  0xe4   :  { %v334_v19 = vpop.f32.mrb[4].mxu0  ;;  %v912_v20 = vpop.f32.mrb[4].mxu1 }
  0xe5   :  { %v335_v21 = vadd.f32 %v3803_v61, %v334_v19  ;;  %v913_v22 = vadd.f32 %v3803_v61, %v912_v20  ;;  %v2926_v23 = vpop.f32.mrb[5].mxu0  ;;  %v3030_v24 = vpop.f32.mrb[5].mxu1 }
  0xe6   :  { %v337_v27 = vpop.f32.mrb[6].mxu0  ;;  %v915_v28 = vpop.f32.mrb[6].mxu1 }
  0xe7   :  { %v526_v29 = vmax.f32 %v335_v21, 0.0  ;;  %v1104_v30 = vmax.f32 %v913_v22, 0.0  ;;  %v338_v31 = vadd.f32 %v3803_v61, %v337_v27  ;;  %v916_v32 = vadd.f32 %v3803_v61, %v915_v28  ;;  %v2927_v33 = vpop.f32.mrb[7].mxu0  ;;  %v3031_v34 = vpop.f32.mrb[7].mxu1 }
  0xe9   :  { %v3839_v35 = vadd.f32 %v1104_v30, %v526_v29  ;;  %v527_v36 = vmax.f32 %v338_v31, 0.0  ;;  %v1105_v37 = vmax.f32 %v916_v32, 0.0  ;;  %3141 = vmatmul.mubr.msk.bf16.gmra.mrb[112].mxu0 %vm209_vm3, %v3393_v25  ;;  %3245 = vmatmul.mubr.msk.bf16.gmra.mrb[112].mxu1 %vm209_vm3, %v3394_v26  ;;  %v3399_v25 = vld [vmem:[%s4582_s0 + $0x1b8] sm:$0xff]  }
  0xea   :  { %3144 = vmatprep.mubr.msk.bf16.mxu0 %vm3441_vm2, %v3439_v0  ;;  %3248 = vmatprep.mubr.msk.bf16.mxu1 %vm3441_vm2, %v3439_v0  ;;  %v3400_v26 = vld [vmem:[%s4582_s0 + $0x27c] sm:$0xff]  }
  0xeb   :  { %v3847_v38 = vadd.f32 %v1105_v37, %v527_v36 }
  0xec   :  { %v342_v39 = vpop.f32.mrb[8].mxu0  ;;  %v920_v40 = vpop.f32.mrb[8].mxu1 }
  0xed   :  { %v343_v41 = vadd.f32 %v3803_v61, %v342_v39  ;;  %v921_v42 = vadd.f32 %v3803_v61, %v920_v40  ;;  %v2930_v43 = vpop.f32.mrb[9].mxu0  ;;  %v3034_v44 = vpop.f32.mrb[9].mxu1 }
  0xee   :  { %v345_v47 = vpop.f32.mrb[10].mxu0  ;;  %v923_v48 = vpop.f32.mrb[10].mxu1 }
  0xef   :  { %v528_v49 = vmax.f32 %v343_v41, 0.0  ;;  %v1106_v50 = vmax.f32 %v921_v42, 0.0  ;;  %v346_v51 = vadd.f32 %v3803_v61, %v345_v47  ;;  %v924_v52 = vadd.f32 %v3803_v61, %v923_v48  ;;  %v2931_v53 = vpop.f32.mrb[11].mxu0  ;;  %v3035_v54 = vpop.f32.mrb[11].mxu1  ;;  %v3401_v47 = vld [vmem:[%s4582_s0 + $0x1c0] sm:$0xff]  }
  0xf0   :  { %v3402_v48 = vld [vmem:[%s4582_s0 + $0x284] sm:$0xff]  }
  0xf1   :  { %v3859_v55 = vadd.f32 %v1106_v50, %v528_v49  ;;  %v529_v56 = vmax.f32 %v346_v51, 0.0  ;;  %v1107_v57 = vmax.f32 %v924_v52, 0.0  ;;  %3145 = vmatmul.mubr.msk.bf16.gmra.mrb[116].mxu0 %vm209_vm3, %v3395_v45  ;;  %3249 = vmatmul.mubr.msk.bf16.gmra.mrb[116].mxu1 %vm209_vm3, %v3396_v46 }
  0xf2   :  { %3148 = vmatprep.mubr.msk.bf16.mxu0 %vm3441_vm2, %v3439_v0  ;;  %3252 = vmatprep.mubr.msk.bf16.mxu1 %vm3441_vm2, %v3439_v0 }
  0xf3   :  { %v3867_v58 = vadd.f32 %v1107_v57, %v529_v56 }
  0xf4   :  { %v350_v59 = vpop.f32.mrb[12].mxu0  ;;  %v928_v60 = vpop.f32.mrb[12].mxu1 }
  0xf5   :  { %v351_v62 = vadd.f32 %v3803_v61, %v350_v59  ;;  %v929_v63 = vadd.f32 %v3803_v61, %v928_v60  ;;  %v2934_v1 = vpop.f32.mrb[13].mxu0  ;;  %v3038_v2 = vpop.f32.mrb[13].mxu1 }
  0xf6   :  { %v353_v5 = vpop.f32.mrb[14].mxu0  ;;  %v931_v6 = vpop.f32.mrb[14].mxu1 }
  0xf7   :  { %v530_v7 = vmax.f32 %v351_v62, 0.0  ;;  %v1108_v8 = vmax.f32 %v929_v63, 0.0  ;;  %v354_v9 = vadd.f32 %v3803_v61, %v353_v5  ;;  %v932_v10 = vadd.f32 %v3803_v61, %v931_v6  ;;  %v2935_v11 = vpop.f32.mrb[15].mxu0  ;;  %v3039_v12 = vpop.f32.mrb[15].mxu1 }
  0xf9   :  { %v3879_v13 = vadd.f32 %v1108_v8, %v530_v7  ;;  %v531_v14 = vmax.f32 %v354_v9, 0.0  ;;  %v1109_v16 = vmax.f32 %v932_v10, 0.0  ;;  %3149 = vmatmul.mubr.msk.bf16.gmra.mrb[120].mxu0 %vm209_vm3, %v3397_v3  ;;  %3253 = vmatmul.mubr.msk.bf16.gmra.mrb[120].mxu1 %vm209_vm3, %v3398_v4  ;;  %v3403_v7 = vld [vmem:[%s4582_s0 + $0x1c8] sm:$0xff]  }
  0xfa   :  { %3152 = vmatprep.mubr.msk.bf16.mxu0 %vm3441_vm2, %v3439_v0  ;;  %3256 = vmatprep.mubr.msk.bf16.mxu1 %vm3441_vm2, %v3439_v0  ;;  %v3404_v8 = vld [vmem:[%s4582_s0 + $0x28c] sm:$0xff]  }
  0xfb   :  { %v3887_v17 = vadd.f32 %v1109_v16, %v531_v14 }
  0xfc   :  { %v358_v19 = vpop.f32.mrb[16].mxu0  ;;  %v936_v20 = vpop.f32.mrb[16].mxu1 }
  0xfd   :  { %v359_v21 = vadd.f32 %v3803_v61, %v358_v19  ;;  %v937_v22 = vadd.f32 %v3803_v61, %v936_v20  ;;  %v2938_v23 = vpop.f32.mrb[17].mxu0  ;;  %v3042_v24 = vpop.f32.mrb[17].mxu1 }
  0xfe   :  { %v361_v27 = vpop.f32.mrb[18].mxu0  ;;  %v939_v28 = vpop.f32.mrb[18].mxu1 }
  0xff   :  { %v532_v29 = vmax.f32 %v359_v21, 0.0  ;;  %v1110_v30 = vmax.f32 %v937_v22, 0.0  ;;  %v362_v31 = vadd.f32 %v3803_v61, %v361_v27  ;;  %v940_v32 = vadd.f32 %v3803_v61, %v939_v28  ;;  %v2939_v33 = vpop.f32.mrb[19].mxu0  ;;  %v3043_v34 = vpop.f32.mrb[19].mxu1 }
 0x101   :  { %v3899_v36 = vadd.f32 %v1110_v30, %v532_v29  ;;  %v533_v37 = vmax.f32 %v362_v31, 0.0  ;;  %v1111_v39 = vmax.f32 %v940_v32, 0.0  ;;  %3153 = vmatmul.mubr.msk.bf16.gmra.mrb[124].mxu0 %vm209_vm3, %v3399_v25  ;;  %3257 = vmatmul.mubr.msk.bf16.gmra.mrb[124].mxu1 %vm209_vm3, %v3400_v26  ;;  %v3405_v31 = vld [vmem:[%s4582_s0 + $0x1d0] sm:$0xff]  }
 0x102   :  { %3156 = vmatprep.mubr.msk.bf16.mxu0 %vm3441_vm2, %v3439_v0  ;;  %3260 = vmatprep.mubr.msk.bf16.mxu1 %vm3441_vm2, %v3439_v0  ;;  %v3406_v32 = vld [vmem:[%s4582_s0 + $0x294] sm:$0xff]  }
 0x103   :  { %v3907_v40 = vadd.f32 %v1111_v39, %v533_v37 }
 0x104   :  { %v366_v41 = vpop.f32.mrb[20].mxu0  ;;  %v944_v42 = vpop.f32.mrb[20].mxu1 }
 0x105   :  { %v367_v43 = vadd.f32 %v3803_v61, %v366_v41  ;;  %v945_v44 = vadd.f32 %v3803_v61, %v944_v42  ;;  %v2942_v45 = vpop.f32.mrb[21].mxu0  ;;  %v3046_v46 = vpop.f32.mrb[21].mxu1 }
 0x106   :  { %v369_v49 = vpop.f32.mrb[22].mxu0  ;;  %v947_v50 = vpop.f32.mrb[22].mxu1 }
 0x107   :  { %v534_v51 = vmax.f32 %v367_v43, 0.0  ;;  %v1112_v52 = vmax.f32 %v945_v44, 0.0  ;;  %v370_v53 = vadd.f32 %v3803_v61, %v369_v49  ;;  %v948_v54 = vadd.f32 %v3803_v61, %v947_v50  ;;  %v2943_v56 = vpop.f32.mrb[23].mxu0  ;;  %v3047_v57 = vpop.f32.mrb[23].mxu1 }
 0x108   :  { %v3407_v56 = vld [vmem:[%s4582_s0 + $0x1d8] sm:$0xff]  }
 0x109   :  { %v3919_v59 = vadd.f32 %v1112_v52, %v534_v51  ;;  %v535_v60 = vmax.f32 %v370_v53, 0.0  ;;  %v1113_v62 = vmax.f32 %v948_v54, 0.0  ;;  %3157 = vmatmul.mubr.msk.bf16.gmra.mrb[128].mxu0 %vm209_vm3, %v3401_v47  ;;  %3261 = vmatmul.mubr.msk.bf16.gmra.mrb[128].mxu1 %vm209_vm3, %v3402_v48  ;;  %v3408_v57 = vld [vmem:[%s4582_s0 + $0x29c] sm:$0xff]  }
 0x10a   :  { %3160 = vmatprep.mubr.msk.bf16.mxu0 %vm3441_vm2, %v3439_v0  ;;  %3264 = vmatprep.mubr.msk.bf16.mxu1 %vm3441_vm2, %v3439_v0 }
 0x10b   :  { %v3927_v63 = vadd.f32 %v1113_v62, %v535_v60 }
 0x10c   :  { %v374_v1 = vpop.f32.mrb[24].mxu0  ;;  %v952_v2 = vpop.f32.mrb[24].mxu1 }
 0x10d   :  { %v375_v3 = vadd.f32 %v3803_v61, %v374_v1  ;;  %v953_v4 = vadd.f32 %v3803_v61, %v952_v2  ;;  %v2946_v5 = vpop.f32.mrb[25].mxu0  ;;  %v3050_v6 = vpop.f32.mrb[25].mxu1 }
 0x10e   :  { %v377_v9 = vpop.f32.mrb[26].mxu0  ;;  %v955_v10 = vpop.f32.mrb[26].mxu1 }
 0x10f   :  { %v536_v11 = vmax.f32 %v375_v3, 0.0  ;;  %v1114_v12 = vmax.f32 %v953_v4, 0.0  ;;  %v378_v14 = vadd.f32 %v3803_v61, %v377_v9  ;;  %v956_v16 = vadd.f32 %v3803_v61, %v955_v10  ;;  %v2947_v19 = vpop.f32.mrb[27].mxu0  ;;  %v3051_v20 = vpop.f32.mrb[27].mxu1 }
 0x111   :  { %v3939_v21 = vadd.f32 %v1114_v12, %v536_v11  ;;  %v537_v22 = vmax.f32 %v378_v14, 0.0  ;;  %v1115_v23 = vmax.f32 %v956_v16, 0.0  ;;  %3161 = vmatmul.mubr.msk.bf16.gmra.mrb[132].mxu0 %vm209_vm3, %v3403_v7  ;;  %3265 = vmatmul.mubr.msk.bf16.gmra.mrb[132].mxu1 %vm209_vm3, %v3404_v8 }
 0x112   :  { %3164 = vmatprep.mubr.msk.bf16.mxu0 %vm3441_vm2, %v3439_v0  ;;  %3268 = vmatprep.mubr.msk.bf16.mxu1 %vm3441_vm2, %v3439_v0 }
 0x113   :  { %v3947_v24 = vadd.f32 %v1115_v23, %v537_v22  ;;  %v3409_v22 = vld [vmem:[%s4582_s0 + $0x1e0] sm:$0xff]  }
 0x114   :  { %v382_v25 = vpop.f32.mrb[28].mxu0  ;;  %v960_v26 = vpop.f32.mrb[28].mxu1  ;;  %v3410_v23 = vld [vmem:[%s4582_s0 + $0x2a4] sm:$0xff]  }
 0x115   :  { %v383_v27 = vadd.f32 %v3803_v61, %v382_v25  ;;  %v961_v28 = vadd.f32 %v3803_v61, %v960_v26  ;;  %v2950_v29 = vpop.f32.mrb[29].mxu0  ;;  %v3054_v30 = vpop.f32.mrb[29].mxu1 }
 0x116   :  { %v385_v33 = vpop.f32.mrb[30].mxu0  ;;  %v963_v34 = vpop.f32.mrb[30].mxu1 }
 0x117   :  { %v538_v37 = vmax.f32 %v383_v27, 0.0  ;;  %v1116_v39 = vmax.f32 %v961_v28, 0.0  ;;  %v386_v41 = vadd.f32 %v3803_v61, %v385_v33  ;;  %v964_v42 = vadd.f32 %v3803_v61, %v963_v34  ;;  %v2951_v43 = vpop.f32.mrb[31].mxu0  ;;  %v3055_v44 = vpop.f32.mrb[31].mxu1 }
 0x119   :  { %v3959_v45 = vadd.f32 %v1116_v39, %v538_v37  ;;  %v539_v46 = vmax.f32 %v386_v41, 0.0  ;;  %v1117_v47 = vmax.f32 %v964_v42, 0.0  ;;  %3165 = vmatmul.mubr.msk.bf16.gmra.mrb[136].mxu0 %vm209_vm3, %v3405_v31  ;;  %3269 = vmatmul.mubr.msk.bf16.gmra.mrb[136].mxu1 %vm209_vm3, %v3406_v32 }
 0x11a   :  { %3168 = vmatprep.mubr.msk.bf16.mxu0 %vm3441_vm2, %v3439_v0  ;;  %3272 = vmatprep.mubr.msk.bf16.mxu1 %vm3441_vm2, %v3439_v0 }
 0x11b   :  { %v3967_v48 = vadd.f32 %v1117_v47, %v539_v46 }
 0x11c   :  { %v390_v49 = vpop.f32.mrb[32].mxu0  ;;  %v968_v50 = vpop.f32.mrb[32].mxu1 }
 0x11d   :  { %v391_v51 = vadd.f32 %v3803_v61, %v390_v49  ;;  %v969_v52 = vadd.f32 %v3803_v61, %v968_v50  ;;  %v2954_v53 = vpop.f32.mrb[33].mxu0  ;;  %v3058_v54 = vpop.f32.mrb[33].mxu1  ;;  %v3411_v49 = vld [vmem:[%s4582_s0 + $0x1e8] sm:$0xff]  }
 0x11e   :  { %v393_v60 = vpop.f32.mrb[34].mxu0  ;;  %v971_v62 = vpop.f32.mrb[34].mxu1  ;;  %v3412_v50 = vld [vmem:[%s4582_s0 + $0x2ac] sm:$0xff]  }
 0x11f   :  { %v540_v1 = vmax.f32 %v391_v51, 0.0  ;;  %v1118_v2 = vmax.f32 %v969_v52, 0.0  ;;  %v394_v3 = vadd.f32 %v3803_v61, %v393_v60  ;;  %v972_v4 = vadd.f32 %v3803_v61, %v971_v62  ;;  %v2955_v5 = vpop.f32.mrb[35].mxu0  ;;  %v3059_v6 = vpop.f32.mrb[35].mxu1 }
 0x121   :  { %v3979_v7 = vadd.f32 %v1118_v2, %v540_v1  ;;  %v541_v8 = vmax.f32 %v394_v3, 0.0  ;;  %v1119_v9 = vmax.f32 %v972_v4, 0.0  ;;  %3169 = vmatmul.mubr.msk.bf16.gmra.mrb[140].mxu0 %vm209_vm3, %v3407_v56  ;;  %3273 = vmatmul.mubr.msk.bf16.gmra.mrb[140].mxu1 %vm209_vm3, %v3408_v57 }
 0x122   :  { %3172 = vmatprep.mubr.msk.bf16.mxu0 %vm3441_vm2, %v3439_v0  ;;  %3276 = vmatprep.mubr.msk.bf16.mxu1 %vm3441_vm2, %v3439_v0 }
 0x123   :  { %v3987_v10 = vadd.f32 %v1119_v9, %v541_v8 }
 0x124   :  { %v398_v11 = vpop.f32.mrb[36].mxu0  ;;  %v976_v12 = vpop.f32.mrb[36].mxu1 }
 0x125   :  { %v399_v14 = vadd.f32 %v3803_v61, %v398_v11  ;;  %v977_v16 = vadd.f32 %v3803_v61, %v976_v12  ;;  %v2958_v19 = vpop.f32.mrb[37].mxu0  ;;  %v3062_v20 = vpop.f32.mrb[37].mxu1 }
 0x126   :  { %v401_v25 = vpop.f32.mrb[38].mxu0  ;;  %v979_v26 = vpop.f32.mrb[38].mxu1 }
 0x127   :  { %v542_v27 = vmax.f32 %v399_v14, 0.0  ;;  %v1120_v28 = vmax.f32 %v977_v16, 0.0  ;;  %v402_v29 = vadd.f32 %v3803_v61, %v401_v25  ;;  %v980_v30 = vadd.f32 %v3803_v61, %v979_v26  ;;  %v2959_v31 = vpop.f32.mrb[39].mxu0  ;;  %v3063_v32 = vpop.f32.mrb[39].mxu1  ;;  %v3413_v14 = vld [vmem:[%s4582_s0 + $0x1f0] sm:$0xff]  }
 0x128   :  { %v3414_v16 = vld [vmem:[%s4582_s0 + $0x2b4] sm:$0xff]  }
 0x129   :  { %v3999_v33 = vadd.f32 %v1120_v28, %v542_v27  ;;  %v543_v34 = vmax.f32 %v402_v29, 0.0  ;;  %v1121_v37 = vmax.f32 %v980_v30, 0.0  ;;  %3173 = vmatmul.mubr.msk.bf16.gmra.mrb[144].mxu0 %vm209_vm3, %v3409_v22  ;;  %3277 = vmatmul.mubr.msk.bf16.gmra.mrb[144].mxu1 %vm209_vm3, %v3410_v23 }
 0x12a   :  { %3176 = vmatprep.mubr.msk.bf16.mxu0 %vm3441_vm2, %v3439_v0  ;;  %3280 = vmatprep.mubr.msk.bf16.mxu1 %vm3441_vm2, %v3439_v0 }
 0x12b   :  { %v4007_v39 = vadd.f32 %v1121_v37, %v543_v34 }
 0x12c   :  { %v406_v41 = vpop.f32.mrb[40].mxu0  ;;  %v984_v42 = vpop.f32.mrb[40].mxu1 }
 0x12d   :  { %v407_v43 = vadd.f32 %v3803_v61, %v406_v41  ;;  %v985_v44 = vadd.f32 %v3803_v61, %v984_v42  ;;  %v2962_v46 = vpop.f32.mrb[41].mxu0  ;;  %v3066_v47 = vpop.f32.mrb[41].mxu1 }
 0x12e   :  { %v409_v51 = vpop.f32.mrb[42].mxu0  ;;  %v987_v52 = vpop.f32.mrb[42].mxu1  ;;  %v3415_v46 = vld [vmem:[%s4582_s0 + $0x1f8] sm:$0xff]  }
 0x12f   :  { %v544_v53 = vmax.f32 %v407_v43, 0.0  ;;  %v1122_v54 = vmax.f32 %v985_v44, 0.0  ;;  %v410_v56 = vadd.f32 %v3803_v61, %v409_v51  ;;  %v988_v57 = vadd.f32 %v3803_v61, %v987_v52  ;;  %v2963_v60 = vpop.f32.mrb[43].mxu0  ;;  %v3067_v62 = vpop.f32.mrb[43].mxu1  ;;  %v3416_v47 = vld [vmem:[%s4582_s0 + $0x2bc] sm:$0xff]  }
 0x131   :  { %v4019_v1 = vadd.f32 %v1122_v54, %v544_v53  ;;  %v545_v2 = vmax.f32 %v410_v56, 0.0  ;;  %v1123_v3 = vmax.f32 %v988_v57, 0.0  ;;  %3177 = vmatmul.mubr.msk.bf16.gmra.mrb[148].mxu0 %vm209_vm3, %v3411_v49  ;;  %3281 = vmatmul.mubr.msk.bf16.gmra.mrb[148].mxu1 %vm209_vm3, %v3412_v50 }
 0x132   :  { %3180 = vmatprep.mubr.msk.bf16.mxu0 %vm3441_vm2, %v3439_v0  ;;  %3284 = vmatprep.mubr.msk.bf16.mxu1 %vm3441_vm2, %v3439_v0 }
 0x133   :  { %v4027_v4 = vadd.f32 %v1123_v3, %v545_v2 }
 0x134   :  { %v414_v5 = vpop.f32.mrb[44].mxu0  ;;  %v992_v6 = vpop.f32.mrb[44].mxu1 }
 0x135   :  { %v415_v8 = vadd.f32 %v3803_v61, %v414_v5  ;;  %v993_v9 = vadd.f32 %v3803_v61, %v992_v6  ;;  %v2966_v11 = vpop.f32.mrb[45].mxu0  ;;  %v3070_v12 = vpop.f32.mrb[45].mxu1 }
 0x136   :  { %v417_v19 = vpop.f32.mrb[46].mxu0  ;;  %v995_v20 = vpop.f32.mrb[46].mxu1 }
 0x137   :  { %v546_v22 = vmax.f32 %v415_v8, 0.0  ;;  %v1124_v23 = vmax.f32 %v993_v9, 0.0  ;;  %v418_v25 = vadd.f32 %v3803_v61, %v417_v19  ;;  %v996_v26 = vadd.f32 %v3803_v61, %v995_v20  ;;  %v2967_v27 = vpop.f32.mrb[47].mxu0  ;;  %v3071_v28 = vpop.f32.mrb[47].mxu1 }
 0x139   :  { %v4039_v29 = vadd.f32 %v1124_v23, %v546_v22  ;;  %v547_v30 = vmax.f32 %v418_v25, 0.0  ;;  %v1125_v31 = vmax.f32 %v996_v26, 0.0  ;;  %3181 = vmatmul.mubr.msk.bf16.gmra.mrb[152].mxu0 %vm209_vm3, %v3413_v14  ;;  %3285 = vmatmul.mubr.msk.bf16.gmra.mrb[152].mxu1 %vm209_vm3, %v3414_v16  ;;  %v3417_v14 = vld [vmem:[%s4582_s0 + $0x200] sm:$0xff]  }
 0x13a   :  { %3184 = vmatprep.mubr.msk.bf16.mxu0 %vm3441_vm2, %v3439_v0  ;;  %3288 = vmatprep.mubr.msk.bf16.mxu1 %vm3441_vm2, %v3439_v0  ;;  %v3418_v16 = vld [vmem:[%s4582_s0 + $0x2c4] sm:$0xff]  }
 0x13b   :  { %v4047_v32 = vadd.f32 %v1125_v31, %v547_v30 }
 0x13c   :  { %v422_v34 = vpop.f32.mrb[48].mxu0  ;;  %v1000_v37 = vpop.f32.mrb[48].mxu1 }
 0x13d   :  { %v423_v41 = vadd.f32 %v3803_v61, %v422_v34  ;;  %v1001_v42 = vadd.f32 %v3803_v61, %v1000_v37  ;;  %v2970_v43 = vpop.f32.mrb[49].mxu0  ;;  %v3074_v44 = vpop.f32.mrb[49].mxu1 }
 0x13e   :  { %v425_v49 = vpop.f32.mrb[50].mxu0  ;;  %v1003_v50 = vpop.f32.mrb[50].mxu1 }
 0x13f   :  { %v548_v51 = vmax.f32 %v423_v41, 0.0  ;;  %v1126_v52 = vmax.f32 %v1001_v42, 0.0  ;;  %v426_v53 = vadd.f32 %v3803_v61, %v425_v49  ;;  %v1004_v54 = vadd.f32 %v3803_v61, %v1003_v50  ;;  %v2971_v56 = vpop.f32.mrb[51].mxu0  ;;  %v3075_v57 = vpop.f32.mrb[51].mxu1  ;;  %v3419_v49 = vld [vmem:[%s4582_s0 + $0x208] sm:$0xff]  }
 0x140   :  { %v3420_v50 = vld [vmem:[%s4582_s0 + $0x2cc] sm:$0xff]  }
 0x141   :  { %v4059_v60 = vadd.f32 %v1126_v52, %v548_v51  ;;  %v549_v62 = vmax.f32 %v426_v53, 0.0  ;;  %v1127_v2 = vmax.f32 %v1004_v54, 0.0  ;;  %3185 = vmatmul.mubr.msk.bf16.gmra.mrb[156].mxu0 %vm209_vm3, %v3415_v46  ;;  %3289 = vmatmul.mubr.msk.bf16.gmra.mrb[156].mxu1 %vm209_vm3, %v3416_v47 }
 0x142   :  { %3188 = vmatprep.mubr.msk.bf16.mxu0 %vm3441_vm2, %v3439_v0  ;;  %3292 = vmatprep.mubr.msk.bf16.mxu1 %vm3441_vm2, %v3439_v0 }
 0x143   :  { %v4067_v3 = vadd.f32 %v1127_v2, %v549_v62 }
 0x144   :  { %v430_v5 = vpop.f32.mrb[52].mxu0  ;;  %v1008_v6 = vpop.f32.mrb[52].mxu1 }
 0x145   :  { %v431_v8 = vadd.f32 %v3803_v61, %v430_v5  ;;  %v1009_v9 = vadd.f32 %v3803_v61, %v1008_v6  ;;  %v2974_v11 = vpop.f32.mrb[53].mxu0  ;;  %v3078_v12 = vpop.f32.mrb[53].mxu1 }
 0x146   :  { %v433_v19 = vpop.f32.mrb[54].mxu0  ;;  %v1011_v20 = vpop.f32.mrb[54].mxu1 }
 0x147   :  { %v550_v22 = vmax.f32 %v431_v8, 0.0  ;;  %v1128_v23 = vmax.f32 %v1009_v9, 0.0  ;;  %v434_v25 = vadd.f32 %v3803_v61, %v433_v19  ;;  %v1012_v26 = vadd.f32 %v3803_v61, %v1011_v20  ;;  %v2975_v27 = vpop.f32.mrb[55].mxu0  ;;  %v3079_v28 = vpop.f32.mrb[55].mxu1 }
 0x149   :  { %v4079_v30 = vadd.f32 %v1128_v23, %v550_v22  ;;  %v551_v31 = vmax.f32 %v434_v25, 0.0  ;;  %v1129_v34 = vmax.f32 %v1012_v26, 0.0  ;;  %3189 = vmatmul.mubr.msk.bf16.gmra.mrb[160].mxu0 %vm209_vm3, %v3417_v14  ;;  %3293 = vmatmul.mubr.msk.bf16.gmra.mrb[160].mxu1 %vm209_vm3, %v3418_v16  ;;  %v3421_v22 = vld [vmem:[%s4582_s0 + $0x210] sm:$0xff]  }
 0x14a   :  { %3192 = vmatprep.mubr.msk.bf16.mxu0 %vm3441_vm2, %v3439_v0  ;;  %3296 = vmatprep.mubr.msk.bf16.mxu1 %vm3441_vm2, %v3439_v0  ;;  %v3422_v23 = vld [vmem:[%s4582_s0 + $0x2d4] sm:$0xff]  }
 0x14b   :  { %v4087_v37 = vadd.f32 %v1129_v34, %v551_v31 }
 0x14c   :  { %v438_v41 = vpop.f32.mrb[56].mxu0  ;;  %v1016_v42 = vpop.f32.mrb[56].mxu1 }
 0x14d   :  { %v439_v43 = vadd.f32 %v3803_v61, %v438_v41  ;;  %v1017_v44 = vadd.f32 %v3803_v61, %v1016_v42  ;;  %v2978_v46 = vpop.f32.mrb[57].mxu0  ;;  %v3082_v47 = vpop.f32.mrb[57].mxu1 }
 0x14e   :  { %v441_v51 = vpop.f32.mrb[58].mxu0  ;;  %v1019_v52 = vpop.f32.mrb[58].mxu1 }
 0x14f   :  { %v552_v53 = vmax.f32 %v439_v43, 0.0  ;;  %v1130_v54 = vmax.f32 %v1017_v44, 0.0  ;;  %v442_v56 = vadd.f32 %v3803_v61, %v441_v51  ;;  %v1020_v57 = vadd.f32 %v3803_v61, %v1019_v52  ;;  %v2979_v62 = vpop.f32.mrb[59].mxu0  ;;  %v3083_v2 = vpop.f32.mrb[59].mxu1 }
 0x151   :  { %v4099_v5 = vadd.f32 %v1130_v54, %v552_v53  ;;  %v553_v6 = vmax.f32 %v442_v56, 0.0  ;;  %v1131_v8 = vmax.f32 %v1020_v57, 0.0  ;;  %3193 = vmatmul.mubr.msk.bf16.gmra.mrb[164].mxu0 %vm209_vm3, %v3419_v49  ;;  %3297 = vmatmul.mubr.msk.bf16.gmra.mrb[164].mxu1 %vm209_vm3, %v3420_v50  ;;  %v3423_v56 = vld [vmem:[%s4582_s0 + $0x218] sm:$0xff]  }
 0x152   :  { %3196 = vmatprep.mubr.msk.bf16.mxu0 %vm3441_vm2, %v3439_v0  ;;  %3300 = vmatprep.mubr.msk.bf16.mxu1 %vm3441_vm2, %v3439_v0  ;;  %v3424_v57 = vld [vmem:[%s4582_s0 + $0x2dc] sm:$0xff]  }
 0x153   :  { %v4107_v9 = vadd.f32 %v1131_v8, %v553_v6 }
 0x154   :  { %v446_v11 = vpop.f32.mrb[60].mxu0  ;;  %v1024_v12 = vpop.f32.mrb[60].mxu1 }
 0x155   :  { %v447_v14 = vadd.f32 %v3803_v61, %v446_v11  ;;  %v1025_v16 = vadd.f32 %v3803_v61, %v1024_v12  ;;  %v2982_v19 = vpop.f32.mrb[61].mxu0  ;;  %v3086_v20 = vpop.f32.mrb[61].mxu1 }
 0x156   :  { %v449_v25 = vpop.f32.mrb[62].mxu0  ;;  %v1027_v26 = vpop.f32.mrb[62].mxu1 }
 0x157   :  { %v554_v27 = vmax.f32 %v447_v14, 0.0  ;;  %v1132_v28 = vmax.f32 %v1025_v16, 0.0  ;;  %v450_v31 = vadd.f32 %v3803_v61, %v449_v25  ;;  %v1028_v34 = vadd.f32 %v3803_v61, %v1027_v26  ;;  %v2983_v41 = vpop.f32.mrb[63].mxu0  ;;  %v3087_v42 = vpop.f32.mrb[63].mxu1 }
 0x158   :  { %v3425_v41 = vld [vmem:[%s4582_s0 + $0x220] sm:$0xff]  }
 0x159   :  { %v4119_v43 = vadd.f32 %v1132_v28, %v554_v27  ;;  %v555_v44 = vmax.f32 %v450_v31, 0.0  ;;  %v1133_v46 = vmax.f32 %v1028_v34, 0.0  ;;  %3197 = vmatmul.mubr.msk.bf16.gmra.mrb[168].mxu0 %vm209_vm3, %v3421_v22  ;;  %3301 = vmatmul.mubr.msk.bf16.gmra.mrb[168].mxu1 %vm209_vm3, %v3422_v23  ;;  %v3426_v42 = vld [vmem:[%s4582_s0 + $0x2e4] sm:$0xff]  }
 0x15a   :  { %3200 = vmatprep.mubr.msk.bf16.mxu0 %vm3441_vm2, %v3439_v0  ;;  %3304 = vmatprep.mubr.msk.bf16.mxu1 %vm3441_vm2, %v3439_v0 }
 0x15b   :  { %v4127_v47 = vadd.f32 %v1133_v46, %v555_v44 }
 0x15c   :  { %v454_v49 = vpop.f32.mrb[64].mxu0  ;;  %v1032_v50 = vpop.f32.mrb[64].mxu1 }
 0x15d   :  { %v455_v51 = vadd.f32 %v3803_v61, %v454_v49  ;;  %v1033_v52 = vadd.f32 %v3803_v61, %v1032_v50  ;;  %v2986_v53 = vpop.f32.mrb[65].mxu0  ;;  %v3090_v54 = vpop.f32.mrb[65].mxu1 }
 0x15e   :  { %v457_v62 = vpop.f32.mrb[66].mxu0  ;;  %v1035_v2 = vpop.f32.mrb[66].mxu1 }
 0x15f   :  { %v556_v6 = vmax.f32 %v455_v51, 0.0  ;;  %v1134_v8 = vmax.f32 %v1033_v52, 0.0  ;;  %v458_v11 = vadd.f32 %v3803_v61, %v457_v62  ;;  %v1036_v12 = vadd.f32 %v3803_v61, %v1035_v2  ;;  %v2987_v14 = vpop.f32.mrb[67].mxu0  ;;  %v3091_v16 = vpop.f32.mrb[67].mxu1 }
 0x161   :  { %v4139_v19 = vadd.f32 %v1134_v8, %v556_v6  ;;  %v557_v20 = vmax.f32 %v458_v11, 0.0  ;;  %v1135_v22 = vmax.f32 %v1036_v12, 0.0  ;;  %3201 = vmatmul.mubr.msk.bf16.gmra.mrb[172].mxu0 %vm209_vm3, %v3423_v56  ;;  %3305 = vmatmul.mubr.msk.bf16.gmra.mrb[172].mxu1 %vm209_vm3, %v3424_v57 }
 0x162   :  { %3204 = vmatprep.mubr.msk.bf16.mxu0 %vm3441_vm2, %v3439_v0  ;;  %3308 = vmatprep.mubr.msk.bf16.mxu1 %vm3441_vm2, %v3439_v0 }
 0x163   :  { %v4147_v23 = vadd.f32 %v1135_v22, %v557_v20  ;;  %v3427_v20 = vld [vmem:[%s4582_s0 + $0x228] sm:$0xff]  }
 0x164   :  { %v462_v25 = vpop.f32.mrb[68].mxu0  ;;  %v1040_v26 = vpop.f32.mrb[68].mxu1  ;;  %v3428_v22 = vld [vmem:[%s4582_s0 + $0x2ec] sm:$0xff]  }
 0x165   :  { %v463_v27 = vadd.f32 %v3803_v61, %v462_v25  ;;  %v1041_v28 = vadd.f32 %v3803_v61, %v1040_v26  ;;  %v2990_v31 = vpop.f32.mrb[69].mxu0  ;;  %v3094_v34 = vpop.f32.mrb[69].mxu1 }
 0x166   :  { %v465_v44 = vpop.f32.mrb[70].mxu0  ;;  %v1043_v46 = vpop.f32.mrb[70].mxu1 }
 0x167   :  { %v558_v49 = vmax.f32 %v463_v27, 0.0  ;;  %v1136_v50 = vmax.f32 %v1041_v28, 0.0  ;;  %v466_v51 = vadd.f32 %v3803_v61, %v465_v44  ;;  %v1044_v52 = vadd.f32 %v3803_v61, %v1043_v46  ;;  %v2991_v53 = vpop.f32.mrb[71].mxu0  ;;  %v3095_v54 = vpop.f32.mrb[71].mxu1 }
 0x169   :  { %v4159_v56 = vadd.f32 %v1136_v50, %v558_v49  ;;  %v559_v57 = vmax.f32 %v466_v51, 0.0  ;;  %v1137_v62 = vmax.f32 %v1044_v52, 0.0  ;;  %3205 = vmatmul.mubr.msk.bf16.gmra.mrb[176].mxu0 %vm209_vm3, %v3425_v41  ;;  %3309 = vmatmul.mubr.msk.bf16.gmra.mrb[176].mxu1 %vm209_vm3, %v3426_v42 }
 0x16a   :  { %3208 = vmatprep.mubr.msk.bf16.mxu0 %vm3441_vm2, %v3439_v0  ;;  %3312 = vmatprep.mubr.msk.bf16.mxu1 %vm3441_vm2, %v3439_v0 }
 0x16b   :  { %v4167_v2 = vadd.f32 %v1137_v62, %v559_v57 }
 0x16c   :  { %v470_v6 = vpop.f32.mrb[72].mxu0  ;;  %v1048_v8 = vpop.f32.mrb[72].mxu1 }
 0x16d   :  { %v471_v11 = vadd.f32 %v3803_v61, %v470_v6  ;;  %v1049_v12 = vadd.f32 %v3803_v61, %v1048_v8  ;;  %v2994_v14 = vpop.f32.mrb[73].mxu0  ;;  %v3098_v16 = vpop.f32.mrb[73].mxu1  ;;  %v3429_v6 = vld [vmem:[%s4582_s0 + $0x230] sm:$0xff]  }
 0x16e   :  { %v473_v25 = vpop.f32.mrb[74].mxu0  ;;  %v1051_v26 = vpop.f32.mrb[74].mxu1  ;;  %v3430_v8 = vld [vmem:[%s4582_s0 + $0x2f4] sm:$0xff]  }
 0x16f   :  { %v560_v27 = vmax.f32 %v471_v11, 0.0  ;;  %v1138_v28 = vmax.f32 %v1049_v12, 0.0  ;;  %v474_v31 = vadd.f32 %v3803_v61, %v473_v25  ;;  %v1052_v34 = vadd.f32 %v3803_v61, %v1051_v26  ;;  %v2995_v41 = vpop.f32.mrb[75].mxu0  ;;  %v3099_v42 = vpop.f32.mrb[75].mxu1 }
 0x171   :  { %v4179_v44 = vadd.f32 %v1138_v28, %v560_v27  ;;  %v561_v46 = vmax.f32 %v474_v31, 0.0  ;;  %v1139_v49 = vmax.f32 %v1052_v34, 0.0  ;;  %3209 = vmatmul.mubr.msk.bf16.gmra.mrb[180].mxu0 %vm209_vm3, %v3427_v20  ;;  %3313 = vmatmul.mubr.msk.bf16.gmra.mrb[180].mxu1 %vm209_vm3, %v3428_v22 }
 0x172   :  { %3212 = vmatprep.mubr.msk.bf16.mxu0 %vm3441_vm2, %v3439_v0  ;;  %3316 = vmatprep.mubr.msk.bf16.mxu1 %vm3441_vm2, %v3439_v0 }
 0x173   :  { %v4187_v50 = vadd.f32 %v1139_v49, %v561_v46 }
 0x174   :  { %v478_v51 = vpop.f32.mrb[76].mxu0  ;;  %v1056_v52 = vpop.f32.mrb[76].mxu1 }
 0x175   :  { %v479_v53 = vadd.f32 %v3803_v61, %v478_v51  ;;  %v1057_v54 = vadd.f32 %v3803_v61, %v1056_v52  ;;  %v2998_v57 = vpop.f32.mrb[77].mxu0  ;;  %v3102_v62 = vpop.f32.mrb[77].mxu1 }
 0x176   :  { %v481_v11 = vpop.f32.mrb[78].mxu0  ;;  %v1059_v12 = vpop.f32.mrb[78].mxu1 }
 0x177   :  { %v562_v14 = vmax.f32 %v479_v53, 0.0  ;;  %v1140_v16 = vmax.f32 %v1057_v54, 0.0  ;;  %v482_v20 = vadd.f32 %v3803_v61, %v481_v11  ;;  %v1060_v22 = vadd.f32 %v3803_v61, %v1059_v12  ;;  %v2999_v25 = vpop.f32.mrb[79].mxu0  ;;  %v3103_v26 = vpop.f32.mrb[79].mxu1  ;;  %v3431_v53 = vld [vmem:[%s4582_s0 + $0x238] sm:$0xff]  }
 0x178   :  { %v3432_v54 = vld [vmem:[%s4582_s0 + $0x2fc] sm:$0xff]  }
 0x179   :  { %v4199_v27 = vadd.f32 %v1140_v16, %v562_v14  ;;  %v563_v28 = vmax.f32 %v482_v20, 0.0  ;;  %v1141_v31 = vmax.f32 %v1060_v22, 0.0  ;;  %3213 = vmatmul.mubr.msk.bf16.gmra.mrb[184].mxu0 %vm209_vm3, %v3429_v6  ;;  %3317 = vmatmul.mubr.msk.bf16.gmra.mrb[184].mxu1 %vm209_vm3, %v3430_v8 }
 0x17a   :  { %3216 = vmatprep.mubr.msk.bf16.mxu0 %vm3441_vm2, %v3439_v0  ;;  %3320 = vmatprep.mubr.msk.bf16.mxu1 %vm3441_vm2, %v3439_v0 }
 0x17b   :  { %v4207_v34 = vadd.f32 %v1141_v31, %v563_v28 }
 0x17c   :  { %v486_v41 = vpop.f32.mrb[80].mxu0  ;;  %v1064_v42 = vpop.f32.mrb[80].mxu1 }
 0x17d   :  { %v487_v46 = vadd.f32 %v3803_v61, %v486_v41  ;;  %v1065_v49 = vadd.f32 %v3803_v61, %v1064_v42  ;;  %v3002_v51 = vpop.f32.mrb[81].mxu0  ;;  %v3106_v52 = vpop.f32.mrb[81].mxu1 }
 0x17e   :  { %v489_v57 = vpop.f32.mrb[82].mxu0  ;;  %v1067_v62 = vpop.f32.mrb[82].mxu1  ;;  %v3433_v51 = vld [vmem:[%s4582_s0 + $0x240] sm:$0xff]  }
 0x17f   :  { %v564_v6 = vmax.f32 %v487_v46, 0.0  ;;  %v1142_v8 = vmax.f32 %v1065_v49, 0.0  ;;  %v490_v11 = vadd.f32 %v3803_v61, %v489_v57  ;;  %v1068_v12 = vadd.f32 %v3803_v61, %v1067_v62  ;;  %v3003_v14 = vpop.f32.mrb[83].mxu0  ;;  %v3107_v16 = vpop.f32.mrb[83].mxu1  ;;  %v3434_v52 = vld [vmem:[%s4582_s0 + $0x304] sm:$0xff]  }
 0x181   :  { %v4219_v20 = vadd.f32 %v1142_v8, %v564_v6  ;;  %v565_v22 = vmax.f32 %v490_v11, 0.0  ;;  %v1143_v25 = vmax.f32 %v1068_v12, 0.0  ;;  %3217 = vmatmul.mubr.msk.bf16.gmra.mrb[188].mxu0 %vm209_vm3, %v3431_v53  ;;  %3321 = vmatmul.mubr.msk.bf16.gmra.mrb[188].mxu1 %vm209_vm3, %v3432_v54  ;;  %v4240_v6 = vld [vmem:[%s4583_s2] ss:$0 sm:$0xff] }
 0x182   :  { %3220 = vmatprep.mubr.msk.bf16.mxu0 %vm3441_vm2, %v3439_v0  ;;  %3324 = vmatprep.mubr.msk.bf16.mxu1 %vm3441_vm2, %v3439_v0 }
 0x183   :  { %v4227_v26 = vadd.f32 %v1143_v25, %v565_v22 }
 0x184   :  { %v494_v28 = vpop.f32.mrb[84].mxu0  ;;  %v1072_v31 = vpop.f32.mrb[84].mxu1 }
 0x185   :  { %v495_v41 = vadd.f32 %v3803_v61, %v494_v28  ;;  %v1073_v42 = vadd.f32 %v3803_v61, %v1072_v31  ;;  %v3006_v46 = vpop.f32.mrb[85].mxu0  ;;  %v3110_v49 = vpop.f32.mrb[85].mxu1 }
 0x186   :  { %v497_v53 = vpop.f32.mrb[86].mxu0  ;;  %v1075_v54 = vpop.f32.mrb[86].mxu1 }
 0x187   :  { %v566_v57 = vmax.f32 %v495_v41, 0.0  ;;  %v1144_v62 = vmax.f32 %v1073_v42, 0.0  ;;  %v498_v61 = vadd.f32 %v4240_v6, %v497_v53  ;;  %v1076_v8 = vadd.f32 %v4240_v6, %v1075_v54  ;;  %v3007_v11 = vpop.f32.mrb[87].mxu0  ;;  %v3111_v12 = vpop.f32.mrb[87].mxu1 }
 0x189   :  { %v4244_v14 = vadd.f32 %v1144_v62, %v566_v57  ;;  %v567_v16 = vmax.f32 %v498_v61, 0.0  ;;  %v1145_v22 = vmax.f32 %v1076_v8, 0.0  ;;  %3221 = vmatmul.mubr.msk.bf16.gmra.mrb[192].mxu0 %vm209_vm3, %v3433_v51  ;;  %3325 = vmatmul.mubr.msk.bf16.gmra.mrb[192].mxu1 %vm209_vm3, %v3434_v52  ;;  %v3435_v51 = vld [vmem:[%s4582_s0 + $0x248] ss:$0 sps:$4 sm:$0xff]   ;;  %v3436_v52 = vld [vmem:[%s4582_s0 + $0x30c] ss:$0 sps:$4 sm:$0xff]  }
 0x18a   :  { %3224 = vmatprep.mubr.msk.bf16.mxu0 %vm3441_vm2, %v3439_v0  ;;  %3328 = vmatprep.mubr.msk.bf16.mxu1 %vm3441_vm2, %v3439_v0 }
 0x18b   :  { %v4252_v25 = vadd.f32 %v1145_v22, %v567_v16 }
 0x18c   :  { %v502_v28 = vpop.f32.mrb[88].mxu0  ;;  %v1080_v31 = vpop.f32.mrb[88].mxu1 }
 0x18d   :  { %4585 = vst [vmem:[#allocation2_spill] sm:$0xff] %v4252_v25  ;;  %v503_v41 = vadd.f32 %v4240_v6, %v502_v28  ;;  %v1081_v42 = vadd.f32 %v4240_v6, %v1080_v31  ;;  %v3010_v46 = vpop.f32.mrb[89].mxu0  ;;  %v3114_v49 = vpop.f32.mrb[89].mxu1 }
 0x18e   :  { %v505_v53 = vpop.f32.mrb[90].mxu0  ;;  %v1083_v0 = vpop.f32.mrb[90].mxu1 }
 0x18f   :  { %v568_v54 = vmax.f32 %v503_v41, 0.0  ;;  %v1146_v57 = vmax.f32 %v1081_v42, 0.0  ;;  %v506_v62 = vadd.f32 %v4240_v6, %v505_v53  ;;  %v1084_v61 = vadd.f32 %v4240_v6, %v1083_v0  ;;  %v3011_v8 = vpop.f32.mrb[91].mxu0  ;;  %v3115_v11 = vpop.f32.mrb[91].mxu1 }
 0x191   :  { %v4264_v12 = vadd.f32 %v1146_v57, %v568_v54  ;;  %v569_v16 = vmax.f32 %v506_v62, 0.0  ;;  %v1147_v22 = vmax.f32 %v1084_v61, 0.0  ;;  %3225 = vmatmul.mubr.msk.bf16.gmra.mrb[196].mxu0 %vm209_vm3, %v3435_v51  ;;  %3329 = vmatmul.mubr.msk.bf16.gmra.mrb[196].mxu1 %vm209_vm3, %v3436_v52 }
 0x193   :  { %4586 = vst [vmem:[#allocation3_spill] sm:$0xff] %v4264_v12  ;;  %v4268_v28 = vadd.f32 %v1147_v22, %v569_v16 }
 0x194   :  { %v510_v31 = vpop.f32.mrb[92].mxu0  ;;  %v1088_v46 = vpop.f32.mrb[92].mxu1 }
 0x195   :  { %4587 = vst [vmem:[#allocation4_spill] sm:$0xff] %v4268_v28  ;;  %v511_v41 = vadd.f32 %v4240_v6, %v510_v31  ;;  %v1089_v42 = vadd.f32 %v4240_v6, %v1088_v46  ;;  %v3014_v49 = vpop.f32.mrb[93].mxu0  ;;  %v3118_v53 = vpop.f32.mrb[93].mxu1 }
 0x196   :  { %v513_v0 = vpop.f32.mrb[94].mxu0  ;;  %v1091_v8 = vpop.f32.mrb[94].mxu1 }
 0x197   :  { %v570_v54 = vmax.f32 %v511_v41, 0.0  ;;  %v1148_v57 = vmax.f32 %v1089_v42, 0.0  ;;  %v514_v62 = vadd.f32 %v4240_v6, %v513_v0  ;;  %v1092_v51 = vadd.f32 %v4240_v6, %v1091_v8  ;;  %v3015_v61 = vpop.f32.mrb[95].mxu0  ;;  %v3119_v52 = vpop.f32.mrb[95].mxu1 }
 0x199   :  { %v4274_v11 = vadd.f32 %v1148_v57, %v570_v54  ;;  %v571_v16 = vmax.f32 %v514_v62, 0.0  ;;  %v1149_v22 = vmax.f32 %v1092_v51, 0.0 }
 0x19b   :  { %4588 = vst [vmem:[#allocation5_spill] sm:$0xff] %v4274_v11  ;;  %v4276_v28 = vadd.f32 %v1149_v22, %v571_v16 }
 0x19c   :  { %v518_v31 = vpop.f32.mrb[96].mxu0  ;;  %v1096_v46 = vpop.f32.mrb[96].mxu1 }
 0x19d   :  { %4589 = vst [vmem:[#allocation6_spill] sm:$0xff] %v4276_v28  ;;  %v519_v49 = vadd.f32 %v4240_v6, %v518_v31  ;;  %v1097_v53 = vadd.f32 %v4240_v6, %v1096_v46  ;;  %v3018_v41 = vpop.f32.mrb[97].mxu0  ;;  %v3122_v42 = vpop.f32.mrb[97].mxu1 }
 0x19e   :  { %v521_v12 = vpop.f32.mrb[98].mxu0  ;;  %v1099_v0 = vpop.f32.mrb[98].mxu1 }
 0x19f   :  { %v572_v25 = vmax.f32 %v519_v49, 0.0  ;;  %v1150_v8 = vmax.f32 %v1097_v53, 0.0  ;;  %v3019_v61 = vpop.f32.mrb[99].mxu0  ;;  %v3123_v52 = vpop.f32.mrb[99].mxu1 }
 0x1a1   :  { %v4280_v54 = vadd.f32 %v1150_v8, %v572_v25 }
 0x1a3   :  { %4590 = vst [vmem:[#allocation7_spill] sm:$0xff] %v4280_v54 }
 0x1a4   :  { %v1482_v57 = vpop.f32.mrb[100].mxu0  ;;  %v2060_v62 = vpop.f32.mrb[100].mxu1 }
 0x1a5   :  { %v1483_v51 = vadd.f32 %v4240_v6, %v1482_v57  ;;  %v2061_v16 = vadd.f32 %v4240_v6, %v2060_v62  ;;  %v3130_v22 = vpop.f32.mrb[101].mxu0  ;;  %v3234_v31 = vpop.f32.mrb[101].mxu1 }
 0x1a6   :  { %v1485_v28 = vpop.f32.mrb[102].mxu0  ;;  %v2063_v46 = vpop.f32.mrb[102].mxu1 }
 0x1a7   :  { %v1680_v41 = vmax.f32 %v1483_v51, 0.0  ;;  %v2258_v42 = vmax.f32 %v2061_v16, 0.0  ;;  %v1486_v12 = vadd.f32 %v4240_v6, %v1485_v28  ;;  %v2064_v49 = vadd.f32 %v4240_v6, %v2063_v46  ;;  %v3131_v53 = vpop.f32.mrb[103].mxu0  ;;  %v3235_v0 = vpop.f32.mrb[103].mxu1 }
 0x1a9   :  { %v1729_v25 = vadd.f32 %v1680_v41, %v3819_v15  ;;  %v1681_v8 = vmax.f32 %v1486_v12, 0.0  ;;  %v2259_v57 = vmax.f32 %v2064_v49, 0.0 }
 0x1ab   :  { %v2307_v61 = vadd.f32 %v2258_v42, %v1729_v25  ;;  %v1730_v52 = vadd.f32 %v1681_v8, %v3827_v18 }
 0x1ac   :  { %v1490_v62 = vpop.f32.mrb[104].mxu0  ;;  %v2068_v22 = vpop.f32.mrb[104].mxu1 }
 0x1ad   :  { %v2356_v31 = vmul.f32 0.25, %v2307_v61  ;;  %v2308_v54 = vadd.f32 %v2259_v57, %v1730_v52  ;;  %v1491_v51 = vadd.f32 %v4240_v6, %v1490_v62  ;;  %v2069_v16 = vadd.f32 %v4240_v6, %v2068_v22  ;;  %v3134_v28 = vpop.f32.mrb[105].mxu0  ;;  %v3238_v11 = vpop.f32.mrb[105].mxu1 }
 0x1ae   :  { %v1493_v46 = vpop.f32.mrb[106].mxu0  ;;  %v2071_v53 = vpop.f32.mrb[106].mxu1 }
 0x1af   :  { %2405 = vst [vmem:[%s4584_s3] sm:$0xff] %v2356_v31  ;;  %v2357_v15 = vmul.f32 0.25, %v2308_v54  ;;  %v1682_v41 = vmax.f32 %v1491_v51, 0.0  ;;  %v2260_v18 = vmax.f32 %v2069_v16, 0.0  ;;  %v1494_v42 = vadd.f32 %v4240_v6, %v1493_v46  ;;  %v3135_v12 = vpop.f32.mrb[107].mxu0  ;;  %v3239_v49 = vpop.f32.mrb[107].mxu1 }
 0x1b0   :  { %v2072_v0 = vadd.f32 %v4240_v6, %v2071_v53 }
 0x1b1   :  { %2406 = vst [vmem:[%s4584_s3 + $0x8] sm:$0xff] %v2357_v15  ;;  %v1731_v11 = vadd.f32 %v1682_v41, %v3839_v35  ;;  %v1683_v25 = vmax.f32 %v1494_v42, 0.0 }
 0x1b2   :  { %v2261_v52 = vmax.f32 %v2072_v0, 0.0 }
 0x1b3   :  { %v2309_v8 = vadd.f32 %v2260_v18, %v1731_v11  ;;  %v1732_v61 = vadd.f32 %v1683_v25, %v3847_v38 }
 0x1b4   :  { %v1498_v54 = vpop.f32.mrb[108].mxu0  ;;  %v2076_v57 = vpop.f32.mrb[108].mxu1 }
 0x1b5   :  { %v2358_v62 = vmul.f32 0.25, %v2309_v8  ;;  %v2310_v22 = vadd.f32 %v2261_v52, %v1732_v61  ;;  %v1499_v31 = vadd.f32 %v4240_v6, %v1498_v54  ;;  %v2077_v51 = vadd.f32 %v4240_v6, %v2076_v57  ;;  %v3138_v16 = vpop.f32.mrb[109].mxu0  ;;  %v3242_v28 = vpop.f32.mrb[109].mxu1 }
 0x1b6   :  { %v1501_v46 = vpop.f32.mrb[110].mxu0  ;;  %v2079_v53 = vpop.f32.mrb[110].mxu1 }
 0x1b7   :  { %2407 = vst [vmem:[%s4584_s3 + $0x10] sm:$0xff] %v2358_v62  ;;  %v2359_v35 = vmul.f32 0.25, %v2310_v22  ;;  %v1684_v15 = vmax.f32 %v1499_v31, 0.0  ;;  %v2262_v38 = vmax.f32 %v2077_v51, 0.0  ;;  %v1502_v41 = vadd.f32 %v4240_v6, %v1501_v46  ;;  %v3139_v18 = vpop.f32.mrb[111].mxu0  ;;  %v3243_v42 = vpop.f32.mrb[111].mxu1 }
 0x1b8   :  { %v2080_v12 = vadd.f32 %v4240_v6, %v2079_v53 }
 0x1b9   :  { %2408 = vst [vmem:[%s4584_s3 + $0x18] sm:$0xff] %v2359_v35  ;;  %v1733_v49 = vadd.f32 %v1684_v15, %v3859_v55  ;;  %v1685_v0 = vmax.f32 %v1502_v41, 0.0 }
 0x1ba   :  { %v2263_v8 = vmax.f32 %v2080_v12, 0.0 }
 0x1bb   :  { %v2311_v11 = vadd.f32 %v2262_v38, %v1733_v49  ;;  %v1734_v25 = vadd.f32 %v1685_v0, %v3867_v58 }
 0x1bc   :  { %v1506_v61 = vpop.f32.mrb[112].mxu0  ;;  %v2084_v52 = vpop.f32.mrb[112].mxu1 }
 0x1bd   :  { %v2360_v54 = vmul.f32 0.25, %v2311_v11  ;;  %v2312_v57 = vadd.f32 %v2263_v8, %v1734_v25  ;;  %v1507_v62 = vadd.f32 %v4240_v6, %v1506_v61  ;;  %v2085_v22 = vadd.f32 %v4240_v6, %v2084_v52  ;;  %v3142_v31 = vpop.f32.mrb[113].mxu0  ;;  %v3246_v51 = vpop.f32.mrb[113].mxu1 }
 0x1be   :  { %v1509_v16 = vpop.f32.mrb[114].mxu0  ;;  %v2087_v28 = vpop.f32.mrb[114].mxu1 }
 0x1bf   :  { %2409 = vst [vmem:[%s4584_s3 + $0x20] sm:$0xff] %v2360_v54  ;;  %v2361_v55 = vmul.f32 0.25, %v2312_v57  ;;  %v1686_v46 = vmax.f32 %v1507_v62, 0.0  ;;  %v2264_v58 = vmax.f32 %v2085_v22, 0.0  ;;  %v1510_v53 = vadd.f32 %v4240_v6, %v1509_v16  ;;  %v3143_v35 = vpop.f32.mrb[115].mxu0  ;;  %v3247_v15 = vpop.f32.mrb[115].mxu1 }
 0x1c0   :  { %v2088_v38 = vadd.f32 %v4240_v6, %v2087_v28 }
 0x1c1   :  { %2410 = vst [vmem:[%s4584_s3 + $0x28] sm:$0xff] %v2361_v55  ;;  %v1735_v41 = vadd.f32 %v1686_v46, %v3879_v13  ;;  %v1687_v18 = vmax.f32 %v1510_v53, 0.0 }
 0x1c2   :  { %v2265_v49 = vmax.f32 %v2088_v38, 0.0 }
 0x1c3   :  { %v2313_v42 = vadd.f32 %v2264_v58, %v1735_v41  ;;  %v1736_v12 = vadd.f32 %v1687_v18, %v3887_v17 }
 0x1c4   :  { %v1514_v0 = vpop.f32.mrb[116].mxu0  ;;  %v2092_v11 = vpop.f32.mrb[116].mxu1 }
 0x1c5   :  { %v2362_v25 = vmul.f32 0.25, %v2313_v42  ;;  %v2314_v8 = vadd.f32 %v2265_v49, %v1736_v12  ;;  %v1515_v61 = vadd.f32 %v4240_v6, %v1514_v0  ;;  %v2093_v52 = vadd.f32 %v4240_v6, %v2092_v11  ;;  %v3146_v54 = vpop.f32.mrb[117].mxu0  ;;  %v3250_v57 = vpop.f32.mrb[117].mxu1 }
 0x1c6   :  { %v1517_v62 = vpop.f32.mrb[118].mxu0  ;;  %v2095_v22 = vpop.f32.mrb[118].mxu1 }
 0x1c7   :  { %2411 = vst [vmem:[%s4584_s3 + $0x30] sm:$0xff] %v2362_v25  ;;  %v2363_v13 = vmul.f32 0.25, %v2314_v8  ;;  %v1688_v31 = vmax.f32 %v1515_v61, 0.0  ;;  %v2266_v17 = vmax.f32 %v2093_v52, 0.0  ;;  %v1518_v51 = vadd.f32 %v4240_v6, %v1517_v62  ;;  %v3147_v16 = vpop.f32.mrb[119].mxu0  ;;  %v3251_v28 = vpop.f32.mrb[119].mxu1 }
 0x1c8   :  { %v2096_v55 = vadd.f32 %v4240_v6, %v2095_v22 }
 0x1c9   :  { %2412 = vst [vmem:[%s4584_s3 + $0x38] sm:$0xff] %v2363_v13  ;;  %v1737_v46 = vadd.f32 %v1688_v31, %v3899_v36  ;;  %v1689_v58 = vmax.f32 %v1518_v51, 0.0 }
 0x1ca   :  { %v2267_v15 = vmax.f32 %v2096_v55, 0.0 }
 0x1cb   :  { %v2315_v53 = vadd.f32 %v2266_v17, %v1737_v46  ;;  %v1738_v35 = vadd.f32 %v1689_v58, %v3907_v40 }
 0x1cc   :  { %v1522_v38 = vpop.f32.mrb[120].mxu0  ;;  %v2100_v41 = vpop.f32.mrb[120].mxu1 }
 0x1cd   :  { %v2364_v18 = vmul.f32 0.25, %v2315_v53  ;;  %v2316_v42 = vadd.f32 %v2267_v15, %v1738_v35  ;;  %v1523_v12 = vadd.f32 %v4240_v6, %v1522_v38  ;;  %v2101_v49 = vadd.f32 %v4240_v6, %v2100_v41  ;;  %v3150_v0 = vpop.f32.mrb[121].mxu0  ;;  %v3254_v11 = vpop.f32.mrb[121].mxu1 }
 0x1ce   :  { %v1525_v25 = vpop.f32.mrb[122].mxu0  ;;  %v2103_v8 = vpop.f32.mrb[122].mxu1 }
 0x1cf   :  { %2413 = vst [vmem:[%s4584_s3 + $0x40] sm:$0xff] %v2364_v18  ;;  %v2365_v36 = vmul.f32 0.25, %v2316_v42  ;;  %v1690_v61 = vmax.f32 %v1523_v12, 0.0  ;;  %v2268_v40 = vmax.f32 %v2101_v49, 0.0  ;;  %v1526_v52 = vadd.f32 %v4240_v6, %v1525_v25  ;;  %v3151_v54 = vpop.f32.mrb[123].mxu0  ;;  %v3255_v57 = vpop.f32.mrb[123].mxu1 }
 0x1d0   :  { %v2104_v62 = vadd.f32 %v4240_v6, %v2103_v8 }
 0x1d1   :  { %2414 = vst [vmem:[%s4584_s3 + $0x48] sm:$0xff] %v2365_v36  ;;  %v1739_v22 = vadd.f32 %v1690_v61, %v3919_v59  ;;  %v1691_v13 = vmax.f32 %v1526_v52, 0.0 }
 0x1d2   :  { %v2269_v51 = vmax.f32 %v2104_v62, 0.0 }
 0x1d3   :  { %v2317_v31 = vadd.f32 %v2268_v40, %v1739_v22  ;;  %v1740_v17 = vadd.f32 %v1691_v13, %v3927_v63 }
 0x1d4   :  { %v1530_v16 = vpop.f32.mrb[124].mxu0  ;;  %v2108_v28 = vpop.f32.mrb[124].mxu1 }
 0x1d5   :  { %v2366_v55 = vmul.f32 0.25, %v2317_v31  ;;  %v2318_v46 = vadd.f32 %v2269_v51, %v1740_v17  ;;  %v1531_v58 = vadd.f32 %v4240_v6, %v1530_v16  ;;  %v2109_v53 = vadd.f32 %v4240_v6, %v2108_v28  ;;  %v3154_v35 = vpop.f32.mrb[125].mxu0  ;;  %v3258_v15 = vpop.f32.mrb[125].mxu1 }
 0x1d6   :  { %v1533_v38 = vpop.f32.mrb[126].mxu0  ;;  %v2111_v41 = vpop.f32.mrb[126].mxu1 }
 0x1d7   :  { %2415 = vst [vmem:[%s4584_s3 + $0x50] sm:$0xff] %v2366_v55  ;;  %v2367_v59 = vmul.f32 0.25, %v2318_v46  ;;  %v1692_v18 = vmax.f32 %v1531_v58, 0.0  ;;  %v2270_v63 = vmax.f32 %v2109_v53, 0.0  ;;  %v1534_v42 = vadd.f32 %v4240_v6, %v1533_v38  ;;  %v3155_v12 = vpop.f32.mrb[127].mxu0  ;;  %v3259_v49 = vpop.f32.mrb[127].mxu1 }
 0x1d8   :  { %v2112_v0 = vadd.f32 %v4240_v6, %v2111_v41 }
 0x1d9   :  { %2416 = vst [vmem:[%s4584_s3 + $0x58] sm:$0xff] %v2367_v59  ;;  %v1741_v11 = vadd.f32 %v1692_v18, %v3939_v21  ;;  %v1693_v25 = vmax.f32 %v1534_v42, 0.0 }
 0x1da   :  { %v2271_v61 = vmax.f32 %v2112_v0, 0.0 }
 0x1db   :  { %v2319_v8 = vadd.f32 %v2270_v63, %v1741_v11  ;;  %v1742_v36 = vadd.f32 %v1693_v25, %v3947_v24 }
 0x1dc   :  { %v1538_v40 = vpop.f32.mrb[128].mxu0  ;;  %v2116_v52 = vpop.f32.mrb[128].mxu1 }
 0x1dd   :  { %v2368_v54 = vmul.f32 0.25, %v2319_v8  ;;  %v2320_v57 = vadd.f32 %v2271_v61, %v1742_v36  ;;  %v1539_v62 = vadd.f32 %v4240_v6, %v1538_v40  ;;  %v2117_v22 = vadd.f32 %v4240_v6, %v2116_v52  ;;  %v3158_v13 = vpop.f32.mrb[129].mxu0  ;;  %v3262_v31 = vpop.f32.mrb[129].mxu1 }
 0x1de   :  { %v1541_v17 = vpop.f32.mrb[130].mxu0  ;;  %v2119_v51 = vpop.f32.mrb[130].mxu1 }
 0x1df   :  { %2417 = vst [vmem:[%s4584_s3 + $0x60] sm:$0xff] %v2368_v54  ;;  %v2369_v21 = vmul.f32 0.25, %v2320_v57  ;;  %v1694_v16 = vmax.f32 %v1539_v62, 0.0  ;;  %v2272_v24 = vmax.f32 %v2117_v22, 0.0  ;;  %v1542_v28 = vadd.f32 %v4240_v6, %v1541_v17  ;;  %v3159_v55 = vpop.f32.mrb[131].mxu0  ;;  %v3263_v46 = vpop.f32.mrb[131].mxu1 }
 0x1e0   :  { %v2120_v58 = vadd.f32 %v4240_v6, %v2119_v51 }
 0x1e1   :  { %2418 = vst [vmem:[%s4584_s3 + $0x68] sm:$0xff] %v2369_v21  ;;  %v1743_v53 = vadd.f32 %v1694_v16, %v3959_v45  ;;  %v1695_v35 = vmax.f32 %v1542_v28, 0.0 }
 0x1e2   :  { %v2273_v41 = vmax.f32 %v2120_v58, 0.0 }
 0x1e3   :  { %v2321_v15 = vadd.f32 %v2272_v24, %v1743_v53  ;;  %v1744_v38 = vadd.f32 %v1695_v35, %v3967_v48 }
 0x1e4   :  { %v1546_v59 = vpop.f32.mrb[132].mxu0  ;;  %v2124_v18 = vpop.f32.mrb[132].mxu1 }
 0x1e5   :  { %v2370_v63 = vmul.f32 0.25, %v2321_v15  ;;  %v2322_v42 = vadd.f32 %v2273_v41, %v1744_v38  ;;  %v1547_v12 = vadd.f32 %v4240_v6, %v1546_v59  ;;  %v2125_v49 = vadd.f32 %v4240_v6, %v2124_v18  ;;  %v3162_v0 = vpop.f32.mrb[133].mxu0  ;;  %v3266_v11 = vpop.f32.mrb[133].mxu1 }
 0x1e6   :  { %v1549_v25 = vpop.f32.mrb[134].mxu0  ;;  %v2127_v8 = vpop.f32.mrb[134].mxu1 }
 0x1e7   :  { %2419 = vst [vmem:[%s4584_s3 + $0x70] sm:$0xff] %v2370_v63  ;;  %v2371_v45 = vmul.f32 0.25, %v2322_v42  ;;  %v1696_v36 = vmax.f32 %v1547_v12, 0.0  ;;  %v2274_v48 = vmax.f32 %v2125_v49, 0.0  ;;  %v1550_v61 = vadd.f32 %v4240_v6, %v1549_v25  ;;  %v3163_v40 = vpop.f32.mrb[135].mxu0  ;;  %v3267_v52 = vpop.f32.mrb[135].mxu1 }
 0x1e8   :  { %v2128_v54 = vadd.f32 %v4240_v6, %v2127_v8 }
 0x1e9   :  { %2420 = vst [vmem:[%s4584_s3 + $0x78] sm:$0xff] %v2371_v45  ;;  %v1745_v57 = vadd.f32 %v1696_v36, %v3979_v7  ;;  %v1697_v62 = vmax.f32 %v1550_v61, 0.0 }
 0x1ea   :  { %v2275_v31 = vmax.f32 %v2128_v54, 0.0 }
 0x1eb   :  { %v2323_v22 = vadd.f32 %v2274_v48, %v1745_v57  ;;  %v1746_v13 = vadd.f32 %v1697_v62, %v3987_v10 }
 0x1ec   :  { %v1554_v17 = vpop.f32.mrb[136].mxu0  ;;  %v2132_v51 = vpop.f32.mrb[136].mxu1 }
 0x1ed   :  { %v2372_v21 = vmul.f32 0.25, %v2323_v22  ;;  %v2324_v16 = vadd.f32 %v2275_v31, %v1746_v13  ;;  %v1555_v24 = vadd.f32 %v4240_v6, %v1554_v17  ;;  %v2133_v28 = vadd.f32 %v4240_v6, %v2132_v51  ;;  %v3166_v55 = vpop.f32.mrb[137].mxu0  ;;  %v3270_v46 = vpop.f32.mrb[137].mxu1 }
 0x1ee   :  { %v1557_v58 = vpop.f32.mrb[138].mxu0  ;;  %v2135_v53 = vpop.f32.mrb[138].mxu1 }
 0x1ef   :  { %2421 = vst [vmem:[%s4584_s3 + $0x80] sm:$0xff] %v2372_v21  ;;  %v2373_v7 = vmul.f32 0.25, %v2324_v16  ;;  %v1698_v35 = vmax.f32 %v1555_v24, 0.0  ;;  %v2276_v10 = vmax.f32 %v2133_v28, 0.0  ;;  %v1558_v15 = vadd.f32 %v4240_v6, %v1557_v58  ;;  %v3167_v38 = vpop.f32.mrb[139].mxu0  ;;  %v3271_v41 = vpop.f32.mrb[139].mxu1 }
 0x1f0   :  { %v2136_v59 = vadd.f32 %v4240_v6, %v2135_v53 }
 0x1f1   :  { %2422 = vst [vmem:[%s4584_s3 + $0x88] sm:$0xff] %v2373_v7  ;;  %v1747_v18 = vadd.f32 %v1698_v35, %v3999_v33  ;;  %v1699_v63 = vmax.f32 %v1558_v15, 0.0 }
 0x1f2   :  { %v2277_v49 = vmax.f32 %v2136_v59, 0.0 }
 0x1f3   :  { %v2325_v42 = vadd.f32 %v2276_v10, %v1747_v18  ;;  %v1748_v12 = vadd.f32 %v1699_v63, %v4007_v39 }
 0x1f4   :  { %v1562_v0 = vpop.f32.mrb[140].mxu0  ;;  %v2140_v11 = vpop.f32.mrb[140].mxu1 }
 0x1f5   :  { %v2374_v25 = vmul.f32 0.25, %v2325_v42  ;;  %v2326_v8 = vadd.f32 %v2277_v49, %v1748_v12  ;;  %v1563_v45 = vadd.f32 %v4240_v6, %v1562_v0  ;;  %v2141_v36 = vadd.f32 %v4240_v6, %v2140_v11  ;;  %v3170_v48 = vpop.f32.mrb[141].mxu0  ;;  %v3274_v61 = vpop.f32.mrb[141].mxu1 }
 0x1f6   :  { %v1565_v40 = vpop.f32.mrb[142].mxu0  ;;  %v2143_v52 = vpop.f32.mrb[142].mxu1 }
 0x1f7   :  { %2423 = vst [vmem:[%s4584_s3 + $0x90] sm:$0xff] %v2374_v25  ;;  %v2375_v33 = vmul.f32 0.25, %v2326_v8  ;;  %v1700_v54 = vmax.f32 %v1563_v45, 0.0  ;;  %v2278_v39 = vmax.f32 %v2141_v36, 0.0  ;;  %v1566_v57 = vadd.f32 %v4240_v6, %v1565_v40  ;;  %v3171_v62 = vpop.f32.mrb[143].mxu0  ;;  %v3275_v22 = vpop.f32.mrb[143].mxu1 }
 0x1f8   :  { %v2144_v13 = vadd.f32 %v4240_v6, %v2143_v52 }
 0x1f9   :  { %2424 = vst [vmem:[%s4584_s3 + $0x98] sm:$0xff] %v2375_v33  ;;  %v1749_v31 = vadd.f32 %v1700_v54, %v4019_v1  ;;  %v1701_v17 = vmax.f32 %v1566_v57, 0.0 }
 0x1fa   :  { %v2279_v16 = vmax.f32 %v2144_v13, 0.0 }
 0x1fb   :  { %v2327_v51 = vadd.f32 %v2278_v39, %v1749_v31  ;;  %v1750_v21 = vadd.f32 %v1701_v17, %v4027_v4 }
 0x1fc   :  { %v1570_v24 = vpop.f32.mrb[144].mxu0  ;;  %v2148_v28 = vpop.f32.mrb[144].mxu1 }
 0x1fd   :  { %v2376_v55 = vmul.f32 0.25, %v2327_v51  ;;  %v2328_v46 = vadd.f32 %v2279_v16, %v1750_v21  ;;  %v1571_v58 = vadd.f32 %v4240_v6, %v1570_v24  ;;  %v2149_v53 = vadd.f32 %v4240_v6, %v2148_v28  ;;  %v3174_v7 = vpop.f32.mrb[145].mxu0  ;;  %v3278_v35 = vpop.f32.mrb[145].mxu1 }
 0x1fe   :  { %v1573_v10 = vpop.f32.mrb[146].mxu0  ;;  %v2151_v15 = vpop.f32.mrb[146].mxu1 }
 0x1ff   :  { %2425 = vst [vmem:[%s4584_s3 + $0xa0] sm:$0xff] %v2376_v55  ;;  %v2377_v1 = vmul.f32 0.25, %v2328_v46  ;;  %v1702_v38 = vmax.f32 %v1571_v58, 0.0  ;;  %v2280_v4 = vmax.f32 %v2149_v53, 0.0  ;;  %v1574_v41 = vadd.f32 %v4240_v6, %v1573_v10  ;;  %v3175_v59 = vpop.f32.mrb[147].mxu0  ;;  %v3279_v18 = vpop.f32.mrb[147].mxu1 }
 0x200   :  { %v2152_v63 = vadd.f32 %v4240_v6, %v2151_v15 }
 0x201   :  { %2426 = vst [vmem:[%s4584_s3 + $0xa8] sm:$0xff] %v2377_v1  ;;  %v1751_v42 = vadd.f32 %v1702_v38, %v4039_v29  ;;  %v1703_v12 = vmax.f32 %v1574_v41, 0.0 }
 0x202   :  { %v2281_v11 = vmax.f32 %v2152_v63, 0.0 }
 0x203   :  { %v2329_v49 = vadd.f32 %v2280_v4, %v1751_v42  ;;  %v1752_v0 = vadd.f32 %v1703_v12, %v4047_v32 }
 0x204   :  { %v1578_v25 = vpop.f32.mrb[148].mxu0  ;;  %v2156_v8 = vpop.f32.mrb[148].mxu1 }
 0x205   :  { %v2378_v45 = vmul.f32 0.25, %v2329_v49  ;;  %v2330_v36 = vadd.f32 %v2281_v11, %v1752_v0  ;;  %v1579_v48 = vadd.f32 %v4240_v6, %v1578_v25  ;;  %v2157_v61 = vadd.f32 %v4240_v6, %v2156_v8  ;;  %v3178_v40 = vpop.f32.mrb[149].mxu0  ;;  %v3282_v52 = vpop.f32.mrb[149].mxu1 }
 0x206   :  { %v1581_v33 = vpop.f32.mrb[150].mxu0  ;;  %v2159_v54 = vpop.f32.mrb[150].mxu1 }
 0x207   :  { %2427 = vst [vmem:[%s4584_s3 + $0xb0] sm:$0xff] %v2378_v45  ;;  %v2379_v29 = vmul.f32 0.25, %v2330_v36  ;;  %v1704_v39 = vmax.f32 %v1579_v48, 0.0  ;;  %v2282_v32 = vmax.f32 %v2157_v61, 0.0  ;;  %v1582_v57 = vadd.f32 %v4240_v6, %v1581_v33  ;;  %v3179_v62 = vpop.f32.mrb[151].mxu0  ;;  %v3283_v22 = vpop.f32.mrb[151].mxu1 }
 0x208   :  { %v2160_v13 = vadd.f32 %v4240_v6, %v2159_v54 }
 0x209   :  { %2428 = vst [vmem:[%s4584_s3 + $0xb8] sm:$0xff] %v2379_v29  ;;  %v1753_v31 = vadd.f32 %v1704_v39, %v4059_v60  ;;  %v1705_v17 = vmax.f32 %v1582_v57, 0.0 }
 0x20a   :  { %v2283_v16 = vmax.f32 %v2160_v13, 0.0 }
 0x20b   :  { %v2331_v51 = vadd.f32 %v2282_v32, %v1753_v31  ;;  %v1754_v21 = vadd.f32 %v1705_v17, %v4067_v3 }
 0x20c   :  { %v1586_v24 = vpop.f32.mrb[152].mxu0  ;;  %v2164_v28 = vpop.f32.mrb[152].mxu1 }
 0x20d   :  { %v2380_v55 = vmul.f32 0.25, %v2331_v51  ;;  %v2332_v46 = vadd.f32 %v2283_v16, %v1754_v21  ;;  %v1587_v58 = vadd.f32 %v4240_v6, %v1586_v24  ;;  %v2165_v53 = vadd.f32 %v4240_v6, %v2164_v28  ;;  %v3182_v7 = vpop.f32.mrb[153].mxu0  ;;  %v3286_v35 = vpop.f32.mrb[153].mxu1 }
 0x20e   :  { %v1589_v10 = vpop.f32.mrb[154].mxu0  ;;  %v2167_v15 = vpop.f32.mrb[154].mxu1 }
 0x20f   :  { %2429 = vst [vmem:[%s4584_s3 + $0xc0] sm:$0xff] %v2380_v55  ;;  %v2381_v60 = vmul.f32 0.25, %v2332_v46  ;;  %v1706_v1 = vmax.f32 %v1587_v58, 0.0  ;;  %v2284_v3 = vmax.f32 %v2165_v53, 0.0  ;;  %v1590_v38 = vadd.f32 %v4240_v6, %v1589_v10  ;;  %v3183_v4 = vpop.f32.mrb[155].mxu0  ;;  %v3287_v41 = vpop.f32.mrb[155].mxu1 }
 0x210   :  { %v2168_v59 = vadd.f32 %v4240_v6, %v2167_v15 }
 0x211   :  { %2430 = vst [vmem:[%s4584_s3 + $0xc8] sm:$0xff] %v2381_v60  ;;  %v1755_v18 = vadd.f32 %v1706_v1, %v4079_v30  ;;  %v1707_v63 = vmax.f32 %v1590_v38, 0.0 }
 0x212   :  { %v2285_v49 = vmax.f32 %v2168_v59, 0.0 }
 0x213   :  { %v2333_v42 = vadd.f32 %v2284_v3, %v1755_v18  ;;  %v1756_v12 = vadd.f32 %v1707_v63, %v4087_v37 }
 0x214   :  { %v1594_v0 = vpop.f32.mrb[156].mxu0  ;;  %v2172_v11 = vpop.f32.mrb[156].mxu1 }
 0x215   :  { %v2382_v25 = vmul.f32 0.25, %v2333_v42  ;;  %v2334_v8 = vadd.f32 %v2285_v49, %v1756_v12  ;;  %v1595_v45 = vadd.f32 %v4240_v6, %v1594_v0  ;;  %v2173_v36 = vadd.f32 %v4240_v6, %v2172_v11  ;;  %v3186_v48 = vpop.f32.mrb[157].mxu0  ;;  %v3290_v61 = vpop.f32.mrb[157].mxu1 }
 0x216   :  { %v1597_v40 = vpop.f32.mrb[158].mxu0  ;;  %v2175_v52 = vpop.f32.mrb[158].mxu1 }
 0x217   :  { %2431 = vst [vmem:[%s4584_s3 + $0xd0] sm:$0xff] %v2382_v25  ;;  %v2383_v30 = vmul.f32 0.25, %v2334_v8  ;;  %v1708_v33 = vmax.f32 %v1595_v45, 0.0  ;;  %v2286_v37 = vmax.f32 %v2173_v36, 0.0  ;;  %v1598_v54 = vadd.f32 %v4240_v6, %v1597_v40  ;;  %v3187_v29 = vpop.f32.mrb[159].mxu0  ;;  %v3291_v39 = vpop.f32.mrb[159].mxu1 }
 0x218   :  { %v2176_v32 = vadd.f32 %v4240_v6, %v2175_v52 }
 0x219   :  { %2432 = vst [vmem:[%s4584_s3 + $0xd8] sm:$0xff] %v2383_v30  ;;  %v1757_v57 = vadd.f32 %v1708_v33, %v4099_v5  ;;  %v1709_v62 = vmax.f32 %v1598_v54, 0.0 }
 0x21a   :  { %v2287_v31 = vmax.f32 %v2176_v32, 0.0 }
 0x21b   :  { %v2335_v22 = vadd.f32 %v2286_v37, %v1757_v57  ;;  %v1758_v13 = vadd.f32 %v1709_v62, %v4107_v9 }
 0x21c   :  { %v1602_v17 = vpop.f32.mrb[160].mxu0  ;;  %v2180_v51 = vpop.f32.mrb[160].mxu1 }
 0x21d   :  { %v2384_v21 = vmul.f32 0.25, %v2335_v22  ;;  %v2336_v16 = vadd.f32 %v2287_v31, %v1758_v13  ;;  %v1603_v24 = vadd.f32 %v4240_v6, %v1602_v17  ;;  %v2181_v28 = vadd.f32 %v4240_v6, %v2180_v51  ;;  %v3190_v55 = vpop.f32.mrb[161].mxu0  ;;  %v3294_v46 = vpop.f32.mrb[161].mxu1 }
 0x21e   :  { %v1605_v58 = vpop.f32.mrb[162].mxu0  ;;  %v2183_v53 = vpop.f32.mrb[162].mxu1 }
 0x21f   :  { %2433 = vst [vmem:[%s4584_s3 + $0xe0] sm:$0xff] %v2384_v21  ;;  %v2385_v5 = vmul.f32 0.25, %v2336_v16  ;;  %v1710_v7 = vmax.f32 %v1603_v24, 0.0  ;;  %v2288_v9 = vmax.f32 %v2181_v28, 0.0  ;;  %v1606_v35 = vadd.f32 %v4240_v6, %v1605_v58  ;;  %v3191_v10 = vpop.f32.mrb[163].mxu0  ;;  %v3295_v15 = vpop.f32.mrb[163].mxu1 }
 0x220   :  { %v2184_v60 = vadd.f32 %v4240_v6, %v2183_v53 }
 0x221   :  { %2434 = vst [vmem:[%s4584_s3 + $0xe8] sm:$0xff] %v2385_v5  ;;  %v1759_v1 = vadd.f32 %v1710_v7, %v4119_v43  ;;  %v1711_v3 = vmax.f32 %v1606_v35, 0.0 }
 0x222   :  { %v2289_v41 = vmax.f32 %v2184_v60, 0.0 }
 0x223   :  { %v2337_v38 = vadd.f32 %v2288_v9, %v1759_v1  ;;  %v1760_v4 = vadd.f32 %v1711_v3, %v4127_v47 }
 0x224   :  { %v1610_v59 = vpop.f32.mrb[164].mxu0  ;;  %v2188_v18 = vpop.f32.mrb[164].mxu1 }
 0x225   :  { %v2386_v63 = vmul.f32 0.25, %v2337_v38  ;;  %v2338_v42 = vadd.f32 %v2289_v41, %v1760_v4  ;;  %v1611_v12 = vadd.f32 %v4240_v6, %v1610_v59  ;;  %v2189_v49 = vadd.f32 %v4240_v6, %v2188_v18  ;;  %v3194_v0 = vpop.f32.mrb[165].mxu0  ;;  %v3298_v11 = vpop.f32.mrb[165].mxu1 }
 0x226   :  { %v1613_v25 = vpop.f32.mrb[166].mxu0  ;;  %v2191_v8 = vpop.f32.mrb[166].mxu1 }
 0x227   :  { %2435 = vst [vmem:[%s4584_s3 + $0xf0] sm:$0xff] %v2386_v63  ;;  %v2387_v43 = vmul.f32 0.25, %v2338_v42  ;;  %v1712_v45 = vmax.f32 %v1611_v12, 0.0  ;;  %v2290_v47 = vmax.f32 %v2189_v49, 0.0  ;;  %v1614_v36 = vadd.f32 %v4240_v6, %v1613_v25  ;;  %v3195_v48 = vpop.f32.mrb[167].mxu0  ;;  %v3299_v61 = vpop.f32.mrb[167].mxu1 }
 0x228   :  { %v2192_v40 = vadd.f32 %v4240_v6, %v2191_v8  ;;  %v4507_v48 = vld [vmem:[%s4583_s2] ss:$0 sm:$0xff] }
 0x229   :  { %2436 = vst [vmem:[%s4584_s3 + $0xf8] sm:$0xff] %v2387_v43  ;;  %v1761_v52 = vadd.f32 %v1712_v45, %v4139_v19  ;;  %v1713_v30 = vmax.f32 %v1614_v36, 0.0 }
 0x22a   :  { %v2291_v54 = vmax.f32 %v2192_v40, 0.0 }
 0x22b   :  { %v2339_v33 = vadd.f32 %v2290_v47, %v1761_v52  ;;  %v1762_v37 = vadd.f32 %v1713_v30, %v4147_v23 }
 0x22c   :  { %v1618_v29 = vpop.f32.mrb[168].mxu0  ;;  %v2196_v39 = vpop.f32.mrb[168].mxu1 }
 0x22d   :  { %v2388_v32 = vmul.f32 0.25, %v2339_v33  ;;  %v2340_v57 = vadd.f32 %v2291_v54, %v1762_v37  ;;  %v1619_v62 = vadd.f32 %v4240_v6, %v1618_v29  ;;  %v2197_v22 = vadd.f32 %v4240_v6, %v2196_v39  ;;  %v3198_v13 = vpop.f32.mrb[169].mxu0  ;;  %v3302_v31 = vpop.f32.mrb[169].mxu1 }
 0x22e   :  { %v1621_v17 = vpop.f32.mrb[170].mxu0  ;;  %v2199_v51 = vpop.f32.mrb[170].mxu1 }
 0x22f   :  { %2437 = vst [vmem:[%s4584_s3 + $0x100] sm:$0xff] %v2388_v32  ;;  %v2389_v19 = vmul.f32 0.25, %v2340_v57  ;;  %v1714_v21 = vmax.f32 %v1619_v62, 0.0  ;;  %v2292_v23 = vmax.f32 %v2197_v22, 0.0  ;;  %v1622_v16 = vadd.f32 %v4240_v6, %v1621_v17  ;;  %v3199_v24 = vpop.f32.mrb[171].mxu0  ;;  %v3303_v28 = vpop.f32.mrb[171].mxu1 }
 0x230   :  { %v2200_v55 = vadd.f32 %v4240_v6, %v2199_v51 }
 0x231   :  { %2438 = vst [vmem:[%s4584_s3 + $0x108] sm:$0xff] %v2389_v19  ;;  %v1763_v46 = vadd.f32 %v1714_v21, %v4159_v56  ;;  %v1715_v58 = vmax.f32 %v1622_v16, 0.0 }
 0x232   :  { %v2293_v7 = vmax.f32 %v2200_v55, 0.0 }
 0x233   :  { %v2341_v53 = vadd.f32 %v2292_v23, %v1763_v46  ;;  %v1764_v5 = vadd.f32 %v1715_v58, %v4167_v2 }
 0x234   :  { %v1626_v9 = vpop.f32.mrb[172].mxu0  ;;  %v2204_v35 = vpop.f32.mrb[172].mxu1 }
 0x235   :  { %v2390_v10 = vmul.f32 0.25, %v2341_v53  ;;  %v2342_v15 = vadd.f32 %v2293_v7, %v1764_v5  ;;  %v1627_v60 = vadd.f32 %v4240_v6, %v1626_v9  ;;  %v2205_v1 = vadd.f32 %v4240_v6, %v2204_v35  ;;  %v3202_v3 = vpop.f32.mrb[173].mxu0  ;;  %v3306_v38 = vpop.f32.mrb[173].mxu1 }
 0x236   :  { %v1629_v4 = vpop.f32.mrb[174].mxu0  ;;  %v2207_v41 = vpop.f32.mrb[174].mxu1 }
 0x237   :  { %2439 = vst [vmem:[%s4584_s3 + $0x110] sm:$0xff] %v2390_v10  ;;  %v2391_v56 = vmul.f32 0.25, %v2342_v15  ;;  %v1716_v59 = vmax.f32 %v1627_v60, 0.0  ;;  %v2294_v2 = vmax.f32 %v2205_v1, 0.0  ;;  %v1630_v18 = vadd.f32 %v4240_v6, %v1629_v4  ;;  %v3203_v63 = vpop.f32.mrb[175].mxu0  ;;  %v3307_v42 = vpop.f32.mrb[175].mxu1 }
 0x238   :  { %v2208_v12 = vadd.f32 %v4240_v6, %v2207_v41 }
 0x239   :  { %2440 = vst [vmem:[%s4584_s3 + $0x118] sm:$0xff] %v2391_v56  ;;  %v1765_v49 = vadd.f32 %v1716_v59, %v4179_v44  ;;  %v1717_v0 = vmax.f32 %v1630_v18, 0.0 }
 0x23a   :  { %v2295_v8 = vmax.f32 %v2208_v12, 0.0 }
 0x23b   :  { %v2343_v11 = vadd.f32 %v2294_v2, %v1765_v49  ;;  %v1766_v25 = vadd.f32 %v1717_v0, %v4187_v50 }
 0x23c   :  { %v1634_v43 = vpop.f32.mrb[176].mxu0  ;;  %v2212_v45 = vpop.f32.mrb[176].mxu1 }
 0x23d   :  { %v2392_v47 = vmul.f32 0.25, %v2343_v11  ;;  %v2344_v36 = vadd.f32 %v2295_v8, %v1766_v25  ;;  %v1635_v6 = vadd.f32 %v4507_v48, %v1634_v43  ;;  %v2213_v61 = vadd.f32 %v4507_v48, %v2212_v45  ;;  %v3206_v40 = vpop.f32.mrb[177].mxu0  ;;  %v3310_v44 = vpop.f32.mrb[177].mxu1 }
 0x23e   :  { %v1637_v52 = vpop.f32.mrb[178].mxu0  ;;  %v2215_v30 = vpop.f32.mrb[178].mxu1 }
 0x23f   :  { %2441 = vst [vmem:[%s4584_s3 + $0x120] sm:$0xff] %v2392_v47  ;;  %v2393_v50 = vmul.f32 0.25, %v2344_v36  ;;  %v1718_v33 = vmax.f32 %v1635_v6, 0.0  ;;  %v2296_v37 = vmax.f32 %v2213_v61, 0.0  ;;  %v1638_v54 = vadd.f32 %v4507_v48, %v1637_v52  ;;  %v3207_v29 = vpop.f32.mrb[179].mxu0  ;;  %v3311_v39 = vpop.f32.mrb[179].mxu1 }
 0x240   :  { %v2216_v32 = vadd.f32 %v4507_v48, %v2215_v30  ;;  %v4591_v47 = vld [vmem:[#allocation2_spill] sm:$0xff] }
 0x241   :  { %2442 = vst [vmem:[%s4584_s3 + $0x128] sm:$0xff] %v2393_v50  ;;  %v1767_v57 = vadd.f32 %v1718_v33, %v4199_v27  ;;  %v1719_v62 = vmax.f32 %v1638_v54, 0.0 }
 0x242   :  { %v2297_v31 = vmax.f32 %v2216_v32, 0.0 }
 0x243   :  { %v2345_v22 = vadd.f32 %v2296_v37, %v1767_v57  ;;  %v1768_v13 = vadd.f32 %v1719_v62, %v4207_v34 }
 0x244   :  { %v1642_v17 = vpop.f32.mrb[180].mxu0  ;;  %v2220_v51 = vpop.f32.mrb[180].mxu1 }
 0x245   :  { %v2394_v19 = vmul.f32 0.25, %v2345_v22  ;;  %v2346_v21 = vadd.f32 %v2297_v31, %v1768_v13  ;;  %v1643_v23 = vadd.f32 %v4507_v48, %v1642_v17  ;;  %v2221_v16 = vadd.f32 %v4507_v48, %v2220_v51  ;;  %v3210_v24 = vpop.f32.mrb[181].mxu0  ;;  %v3314_v28 = vpop.f32.mrb[181].mxu1  ;;  %v4592_v31 = vld [vmem:[#allocation3_spill] sm:$0xff] }
 0x246   :  { %v1645_v55 = vpop.f32.mrb[182].mxu0  ;;  %v2223_v46 = vpop.f32.mrb[182].mxu1 }
 0x247   :  { %2443 = vst [vmem:[%s4584_s3 + $0x130] sm:$0xff] %v2394_v19  ;;  %v2395_v27 = vmul.f32 0.25, %v2346_v21  ;;  %v1720_v58 = vmax.f32 %v1643_v23, 0.0  ;;  %v2298_v34 = vmax.f32 %v2221_v16, 0.0  ;;  %v1646_v53 = vadd.f32 %v4507_v48, %v1645_v55  ;;  %v3211_v5 = vpop.f32.mrb[183].mxu0  ;;  %v3315_v7 = vpop.f32.mrb[183].mxu1 }
 0x248   :  { %v2224_v9 = vadd.f32 %v4507_v48, %v2223_v46  ;;  %v4593_v21 = vld [vmem:[#allocation4_spill] sm:$0xff] }
 0x249   :  { %2444 = vst [vmem:[%s4584_s3 + $0x138] sm:$0xff] %v2395_v27  ;;  %v1769_v35 = vadd.f32 %v1720_v58, %v4219_v20  ;;  %v1721_v10 = vmax.f32 %v1646_v53, 0.0 }
 0x24a   :  { %v2299_v1 = vmax.f32 %v2224_v9, 0.0 }
 0x24b   :  { %v2347_v15 = vadd.f32 %v2298_v34, %v1769_v35  ;;  %v1770_v60 = vadd.f32 %v1721_v10, %v4227_v26 }
 0x24c   :  { %v1650_v3 = vpop.f32.mrb[184].mxu0  ;;  %v2228_v38 = vpop.f32.mrb[184].mxu1 }
 0x24d   :  { %v2396_v4 = vmul.f32 0.25, %v2347_v15  ;;  %v2348_v41 = vadd.f32 %v2299_v1, %v1770_v60  ;;  %v1651_v56 = vadd.f32 %v4507_v48, %v1650_v3  ;;  %v2229_v59 = vadd.f32 %v4507_v48, %v2228_v38  ;;  %v3214_v2 = vpop.f32.mrb[185].mxu0  ;;  %v3318_v18 = vpop.f32.mrb[185].mxu1  ;;  %v4594_v38 = vld [vmem:[#allocation5_spill] sm:$0xff] }
 0x24e   :  { %v1653_v63 = vpop.f32.mrb[186].mxu0  ;;  %v2231_v42 = vpop.f32.mrb[186].mxu1 }
 0x24f   :  { %2445 = vst [vmem:[%s4584_s3 + $0x140] sm:$0xff] %v2396_v4  ;;  %v2397_v20 = vmul.f32 0.25, %v2348_v41  ;;  %v1722_v12 = vmax.f32 %v1651_v56, 0.0  ;;  %v2300_v26 = vmax.f32 %v2229_v59, 0.0  ;;  %v1654_v49 = vadd.f32 %v4507_v48, %v1653_v63  ;;  %v3215_v0 = vpop.f32.mrb[187].mxu0  ;;  %v3319_v11 = vpop.f32.mrb[187].mxu1 }
 0x250   :  { %v2232_v25 = vadd.f32 %v4507_v48, %v2231_v42  ;;  %v4595_v59 = vld [vmem:[#allocation6_spill] sm:$0xff] }
 0x251   :  { %2446 = vst [vmem:[%s4584_s3 + $0x148] sm:$0xff] %v2397_v20  ;;  %v1771_v8 = vadd.f32 %v1722_v12, %v4244_v14  ;;  %v1723_v43 = vmax.f32 %v1654_v49, 0.0 }
 0x252   :  { %v2301_v6 = vmax.f32 %v2232_v25, 0.0 }
 0x253   :  { %v2349_v45 = vadd.f32 %v2300_v26, %v1771_v8  ;;  %v1772_v36 = vadd.f32 %v1723_v43, %v4591_v47 }
 0x254   :  { %v1658_v61 = vpop.f32.mrb[188].mxu0  ;;  %v2236_v40 = vpop.f32.mrb[188].mxu1 }
 0x255   :  { %v2398_v44 = vmul.f32 0.25, %v2349_v45  ;;  %v2350_v52 = vadd.f32 %v2301_v6, %v1772_v36  ;;  %v1659_v30 = vadd.f32 %v4507_v48, %v1658_v61  ;;  %v2237_v50 = vadd.f32 %v4507_v48, %v2236_v40  ;;  %v3218_v33 = vpop.f32.mrb[189].mxu0  ;;  %v3322_v37 = vpop.f32.mrb[189].mxu1  ;;  %v4596_v61 = vld [vmem:[#allocation7_spill] sm:$0xff] }
 0x256   :  { %v1661_v54 = vpop.f32.mrb[190].mxu0  ;;  %v2239_v29 = vpop.f32.mrb[190].mxu1 }
 0x257   :  { %2447 = vst [vmem:[%s4584_s3 + $0x150] sm:$0xff] %v2398_v44  ;;  %v2399_v14 = vmul.f32 0.25, %v2350_v52  ;;  %v1724_v39 = vmax.f32 %v1659_v30, 0.0  ;;  %v2302_v32 = vmax.f32 %v2237_v50, 0.0  ;;  %v1662_v57 = vadd.f32 %v4507_v48, %v1661_v54  ;;  %v3219_v62 = vpop.f32.mrb[191].mxu0  ;;  %v3323_v22 = vpop.f32.mrb[191].mxu1 }
 0x258   :  { %v2240_v13 = vadd.f32 %v4507_v48, %v2239_v29 }
 0x259   :  { %2448 = vst [vmem:[%s4584_s3 + $0x158] sm:$0xff] %v2399_v14  ;;  %v1773_v17 = vadd.f32 %v1724_v39, %v4592_v31  ;;  %v1725_v51 = vmax.f32 %v1662_v57, 0.0 }
 0x25a   :  { %v2303_v16 = vmax.f32 %v2240_v13, 0.0 }
 0x25b   :  { %v2351_v19 = vadd.f32 %v2302_v32, %v1773_v17  ;;  %v1774_v23 = vadd.f32 %v1725_v51, %v4593_v21 }
 0x25c   :  { %v1666_v24 = vpop.f32.mrb[192].mxu0  ;;  %v2244_v28 = vpop.f32.mrb[192].mxu1 }
 0x25d   :  { %v2400_v55 = vmul.f32 0.25, %v2351_v19  ;;  %v2352_v46 = vadd.f32 %v2303_v16, %v1774_v23  ;;  %v1667_v27 = vadd.f32 %v4507_v48, %v1666_v24  ;;  %v2245_v58 = vadd.f32 %v4507_v48, %v2244_v28  ;;  %v3222_v34 = vpop.f32.mrb[193].mxu0  ;;  %v3326_v53 = vpop.f32.mrb[193].mxu1 }
 0x25e   :  { %v1669_v5 = vpop.f32.mrb[194].mxu0  ;;  %v2247_v7 = vpop.f32.mrb[194].mxu1 }
 0x25f   :  { %2449 = vst [vmem:[%s4584_s3 + $0x160] sm:$0xff] %v2400_v55  ;;  %v2401_v9 = vmul.f32 0.25, %v2352_v46  ;;  %v1726_v35 = vmax.f32 %v1667_v27, 0.0  ;;  %v2304_v10 = vmax.f32 %v2245_v58, 0.0  ;;  %v1670_v15 = vadd.f32 %v4507_v48, %v1669_v5  ;;  %v3223_v60 = vpop.f32.mrb[195].mxu0  ;;  %v3327_v1 = vpop.f32.mrb[195].mxu1 }
 0x260   :  { %v2248_v3 = vadd.f32 %v4507_v48, %v2247_v7 }
 0x261   :  { %2450 = vst [vmem:[%s4584_s3 + $0x168] sm:$0xff] %v2401_v9  ;;  %v1775_v4 = vadd.f32 %v1726_v35, %v4594_v38  ;;  %v1727_v41 = vmax.f32 %v1670_v15, 0.0 }
 0x262   :  { %v2305_v18 = vmax.f32 %v2248_v3, 0.0 }
 0x263   :  { %v2353_v56 = vadd.f32 %v2304_v10, %v1775_v4  ;;  %v1776_v2 = vadd.f32 %v1727_v41, %v4595_v59 }
 0x264   :  { %v1674_v63 = vpop.f32.mrb[196].mxu0  ;;  %v2252_v42 = vpop.f32.mrb[196].mxu1 }
 0x265   :  { %v2402_v20 = vmul.f32 0.25, %v2353_v56  ;;  %v2354_v12 = vadd.f32 %v2305_v18, %v1776_v2  ;;  %v1675_v26 = vadd.f32 %v4507_v48, %v1674_v63  ;;  %v2253_v49 = vadd.f32 %v4507_v48, %v2252_v42  ;;  %v3226_v0 = vpop.f32.mrb[197].mxu0  ;;  %v3330_v11 = vpop.f32.mrb[197].mxu1 }
 0x266   :  { %v1677_v25 = vpop.f32.mrb[198].mxu0  ;;  %v2255_v8 = vpop.f32.mrb[198].mxu1 }
 0x267   :  { %2451 = vst [vmem:[%s4584_s3 + $0x170] sm:$0xff] %v2402_v20  ;;  %v2403_v43 = vmul.f32 0.25, %v2354_v12  ;;  %v1728_v45 = vmax.f32 %v1675_v26, 0.0  ;;  %v2306_v47 = vmax.f32 %v2253_v49, 0.0  ;;  %v3227_v36 = vpop.f32.mrb[199].mxu0  ;;  %v3331_v6 = vpop.f32.mrb[199].mxu1 }
 0x269   :  { %2452 = vst [vmem:[%s4584_s3 + $0x178] sm:$0xff] %v2403_v43  ;;  %v1777_v40 = vadd.f32 %v1728_v45, %v4596_v61 }
 0x26b   :  { %v2355_v48 = vadd.f32 %v2306_v47, %v1777_v40 }
 0x26d   :  { %v2404_v44 = vmul.f32 0.25, %v2355_v48 }
 0x26f   :  { %2453 = vst [vmem:[%s4584_s3 + $0x180] sm:$0xff] %v2404_v44 }

// kernel: lenet5_forward.3
= control target key start
LH: loop header
LB: loop body
LE: loop exit
PB: predicated region body
PF: predicated region fallthrough
CT: control target
= control target key end

     0   :  { %v4961_v1 = vmov 0   ;;  %vm157_vm0 = vcmask 179200   ;;  %vm170_vm1 = vcmask 1042432   ;;  %v4962_v48 = vmov 0.0   ;;  %s6241_s0 = inlined_call_operand.vmem [shape: bf16[4,50,150], index: 0, kind: input, shape index: {}]   ;;  %s6242_s1 = inlined_call_operand.vmem [shape: bf16[150,128], index: 1, kind: input, shape index: {}]   ;;  %s6243_s2 = inlined_call_operand.vmem [shape: f32[1,128], index: 2, kind: input, shape index: {}]   ;;  %s6244_s3 = inlined_call_operand.vmem [shape: bf16[3200,128], index: 3, kind: input, shape index: {}]   ;;  %s6245_s4 = inlined_call_operand.vmem [shape: f32[1,128], index: 4, kind: input, shape index: {}]   ;;  %s6246_s5 = inlined_call_operand.vmem [shape: bf16[128,128], index: 5, kind: input, shape index: {}]   ;;  %s6247_s6 = inlined_call_operand.vmem [shape: f32[1,128], index: 6, kind: input, shape index: {}]   ;;  %s6248_s7 = inlined_call_operand.vmem [shape: bf16[128,128], index: 7, kind: input, shape index: {}]   ;;  %s6249_s8 = inlined_call_operand.vmem [shape: f32[1,128], index: 8, kind: input, shape index: {}]   ;;  %s6250_s9 = inlined_call_operand.hbm [shape: f32[2,128], index: 9, kind: output, shape index: {}]  }
   0x1   :  { %v5018_v0 = vld [vmem:[%s6242_s1] sm:$0xff]   ;;  %174 = vmatprep.subr.bf16.mxu0 %v4961_v1  ;;  %305 = vmatprep.subr.bf16.mxu1 %v4961_v1  ;;  %v5027_v2 = vld [vmem:[%s6242_s1 + $0x8] sm:$0xff]   ;;  %v5036_v3 = vld [vmem:[%s6242_s1 + $0x10] sm:$0xff]  }
   0x2   :  { %175 = vmatpush1.bf16.msra.mxu0 %v5018_v0  ;;  %306 = vmatpush1.bf16.msra.mxu1 %v5018_v0  ;;  %v5045_v4 = vld [vmem:[%s6242_s1 + $0x18] sm:$0xff]   ;;  %v4679_v5 = vld [vmem:[%s6241_s0 + $0x4] ss:$8 sps:$4 sm:$0xff]   ;;  %v5080_v9 = vld [vmem:[%s6242_s1 + $0x30] sm:$0xff]  }
   0x3   :  { %176 = vmatprep.subr.bf16.mxu0 %v4961_v1  ;;  %307 = vmatprep.subr.bf16.mxu1 %v4961_v1  ;;  %v4682_v6 = vld [vmem:[%s6241_s0 + $0x3c] ss:$8 sps:$4 sm:$0xff]   ;;  %v5071_v8 = vld [vmem:[%s6242_s1 + $0x28] sm:$0xff]   ;;  %v4680_v15 = vld [vmem:[%s6241_s0 + $0x38] ss:$8 sps:$4 sm:$0xff]  }
   0x4   :  { %3600 = vmatprep.mubr.msk.bf16.mxu0 %vm157_vm0, %v4679_v5  ;;  %v5061_v7 = vld [vmem:[%s6242_s1 + $0x20] sm:$0xff]   ;;  %3619 = vmatprep.mubr.msk.bf16.mxu1 %vm157_vm0, %v4682_v6  ;;  %v4676_v10 = vld [vmem:[%s6242_s1 + $0x48] ss:$0 sps:$4 sm:$0x77]   ;;  %v5092_v11 = vld [vmem:[%s6242_s1 + $0x38] sm:$0xff]  }
   0x5   :  { %v5096_v12 = vsel %vm170_vm1, %v4676_v10, 0  ;;  %v5101_v13 = vld [vmem:[%s6242_s1 + $0x40] sm:$0xff]   ;;  %v4683_v16 = vld [vmem:[%s6241_s0 + $0x14] ss:$8 sps:$4 sm:$0xff]   ;;  %v4685_v18 = vld [vmem:[%s6241_s0 + $0x10] ss:$8 sps:$4 sm:$0xff]  }
   0x6   :  { %177 = vmatpush1.bf16.msra.mxu0 %v5027_v2  ;;  %308 = vmatpush1.bf16.msra.mxu1 %v5027_v2  ;;  %v4677_v14 = vld [vmem:[%s6241_s0] ss:$8 sps:$4 sm:$0xff]   ;;  %v4686_v17 = vld [vmem:[%s6241_s0 + $0x4c] ss:$8 sps:$4 sm:$0xff]   ;;  %v4692_v21 = vld [vmem:[%s6241_s0 + $0x5c] ss:$8 sps:$4 sm:$0xff]  }
   0x7   :  { %178 = vmatprep.subr.bf16.mxu0 %v4961_v1  ;;  %309 = vmatprep.subr.bf16.mxu1 %v4961_v1  ;;  %v4688_v19 = vld [vmem:[%s6241_s0 + $0x48] ss:$8 sps:$4 sm:$0xff]   ;;  %v4689_v20 = vld [vmem:[%s6241_s0 + $0x24] ss:$8 sps:$4 sm:$0xff]   ;;  %v4694_v23 = vld [vmem:[%s6241_s0 + $0x58] ss:$8 sps:$4 sm:$0xff]  }
   0x8   :  { %v4691_v22 = vld [vmem:[%s6241_s0 + $0x20] ss:$8 sps:$4 sm:$0xff]   ;;  %v60_v24 = vld [vmem:[%s6241_s0 + $0x30] sm:$0x11]  ;;  %v4705_v34 = vld [vmem:[%s6241_s0 + $0x84] ss:$8 sps:$4 sm:$0xff]  }
   0x9   :  { %v3610_v25 = vld [vmem:[%s6241_s0 + $0x68] sm:$0x11]  ;;  %v3589_v26 = vcombine.high %v60_v24, %v60_v24  ;;  %v3588_v28 = vcombine.low %v60_v24, %v60_v24  ;;  %v4701_v30 = vld [vmem:[%s6241_s0 + $0x74] ss:$8 sps:$4 sm:$0xff]   ;;  %v4699_v32 = vld [vmem:[%s6241_s0 + $0x70] ss:$8 sps:$4 sm:$0xff]  }
   0xa   :  { %179 = vmatpush1.bf16.msra.mxu0 %v5036_v3  ;;  %310 = vmatpush1.bf16.msra.mxu1 %v5036_v3  ;;  %v3618_v27 = vcombine.high %v3610_v25, %v3610_v25  ;;  %v3617_v29 = vcombine.low %v3610_v25, %v3610_v25  ;;  %v4704_v31 = vld [vmem:[%s6241_s0 + $0xac] ss:$8 sps:$4 sm:$0xff]   ;;  %v4702_v33 = vld [vmem:[%s6241_s0 + $0xa8] ss:$8 sps:$4 sm:$0xff]   ;;  %v4708_v35 = vld [vmem:[%s6241_s0 + $0xbc] ss:$8 sps:$4 sm:$0xff]  }
   0xb   :  { %180 = vmatprep.subr.bf16.mxu0 %v4961_v1  ;;  %311 = vmatprep.subr.bf16.mxu1 %v4961_v1  ;;  %v4707_v36 = vld [vmem:[%s6241_s0 + $0x80] ss:$8 sps:$4 sm:$0xff]   ;;  %v4711_v38 = vld [vmem:[%s6241_s0 + $0x94] ss:$8 sps:$4 sm:$0xff]   ;;  %v4713_v42 = vld [vmem:[%s6241_s0 + $0x90] ss:$8 sps:$4 sm:$0xff]  }
   0xc   :  { %v4710_v37 = vld [vmem:[%s6241_s0 + $0xb8] ss:$8 sps:$4 sm:$0xff]   ;;  %v4714_v39 = vld [vmem:[%s6241_s0 + $0xcc] ss:$8 sps:$4 sm:$0xff]   ;;  %v4716_v43 = vld [vmem:[%s6241_s0 + $0xc8] ss:$8 sps:$4 sm:$0xff]  }
   0xd   :  { %v3629_v40 = vld [vmem:[%s6241_s0 + $0xa0] sm:$0x11]  ;;  %v3648_v41 = vld [vmem:[%s6241_s0 + $0xd8] sm:$0x11]  ;;  %v4723_v51 = vld [vmem:[%s6244_s3 + $0x48] sm:$0xff]  }
   0xe   :  { %181 = vmatpush1.bf16.msra.mxu0 %v5045_v4  ;;  %312 = vmatpush1.bf16.msra.mxu1 %v5045_v4  ;;  %v3637_v44 = vcombine.high %v3629_v40, %v3629_v40  ;;  %v3656_v45 = vcombine.high %v3648_v41, %v3648_v41  ;;  %v3636_v46 = vcombine.low %v3629_v40, %v3629_v40  ;;  %v4721_v49 = vld [vmem:[%s6244_s3 + $0x40] sm:$0xff]   ;;  %v4724_v52 = vld [vmem:[%s6244_s3 + $0x8] sm:$0xff]   ;;  %v4725_v53 = vld [vmem:[%s6244_s3 + $0x50] sm:$0xff]  }
   0xf   :  { %182 = vmatprep.subr.bf16.mxu0 %v4961_v1  ;;  %313 = vmatprep.subr.bf16.mxu1 %v4961_v1  ;;  %v3655_v47 = vcombine.low %v3648_v41, %v3648_v41  ;;  %v4722_v50 = vld [vmem:[%s6244_s3] sm:$0xff]   ;;  %v4726_v54 = vld [vmem:[%s6244_s3 + $0x10] sm:$0xff]   ;;  %v4727_v55 = vld [vmem:[%s6244_s3 + $0x58] sm:$0xff]  }
  0x10   :  { %v4728_v56 = vld [vmem:[%s6244_s3 + $0x18] sm:$0xff]   ;;  %v4729_v57 = vld [vmem:[%s6244_s3 + $0x60] sm:$0xff]   ;;  %v4731_v59 = vld [vmem:[%s6244_s3 + $0x68] sm:$0xff]  }
  0x11   :  { %v4730_v58 = vld [vmem:[%s6244_s3 + $0x20] sm:$0xff]   ;;  %v4732_v60 = vld [vmem:[%s6244_s3 + $0x28] sm:$0xff]   ;;  %v4733_v61 = vld [vmem:[%s6244_s3 + $0x70] sm:$0xff]  }
  0x12   :  { %183 = vmatpush1.bf16.msra.mxu0 %v5061_v7  ;;  %314 = vmatpush1.bf16.msra.mxu1 %v5061_v7  ;;  %v4734_v62 = vld [vmem:[%s6244_s3 + $0x30] sm:$0xff]  }
  0x13   :  { %184 = vmatprep.subr.bf16.mxu0 %v4961_v1  ;;  %315 = vmatprep.subr.bf16.mxu1 %v4961_v1 }
  0x16   :  { %185 = vmatpush1.bf16.msra.mxu0 %v5071_v8  ;;  %316 = vmatpush1.bf16.msra.mxu1 %v5071_v8 }
  0x17   :  { %186 = vmatprep.subr.bf16.mxu0 %v4961_v1  ;;  %317 = vmatprep.subr.bf16.mxu1 %v4961_v1 }
  0x1a   :  { %187 = vmatpush1.bf16.msra.mxu0 %v5080_v9  ;;  %318 = vmatpush1.bf16.msra.mxu1 %v5080_v9 }
  0x1b   :  { %188 = vmatprep.subr.bf16.mxu0 %v4961_v1  ;;  %319 = vmatprep.subr.bf16.mxu1 %v4961_v1 }
  0x1e   :  { %189 = vmatpush1.bf16.msra.mxu0 %v5092_v11  ;;  %320 = vmatpush1.bf16.msra.mxu1 %v5092_v11 }
  0x1f   :  { %190 = vmatprep.subr.bf16.mxu0 %v4961_v1  ;;  %321 = vmatprep.subr.bf16.mxu1 %v4961_v1 }
  0x22   :  { %191 = vmatpush1.bf16.msra.mxu0 %v5101_v13  ;;  %322 = vmatpush1.bf16.msra.mxu1 %v5101_v13 }
  0x23   :  { %192 = vmatprep.subr.bf16.mxu0 %v4961_v1  ;;  %323 = vmatprep.subr.bf16.mxu1 %v4961_v1 }
  0x26   :  { %193 = vmatpush1.bf16.msra.mxu0 %v5096_v12  ;;  %324 = vmatpush1.bf16.msra.mxu1 %v5096_v12 }
  0x27   :  { %436 = vmatprep.subr.bf16.mxu0 %v4961_v1  ;;  %567 = vmatprep.subr.bf16.mxu1 %v4961_v1 }
  0x29   :  { %207 = vmatmul.mubr.bf16.vlgmr.msra.gmra.mrb[0].mxu0 %v4677_v14  ;;  %338 = vmatmul.mubr.bf16.vlgmr.msra.gmra.mrb[0].mxu1 %v4680_v15 }
  0x2a   :  { %437 = vmatpush1.bf16.msra.mxu0 %v5018_v0  ;;  %568 = vmatpush1.bf16.msra.mxu1 %v5018_v0 }
  0x2b   :  { %438 = vmatprep.subr.bf16.mxu0 %v4961_v1  ;;  %569 = vmatprep.subr.bf16.mxu1 %v4961_v1 }
  0x2c   :  { %3601 = vmatprep.mubr.msk.bf16.mxu0 %vm157_vm0, %v4683_v16  ;;  %3620 = vmatprep.mubr.msk.bf16.mxu1 %vm157_vm0, %v4686_v17 }
  0x2e   :  { %439 = vmatpush1.bf16.msra.mxu0 %v5027_v2  ;;  %570 = vmatpush1.bf16.msra.mxu1 %v5027_v2 }
  0x2f   :  { %440 = vmatprep.subr.bf16.mxu0 %v4961_v1  ;;  %571 = vmatprep.subr.bf16.mxu1 %v4961_v1 }
  0x31   :  { %215 = vmatmul.mubr.bf16.gmra.mrb[4].mxu0 %v4685_v18  ;;  %346 = vmatmul.mubr.bf16.gmra.mrb[4].mxu1 %v4688_v19 }
  0x32   :  { %441 = vmatpush1.bf16.msra.mxu0 %v5036_v3  ;;  %572 = vmatpush1.bf16.msra.mxu1 %v5036_v3 }
  0x33   :  { %442 = vmatprep.subr.bf16.mxu0 %v4961_v1  ;;  %573 = vmatprep.subr.bf16.mxu1 %v4961_v1 }
  0x34   :  { %3602 = vmatprep.mubr.msk.bf16.mxu0 %vm157_vm0, %v4689_v20  ;;  %3621 = vmatprep.mubr.msk.bf16.mxu1 %vm157_vm0, %v4692_v21 }
  0x36   :  { %443 = vmatpush1.bf16.msra.mxu0 %v5045_v4  ;;  %574 = vmatpush1.bf16.msra.mxu1 %v5045_v4 }
  0x37   :  { %444 = vmatprep.subr.bf16.mxu0 %v4961_v1  ;;  %575 = vmatprep.subr.bf16.mxu1 %v4961_v1 }
  0x39   :  { %223 = vmatmul.mubr.bf16.gmra.mrb[8].mxu0 %v4691_v22  ;;  %354 = vmatmul.mubr.bf16.gmra.mrb[8].mxu1 %v4694_v23 }
  0x3a   :  { %445 = vmatpush1.bf16.msra.mxu0 %v5061_v7  ;;  %576 = vmatpush1.bf16.msra.mxu1 %v5061_v7 }
  0x3b   :  { %446 = vmatprep.subr.bf16.mxu0 %v4961_v1  ;;  %577 = vmatprep.subr.bf16.mxu1 %v4961_v1 }
  0x3c   :  { %3603 = vmatprep.mubr.msk.bf16.mxu0 %vm157_vm0, %v3589_v26  ;;  %3622 = vmatprep.mubr.msk.bf16.mxu1 %vm157_vm0, %v3618_v27 }
  0x3e   :  { %447 = vmatpush1.bf16.msra.mxu0 %v5071_v8  ;;  %578 = vmatpush1.bf16.msra.mxu1 %v5071_v8 }
  0x3f   :  { %448 = vmatprep.subr.bf16.mxu0 %v4961_v1  ;;  %579 = vmatprep.subr.bf16.mxu1 %v4961_v1 }
  0x41   :  { %231 = vmatmul.mubr.bf16.gmra.mrb[12].mxu0 %v3588_v28  ;;  %362 = vmatmul.mubr.bf16.gmra.mrb[12].mxu1 %v3617_v29 }
  0x42   :  { %449 = vmatpush1.bf16.msra.mxu0 %v5080_v9  ;;  %580 = vmatpush1.bf16.msra.mxu1 %v5080_v9 }
  0x43   :  { %450 = vmatprep.subr.bf16.mxu0 %v4961_v1  ;;  %581 = vmatprep.subr.bf16.mxu1 %v4961_v1 }
  0x44   :  { %3638 = vmatprep.mubr.msk.bf16.mxu0 %vm157_vm0, %v4701_v30  ;;  %3657 = vmatprep.mubr.msk.bf16.mxu1 %vm157_vm0, %v4704_v31 }
  0x46   :  { %451 = vmatpush1.bf16.msra.mxu0 %v5092_v11  ;;  %582 = vmatpush1.bf16.msra.mxu1 %v5092_v11 }
  0x47   :  { %452 = vmatprep.subr.bf16.mxu0 %v4961_v1  ;;  %583 = vmatprep.subr.bf16.mxu1 %v4961_v1 }
  0x4a   :  { %453 = vmatpush1.bf16.msra.mxu0 %v5101_v13  ;;  %584 = vmatpush1.bf16.msra.mxu1 %v5101_v13 }
  0x4b   :  { %454 = vmatprep.subr.bf16.mxu0 %v4961_v1  ;;  %585 = vmatprep.subr.bf16.mxu1 %v4961_v1 }
  0x4e   :  { %455 = vmatpush1.bf16.msra.mxu0 %v5096_v12  ;;  %586 = vmatpush1.bf16.msra.mxu1 %v5096_v12 }
  0x4f   :  { %4123 = vmatprep.subr.bf16.mxu0 %v4962_v48  ;;  %4143 = vmatprep.subr.bf16.mxu1 %v4962_v48 }
  0x51   :  { %469 = vmatmul.mubr.bf16.vlgmr.msra.gmra.mrb[16].mxu0 %v4699_v32  ;;  %600 = vmatmul.mubr.bf16.vlgmr.msra.gmra.mrb[16].mxu1 %v4702_v33 }
  0x52   :  { %3639 = vmatprep.mubr.msk.bf16.mxu0 %vm157_vm0, %v4705_v34  ;;  %3658 = vmatprep.mubr.msk.bf16.mxu1 %vm157_vm0, %v4708_v35 }
  0x53   :  { %4124 = vmatpush3.bf16.msra.mxu0 %v4721_v49  ;;  %4144 = vmatpush3.bf16.msra.mxu1 %v4722_v50 }
  0x54   :  { %4125 = vmatprep.subr.bf16.mxu0 %v4962_v48  ;;  %4145 = vmatprep.subr.bf16.mxu1 %v4962_v48 }
  0x57   :  { %4126 = vmatpush3.bf16.msra.mxu0 %v4723_v51  ;;  %4146 = vmatpush3.bf16.msra.mxu1 %v4724_v52 }
  0x58   :  { %4127 = vmatprep.subr.bf16.mxu0 %v4962_v48  ;;  %4147 = vmatprep.subr.bf16.mxu1 %v4962_v48 }
  0x59   :  { %477 = vmatmul.mubr.bf16.gmra.mrb[20].mxu0 %v4707_v36  ;;  %608 = vmatmul.mubr.bf16.gmra.mrb[20].mxu1 %v4710_v37 }
  0x5a   :  { %3640 = vmatprep.mubr.msk.bf16.mxu0 %vm157_vm0, %v4711_v38  ;;  %3659 = vmatprep.mubr.msk.bf16.mxu1 %vm157_vm0, %v4714_v39 }
  0x5b   :  { %4128 = vmatpush3.bf16.msra.mxu0 %v4725_v53  ;;  %4148 = vmatpush3.bf16.msra.mxu1 %v4726_v54 }
  0x5c   :  { %4129 = vmatprep.subr.bf16.mxu0 %v4962_v48  ;;  %4149 = vmatprep.subr.bf16.mxu1 %v4962_v48 }
  0x5f   :  { %4130 = vmatpush3.bf16.msra.mxu0 %v4727_v55  ;;  %4150 = vmatpush3.bf16.msra.mxu1 %v4728_v56 }
  0x60   :  { %4131 = vmatprep.subr.bf16.mxu0 %v4962_v48  ;;  %4151 = vmatprep.subr.bf16.mxu1 %v4962_v48 }
  0x61   :  { %485 = vmatmul.mubr.bf16.gmra.mrb[24].mxu0 %v4713_v42  ;;  %616 = vmatmul.mubr.bf16.gmra.mrb[24].mxu1 %v4716_v43 }
  0x62   :  { %3641 = vmatprep.mubr.msk.bf16.mxu0 %vm157_vm0, %v3637_v44  ;;  %3660 = vmatprep.mubr.msk.bf16.mxu1 %vm157_vm0, %v3656_v45 }
  0x63   :  { %4132 = vmatpush3.bf16.msra.mxu0 %v4729_v57  ;;  %4152 = vmatpush3.bf16.msra.mxu1 %v4730_v58 }
  0x64   :  { %4133 = vmatprep.subr.bf16.mxu0 %v4962_v48  ;;  %4153 = vmatprep.subr.bf16.mxu1 %v4962_v48 }
  0x67   :  { %4134 = vmatpush3.bf16.msra.mxu0 %v4731_v59  ;;  %4154 = vmatpush3.bf16.msra.mxu1 %v4732_v60 }
  0x68   :  { %4135 = vmatprep.subr.bf16.mxu0 %v4962_v48  ;;  %4155 = vmatprep.subr.bf16.mxu1 %v4962_v48 }
  0x69   :  { %493 = vmatmul.mubr.bf16.gmra.mrb[28].mxu0 %v3636_v46  ;;  %624 = vmatmul.mubr.bf16.gmra.mrb[28].mxu1 %v3655_v47 }
  0x6a   :  { %14 = vsyncpa [#allocation4], 0  ;;  %v4735_v63 = vld [vmem:[%s6244_s3 + $0x78] sm:$0xff]   ;;  %vm4963_vm2 = vmmov 0   ;;  %v5318_v1 = vld [vmem:[%s6243_s2] ss:$0 sm:$0xff] }
  0x6b   :  { %4136 = vmatpush3.bf16.msra.mxu0 %v4733_v61  ;;  %4156 = vmatpush3.bf16.msra.mxu1 %v4734_v62  ;;  %v4736_v0 = vld [vmem:[%s6244_s3 + $0x38] sm:$0xff]   ;;  %s4964_s23 = smov [#allocation3]  }
  0x6c   :  { %4137 = vmatprep.subr.bf16.mxu0 %v4962_v48  ;;  %4157 = vmatprep.subr.bf16.mxu1 %v4962_v48  ;;  %s3573_s24 = sshll.u32 %s4964_s23, 4  ;;  %s3574_s24 = int_to_ptr.vmem [resolvable:$true] %s3573_s24 }
  0x6d   :  { %4139 = vmatprep.mubr.msk.bf16.mxu0 %vm4963_vm2, %v4962_v48  ;;  %4159 = vmatprep.mubr.msk.bf16.mxu1 %vm4963_vm2, %v4962_v48  ;;  %p4942_p1 = scmp.lt.s32.totalorder %s3574_s24, %s3574_s24 }
  0x6f   :  { %4138 = vmatpush3.bf16.msra.mxu0 %v4735_v63  ;;  %4158 = vmatpush3.bf16.msra.mxu1 %v4736_v0 }
  0x70   :  { %4163 = vmatprep.subr.bf16.mxu0 %v4962_v48  ;;  %4183 = vmatprep.subr.bf16.mxu1 %v4962_v48 }
  0xfc   :  { %v208_v2 = vpop.f32.mrb[0].mxu0  ;;  %v339_v3 = vpop.f32.mrb[0].mxu1 }
  0xfd   :  { %v209_v4 = vadd.f32 %v5318_v1, %v208_v2  ;;  %v340_v5 = vadd.f32 %v5318_v1, %v339_v3  ;;  %v210_v6 = vpop.f32.mrb[1].mxu0  ;;  %v341_v7 = vpop.f32.mrb[1].mxu1 }
  0xfe   :  { %v211_v8 = vpop.f32.mrb[2].mxu0  ;;  %v342_v9 = vpop.f32.mrb[2].mxu1 }
  0xff   :  { %v238_v10 = vmax.f32 %v209_v4, 0.0  ;;  %v369_v11 = vmax.f32 %v340_v5, 0.0  ;;  %v212_v12 = vadd.f32 %v5318_v1, %v211_v8  ;;  %v343_v13 = vadd.f32 %v5318_v1, %v342_v9  ;;  %v213_v14 = vpop.f32.mrb[3].mxu0  ;;  %v344_v15 = vpop.f32.mrb[3].mxu1 }
 0x101   :  { %v5324_v16 = vadd.f32 %v369_v11, %v238_v10  ;;  %v239_v17 = vmax.f32 %v212_v12, 0.0  ;;  %v370_v18 = vmax.f32 %v343_v13, 0.0 }
 0x103   :  { %v5326_v19 = vadd.f32 %v370_v18, %v239_v17 }
 0x104   :  { %v216_v20 = vpop.f32.mrb[4].mxu0  ;;  %v347_v21 = vpop.f32.mrb[4].mxu1 }
 0x105   :  { %v217_v22 = vadd.f32 %v5318_v1, %v216_v20  ;;  %v218_v23 = vpop.f32.mrb[5].mxu0  ;;  %v348_v24 = vadd.f32 %v5318_v1, %v347_v21  ;;  %v349_v25 = vpop.f32.mrb[5].mxu1 }
 0x106   :  { %v219_v26 = vpop.f32.mrb[6].mxu0  ;;  %v350_v27 = vpop.f32.mrb[6].mxu1 }
 0x107   :  { %v240_v28 = vmax.f32 %v217_v22, 0.0  ;;  %v371_v29 = vmax.f32 %v348_v24, 0.0  ;;  %v220_v30 = vadd.f32 %v5318_v1, %v219_v26  ;;  %v221_v31 = vpop.f32.mrb[7].mxu0  ;;  %v351_v32 = vadd.f32 %v5318_v1, %v350_v27  ;;  %v352_v33 = vpop.f32.mrb[7].mxu1 }
 0x109   :  { %v5332_v34 = vadd.f32 %v371_v29, %v240_v28  ;;  %v241_v35 = vmax.f32 %v220_v30, 0.0  ;;  %v372_v36 = vmax.f32 %v351_v32, 0.0 }
 0x10b   :  { %v5334_v37 = vadd.f32 %v372_v36, %v241_v35 }
 0x10c   :  { %v224_v38 = vpop.f32.mrb[8].mxu0  ;;  %v355_v39 = vpop.f32.mrb[8].mxu1 }
 0x10d   :  { %v225_v40 = vadd.f32 %v5318_v1, %v224_v38  ;;  %v226_v41 = vpop.f32.mrb[9].mxu0  ;;  %v356_v42 = vadd.f32 %v5318_v1, %v355_v39  ;;  %v357_v43 = vpop.f32.mrb[9].mxu1 }
 0x10e   :  { %v227_v44 = vpop.f32.mrb[10].mxu0  ;;  %v358_v45 = vpop.f32.mrb[10].mxu1 }
 0x10f   :  { %v242_v46 = vmax.f32 %v225_v40, 0.0  ;;  %v373_v47 = vmax.f32 %v356_v42, 0.0  ;;  %v228_v49 = vadd.f32 %v5318_v1, %v227_v44  ;;  %v229_v50 = vpop.f32.mrb[11].mxu0  ;;  %v359_v51 = vadd.f32 %v5318_v1, %v358_v45  ;;  %v360_v52 = vpop.f32.mrb[11].mxu1 }
 0x111   :  { %v5340_v53 = vadd.f32 %v373_v47, %v242_v46  ;;  %v243_v54 = vmax.f32 %v228_v49, 0.0  ;;  %v374_v55 = vmax.f32 %v359_v51, 0.0 }
 0x113   :  { %v5342_v56 = vadd.f32 %v374_v55, %v243_v54 }
 0x114   :  { %v232_v57 = vpop.f32.mrb[12].mxu0  ;;  %v363_v58 = vpop.f32.mrb[12].mxu1 }
 0x115   :  { %v233_v59 = vadd.f32 %v5318_v1, %v232_v57  ;;  %v234_v60 = vpop.f32.mrb[13].mxu0  ;;  %v364_v61 = vadd.f32 %v5318_v1, %v363_v58  ;;  %v365_v62 = vpop.f32.mrb[13].mxu1 }
 0x116   :  { %v235_v63 = vpop.f32.mrb[14].mxu0  ;;  %v366_v0 = vpop.f32.mrb[14].mxu1 }
 0x117   :  { %v244_v2 = vmax.f32 %v233_v59, 0.0  ;;  %v375_v3 = vmax.f32 %v364_v61, 0.0  ;;  %v236_v4 = vpop.f32.mrb[15].mxu0  ;;  %v367_v5 = vpop.f32.mrb[15].mxu1  ;;  %v4737_v61 = vld [vmem:[%s6244_s3 + $0x80] sm:$0xff]  }
 0x118   :  { %v4738_v5 = vld [vmem:[%s6244_s3 + $0xc0] sm:$0xff]  }
 0x119   :  { %v5346_v6 = vadd.f32 %v375_v3, %v244_v2 }
 0x124   :  { %v470_v7 = vpop.f32.mrb[16].mxu0  ;;  %v601_v8 = vpop.f32.mrb[16].mxu1 }
 0x125   :  { %v471_v9 = vadd.f32 %v5318_v1, %v470_v7  ;;  %v602_v10 = vadd.f32 %v5318_v1, %v601_v8  ;;  %v472_v11 = vpop.f32.mrb[17].mxu0  ;;  %v603_v12 = vpop.f32.mrb[17].mxu1 }
 0x126   :  { %v473_v13 = vpop.f32.mrb[18].mxu0  ;;  %v604_v14 = vpop.f32.mrb[18].mxu1 }
 0x127   :  { %v500_v15 = vmax.f32 %v471_v9, 0.0  ;;  %v631_v17 = vmax.f32 %v602_v10, 0.0  ;;  %v474_v18 = vadd.f32 %v5318_v1, %v473_v13  ;;  %v605_v20 = vadd.f32 %v5318_v1, %v604_v14  ;;  %v475_v21 = vpop.f32.mrb[19].mxu0  ;;  %v606_v22 = vpop.f32.mrb[19].mxu1 }
 0x129   :  { %v507_v23 = vadd.f32 %v500_v15, %v5324_v16  ;;  %v501_v24 = vmax.f32 %v474_v18, 0.0  ;;  %v632_v27 = vmax.f32 %v605_v20, 0.0  ;;  %v4739_v18 = vld [vmem:[%s6244_s3 + $0x88] sm:$0xff]  }
 0x12a   :  { %v4740_v20 = vld [vmem:[%s6244_s3 + $0xc8] sm:$0xff]  }
 0x12b   :  { %v638_v25 = vadd.f32 %v631_v17, %v507_v23  ;;  %v508_v26 = vadd.f32 %v501_v24, %v5326_v19 }
 0x12c   :  { %v478_v28 = vpop.f32.mrb[20].mxu0  ;;  %v609_v29 = vpop.f32.mrb[20].mxu1 }
 0x12d   :  { %v645_v30 = vmul.f32 0.25, %v638_v25  ;;  %v639_v31 = vadd.f32 %v632_v27, %v508_v26  ;;  %v479_v32 = vadd.f32 %v5318_v1, %v478_v28  ;;  %v480_v33 = vpop.f32.mrb[21].mxu0  ;;  %v610_v35 = vadd.f32 %v5318_v1, %v609_v29  ;;  %v611_v36 = vpop.f32.mrb[21].mxu1 }
 0x12e   :  { %v481_v38 = vpop.f32.mrb[22].mxu0  ;;  %v612_v39 = vpop.f32.mrb[22].mxu1 }
 0x12f   :  { %652 = vst [vmem:[#allocation2] sm:$0xff] %v645_v30  ;;  %v646_v40 = vmul.f32 0.25, %v639_v31  ;;  %v502_v16 = vmax.f32 %v479_v32, 0.0  ;;  %v482_v41 = vadd.f32 %v5318_v1, %v481_v38  ;;  %v633_v42 = vmax.f32 %v610_v35, 0.0  ;;  %v483_v19 = vpop.f32.mrb[23].mxu0  ;;  %v614_v43 = vpop.f32.mrb[23].mxu1 }
 0x130   :  { %v613_v44 = vadd.f32 %v5318_v1, %v612_v39  ;;  %v4741_v30 = vld [vmem:[%s6244_s3 + $0x90] sm:$0xff]   ;;  %v4743_v39 = vld [vmem:[%s6244_s3 + $0x98] sm:$0xff]   ;;  %v4748_v19 = vld [vmem:[%s6244_s3 + $0xe8] sm:$0xff]  }
 0x131   :  { %653 = vst [vmem:[#allocation2 + $0x8] sm:$0xff] %v646_v40  ;;  %v509_v45 = vadd.f32 %v502_v16, %v5332_v34  ;;  %v503_v46 = vmax.f32 %v482_v41, 0.0  ;;  %v4744_v40 = vld [vmem:[%s6244_s3 + $0xd8] sm:$0xff]   ;;  %v4746_v41 = vld [vmem:[%s6244_s3 + $0xe0] sm:$0xff]   ;;  %v4749_v43 = vld [vmem:[%s6244_s3 + $0xb0] sm:$0xff]  }
 0x132   :  { %v634_v47 = vmax.f32 %v613_v44, 0.0  ;;  %v4750_v44 = vld [vmem:[%s6244_s3 + $0xf0] sm:$0xff]  }
 0x133   :  { %v510_v49 = vadd.f32 %v503_v46, %v5334_v37  ;;  %v640_v50 = vadd.f32 %v633_v42, %v509_v45  ;;  %v4747_v42 = vld [vmem:[%s6244_s3 + $0xa8] sm:$0xff]   ;;  %v4751_v45 = vld [vmem:[%s6244_s3 + $0xb8] sm:$0xff]  }
 0x134   :  { %v486_v51 = vpop.f32.mrb[24].mxu0  ;;  %v617_v52 = vpop.f32.mrb[24].mxu1  ;;  %v4752_v46 = vld [vmem:[%s6244_s3 + $0xf8] sm:$0xff]  }
 0x135   :  { %v647_v54 = vmul.f32 0.25, %v640_v50  ;;  %v641_v55 = vadd.f32 %v634_v47, %v510_v49  ;;  %v487_v57 = vadd.f32 %v5318_v1, %v486_v51  ;;  %v488_v58 = vpop.f32.mrb[25].mxu0  ;;  %v618_v59 = vadd.f32 %v5318_v1, %v617_v52  ;;  %v619_v60 = vpop.f32.mrb[25].mxu1  ;;  %v4753_v50 = vld [vmem:[%s6244_s3 + $0x100] sm:$0xff]  }
 0x136   :  { %v489_v34 = vpop.f32.mrb[26].mxu0  ;;  %v620_v62 = vpop.f32.mrb[26].mxu1  ;;  %v677_v63 = vld [vmem:[#allocation2 + $0x2] sm:$0x3]  ;;  %v659_v0 = vld [vmem:[#allocation2] sm:$0x3] }
 0x137   :  { %654 = vst [vmem:[#allocation2 + $0x10] sm:$0xff] %v647_v54  ;;  %v648_v37 = vmul.f32 0.25, %v641_v55  ;;  %v504_v2 = vmax.f32 %v487_v57, 0.0  ;;  %v490_v3 = vadd.f32 %v5318_v1, %v489_v34  ;;  %v635_v4 = vmax.f32 %v618_v59, 0.0  ;;  %v491_v7 = vpop.f32.mrb[27].mxu0  ;;  %v622_v8 = vpop.f32.mrb[27].mxu1 }
 0x138   :  { %v621_v9 = vadd.f32 %v5318_v1, %v620_v62  ;;  %v678_v10 = vpack.c.bf16 %v677_v63, %v677_v63  ;;  %v660_v11 = vpack.c.bf16 %v659_v0, %v659_v0  ;;  %v871_v47 = vld [vmem:[#allocation2 + $0x4] sm:$0x3]  ;;  %v978_v49 = vld [vmem:[#allocation2 + $0x6] sm:$0x3]  ;;  %v4755_v55 = vld [vmem:[%s6244_s3 + $0x108] sm:$0xff]  }
 0x139   :  { %655 = vst [vmem:[#allocation2 + $0x18] sm:$0xff] %v648_v37  ;;  %v511_v12 = vadd.f32 %v504_v2, %v5340_v53  ;;  %v505_v13 = vmax.f32 %v490_v3, 0.0  ;;  %v4754_v51 = vld [vmem:[%s6244_s3 + $0x140] sm:$0xff]   ;;  %v872_v52 = vpack.c.bf16 %v871_v47, %v871_v47  ;;  %v979_v54 = vpack.c.bf16 %v978_v49, %v978_v49  ;;  %v4756_v57 = vld [vmem:[%s6244_s3 + $0x148] sm:$0xff]   ;;  %v4757_v58 = vld [vmem:[%s6244_s3 + $0x110] sm:$0xff]  }
 0x13a   :  { %v636_v14 = vmax.f32 %v621_v9, 0.0  ;;  %4140 = vmatmul.mubr.bf16.vlgmr.msra.gmra.mrb[32].mxu0 %v678_v10  ;;  %4160 = vmatmul.mubr.bf16.vlgmr.msra.gmra.mrb[32].mxu1 %v660_v11  ;;  %v4758_v59 = vld [vmem:[%s6244_s3 + $0x150] sm:$0xff]   ;;  %v4759_v60 = vld [vmem:[%s6244_s3 + $0x118] sm:$0xff]   ;;  %v4761_v34 = vld [vmem:[%s6244_s3 + $0x120] sm:$0xff]  }
 0x13b   :  { %v512_v15 = vadd.f32 %v505_v13, %v5342_v56  ;;  %v642_v17 = vadd.f32 %v635_v4, %v511_v12  ;;  %4164 = vmatpush3.bf16.msra.mxu0 %v4737_v61  ;;  %4184 = vmatpush3.bf16.msra.mxu1 %v4738_v5  ;;  %v4760_v61 = vld [vmem:[%s6244_s3 + $0x158] sm:$0xff]   ;;  %v4762_v62 = vld [vmem:[%s6244_s3 + $0x160] sm:$0xff]   ;;  %v4763_v63 = vld [vmem:[%s6244_s3 + $0x128] sm:$0xff]  }
 0x13c   :  { %v494_v21 = vpop.f32.mrb[28].mxu0  ;;  %4165 = vmatprep.subr.bf16.mxu0 %v4962_v48  ;;  %4185 = vmatprep.subr.bf16.mxu1 %v4962_v48  ;;  %v625_v53 = vpop.f32.mrb[28].mxu1  ;;  %v4764_v0 = vld [vmem:[%s6244_s3 + $0x168] sm:$0xff]   ;;  %v4765_v37 = vld [vmem:[%s6244_s3 + $0x130] sm:$0xff]   ;;  %v4767_v3 = vld [vmem:[%s6244_s3 + $0x138] sm:$0xff]  }
 0x13d   :  { %v649_v22 = vmul.f32 0.25, %v642_v17  ;;  %v643_v23 = vadd.f32 %v636_v14, %v512_v15  ;;  %v495_v56 = vadd.f32 %v5318_v1, %v494_v21  ;;  %v626_v24 = vadd.f32 %v5318_v1, %v625_v53  ;;  %4179 = vmatprep.mubr.msk.bf16.mxu0 %vm4963_vm2, %v4962_v48  ;;  %4199 = vmatprep.mubr.msk.bf16.mxu1 %vm4963_vm2, %v4962_v48  ;;  %v496_v25 = vpop.f32.mrb[29].mxu0  ;;  %v627_v26 = vpop.f32.mrb[29].mxu1  ;;  %v4742_v1 = vld [vmem:[%s6244_s3 + $0xd0] sm:$0xff]   ;;  %v4768_v4 = vld [vmem:[%s6244_s3 + $0x178] sm:$0xff]   ;;  %v4769_v8 = vld [vmem:[%s6244_s3 + $0x180] sm:$0xff]  }
 0x13e   :  { %v497_v31 = vpop.f32.mrb[30].mxu0  ;;  %v628_v35 = vpop.f32.mrb[30].mxu1  ;;  %v4766_v2 = vld [vmem:[%s6244_s3 + $0x170] sm:$0xff]   ;;  %v1085_v5 = vld [vmem:[#allocation2 + $0x8] sm:$0x3]  ;;  %v4770_v9 = vld [vmem:[%s6244_s3 + $0x1c0] sm:$0xff]  }
 0x13f   :  { %656 = vst [vmem:[#allocation2 + $0x20] sm:$0xff] %v649_v22  ;;  %v650_v27 = vmul.f32 0.25, %v643_v23  ;;  %v506_v28 = vmax.f32 %v495_v56, 0.0  ;;  %4166 = vmatpush3.bf16.msra.mxu0 %v4739_v18  ;;  %4186 = vmatpush3.bf16.msra.mxu1 %v4740_v20  ;;  %v637_v29 = vmax.f32 %v626_v24, 0.0  ;;  %v498_v32 = vpop.f32.mrb[31].mxu0  ;;  %v629_v36 = vpop.f32.mrb[31].mxu1  ;;  %v1086_v10 = vpack.c.bf16 %v1085_v5, %v1085_v5 }
 0x140   :  { %4167 = vmatprep.subr.bf16.mxu0 %v4962_v48  ;;  %4187 = vmatprep.subr.bf16.mxu1 %v4962_v48  ;;  %v1192_v7 = vld [vmem:[#allocation2 + $0xa] sm:$0x3]  ;;  %v4773_v14 = vld [vmem:[%s6244_s3 + $0x190] sm:$0xff]   ;;  %v4775_v17 = vld [vmem:[%s6244_s3 + $0x198] sm:$0xff]  }
 0x141   :  { %657 = vst [vmem:[#allocation2 + $0x28] sm:$0xff] %v650_v27  ;;  %v513_v33 = vadd.f32 %v506_v28, %v5346_v6  ;;  %v4745_v6 = vld [vmem:[%s6244_s3 + $0xa0] sm:$0xff]   ;;  %v1193_v11 = vpack.c.bf16 %v1192_v7, %v1192_v7  ;;  %v4771_v12 = vld [vmem:[%s6244_s3 + $0x188] sm:$0xff]   ;;  %v4774_v15 = vld [vmem:[%s6244_s3 + $0x1d0] sm:$0xff]  }
 0x142   :  { %v4772_v13 = vld [vmem:[%s6244_s3 + $0x1c8] sm:$0xff]   ;;  %v4776_v18 = vld [vmem:[%s6244_s3 + $0x1d8] sm:$0xff]   ;;  %v4777_v20 = vld [vmem:[%s6244_s3 + $0x1a0] sm:$0xff]  }
 0x143   :  { %v644_v38 = vadd.f32 %v637_v29, %v513_v33  ;;  %4168 = vmatpush3.bf16.msra.mxu0 %v4741_v30  ;;  %4188 = vmatpush3.bf16.msra.mxu1 %v4742_v1  ;;  %v4778_v21 = vld [vmem:[%s6244_s3 + $0x1e0] sm:$0xff]   ;;  %v4779_v53 = vld [vmem:[%s6244_s3 + $0x1a8] sm:$0xff]   ;;  %v4781_v23 = vld [vmem:[%s6244_s3 + $0x1b0] sm:$0xff]  }
 0x144   :  { %4169 = vmatprep.subr.bf16.mxu0 %v4962_v48  ;;  %4189 = vmatprep.subr.bf16.mxu1 %v4962_v48  ;;  %v4780_v22 = vld [vmem:[%s6244_s3 + $0x1e8] sm:$0xff]   ;;  %v4782_v56 = vld [vmem:[%s6244_s3 + $0x1f0] sm:$0xff]   ;;  %v4783_v24 = vld [vmem:[%s6244_s3 + $0x1b8] sm:$0xff]  }
 0x145   :  { %v651_v16 = vmul.f32 0.25, %v644_v38  ;;  %v4784_v25 = vld [vmem:[%s6244_s3 + $0x1f8] sm:$0xff]   ;;  %v1299_v26 = vld [vmem:[#allocation2 + $0xc] sm:$0x3]  ;;  %v1406_v27 = vld [vmem:[#allocation2 + $0xe] sm:$0x3] }
 0x146   :  { %v4785_v28 = vld [vmem:[%s6244_s3 + $0x200] sm:$0xff]   ;;  %v1300_v30 = vpack.c.bf16 %v1299_v26, %v1299_v26  ;;  %v1407_v1 = vpack.c.bf16 %v1406_v27, %v1406_v27  ;;  %v4787_v31 = vld [vmem:[%s6244_s3 + $0x208] sm:$0xff]   ;;  %v4789_v33 = vld [vmem:[%s6244_s3 + $0x210] sm:$0xff]  }
 0x147   :  { %658 = vst [vmem:[#allocation2 + $0x30] sm:$0x3] %v651_v16  ;;  %4170 = vmatpush3.bf16.msra.mxu0 %v4743_v39  ;;  %4190 = vmatpush3.bf16.msra.mxu1 %v4744_v40  ;;  %v4786_v29 = vld [vmem:[%s6244_s3 + $0x240] sm:$0xff]   ;;  %v4788_v32 = vld [vmem:[%s6244_s3 + $0x248] sm:$0xff]   ;;  %v4790_v35 = vld [vmem:[%s6244_s3 + $0x250] sm:$0xff]  }
 0x148   :  { %4171 = vmatprep.subr.bf16.mxu0 %v4962_v48  ;;  %4191 = vmatprep.subr.bf16.mxu1 %v4962_v48  ;;  %v4791_v36 = vld [vmem:[%s6244_s3 + $0x218] sm:$0xff]   ;;  %v4793_v39 = vld [vmem:[%s6244_s3 + $0x220] sm:$0xff]   ;;  %v4795_v16 = vld [vmem:[%s6244_s3 + $0x228] sm:$0xff]  }
 0x149   :  { %v4792_v38 = vld [vmem:[%s6244_s3 + $0x258] sm:$0xff]   ;;  %v4794_v40 = vld [vmem:[%s6244_s3 + $0x260] sm:$0xff]  }
 0x14a   :  { %v4802_v47 = vld [vmem:[%s6244_s3 + $0x2c0] sm:$0xff]  }
 0x14b   :  { %4172 = vmatpush3.bf16.msra.mxu0 %v4745_v6  ;;  %4192 = vmatpush3.bf16.msra.mxu1 %v4746_v41  ;;  %v4796_v6 = vld [vmem:[%s6244_s3 + $0x268] sm:$0xff]   ;;  %v4797_v41 = vld [vmem:[%s6244_s3 + $0x230] sm:$0xff]   ;;  %v4818_v5 = vld [vmem:[%s6244_s3 + $0x340] sm:$0xff]  }
 0x14c   :  { %4173 = vmatprep.subr.bf16.mxu0 %v4962_v48  ;;  %4193 = vmatprep.subr.bf16.mxu1 %v4962_v48  ;;  %v4834_v26 = vld [vmem:[%s6244_s3 + $0x3c0] sm:$0xff]  }
 0x14f   :  { %4174 = vmatpush3.bf16.msra.mxu0 %v4747_v42  ;;  %4194 = vmatpush3.bf16.msra.mxu1 %v4748_v19  ;;  %v4798_v42 = vld [vmem:[%s6244_s3 + $0x270] sm:$0xff]   ;;  %v4799_v19 = vld [vmem:[%s6244_s3 + $0x238] sm:$0xff]  }
 0x150   :  { %4175 = vmatprep.subr.bf16.mxu0 %v4962_v48  ;;  %4195 = vmatprep.subr.bf16.mxu1 %v4962_v48 }
 0x153   :  { %4176 = vmatpush3.bf16.msra.mxu0 %v4749_v43  ;;  %4196 = vmatpush3.bf16.msra.mxu1 %v4750_v44  ;;  %v4800_v43 = vld [vmem:[%s6244_s3 + $0x278] sm:$0xff]   ;;  %v1513_v44 = vld [vmem:[#allocation2 + $0x10] sm:$0x3] }
 0x154   :  { %4177 = vmatprep.subr.bf16.mxu0 %v4962_v48  ;;  %4197 = vmatprep.subr.bf16.mxu1 %v4962_v48  ;;  %v1514_v49 = vpack.c.bf16 %v1513_v44, %v1513_v44  ;;  %v4845_v44 = vld [vmem:[%s6244_s3 + $0x3b0] sm:$0xff]  }
 0x157   :  { %4178 = vmatpush3.bf16.msra.mxu0 %v4751_v45  ;;  %4198 = vmatpush3.bf16.msra.mxu1 %v4752_v46  ;;  %v1620_v45 = vld [vmem:[#allocation2 + $0x12] sm:$0x3]  ;;  %v4801_v46 = vld [vmem:[%s6244_s3 + $0x280] sm:$0xff]  }
 0x158   :  { %4203 = vmatprep.subr.bf16.mxu0 %v4962_v48  ;;  %4223 = vmatprep.subr.bf16.mxu1 %v4962_v48 }
 0x15a   :  { %4180 = vmatmul.mubr.bf16.vlgmr.msra.gmra.mrb[36].mxu0 %v872_v52  ;;  %4200 = vmatmul.mubr.bf16.vlgmr.msra.gmra.mrb[36].mxu1 %v979_v54  ;;  %v4804_v52 = vld [vmem:[%s6244_s3 + $0x2c8] sm:$0xff]   ;;  %v4805_v54 = vld [vmem:[%s6244_s3 + $0x290] sm:$0xff]  }
 0x15b   :  { %4204 = vmatpush3.bf16.msra.mxu0 %v4753_v50  ;;  %4224 = vmatpush3.bf16.msra.mxu1 %v4754_v51  ;;  %v1621_v50 = vpack.c.bf16 %v1620_v45, %v1620_v45  ;;  %v4803_v51 = vld [vmem:[%s6244_s3 + $0x288] sm:$0xff]   ;;  %v4846_v45 = vld [vmem:[%s6244_s3 + $0x3f0] sm:$0xff]  }
 0x15c   :  { %4205 = vmatprep.subr.bf16.mxu0 %v4962_v48  ;;  %4225 = vmatprep.subr.bf16.mxu1 %v4962_v48 }
 0x15d   :  { %4219 = vmatprep.mubr.msk.bf16.mxu0 %vm4963_vm2, %v4962_v48  ;;  %4239 = vmatprep.mubr.msk.bf16.mxu1 %vm4963_vm2, %v4962_v48 }
 0x15f   :  { %4206 = vmatpush3.bf16.msra.mxu0 %v4755_v55  ;;  %4226 = vmatpush3.bf16.msra.mxu1 %v4756_v57  ;;  %v4806_v55 = vld [vmem:[%s6244_s3 + $0x2d0] sm:$0xff]   ;;  %v4807_v57 = vld [vmem:[%s6244_s3 + $0x298] sm:$0xff]  }
 0x160   :  { %4207 = vmatprep.subr.bf16.mxu0 %v4962_v48  ;;  %4227 = vmatprep.subr.bf16.mxu1 %v4962_v48 }
 0x163   :  { %4208 = vmatpush3.bf16.msra.mxu0 %v4757_v58  ;;  %4228 = vmatpush3.bf16.msra.mxu1 %v4758_v59  ;;  %v4808_v58 = vld [vmem:[%s6244_s3 + $0x2d8] sm:$0xff]   ;;  %v4809_v59 = vld [vmem:[%s6244_s3 + $0x2a0] sm:$0xff]  }
 0x164   :  { %4209 = vmatprep.subr.bf16.mxu0 %v4962_v48  ;;  %4229 = vmatprep.subr.bf16.mxu1 %v4962_v48 }
 0x167   :  { %4210 = vmatpush3.bf16.msra.mxu0 %v4759_v60  ;;  %4230 = vmatpush3.bf16.msra.mxu1 %v4760_v61  ;;  %v4810_v60 = vld [vmem:[%s6244_s3 + $0x2e0] sm:$0xff]   ;;  %v4811_v61 = vld [vmem:[%s6244_s3 + $0x2a8] sm:$0xff]  }
 0x168   :  { %4211 = vmatprep.subr.bf16.mxu0 %v4962_v48  ;;  %4231 = vmatprep.subr.bf16.mxu1 %v4962_v48 }
 0x16b   :  { %4212 = vmatpush3.bf16.msra.mxu0 %v4761_v34  ;;  %4232 = vmatpush3.bf16.msra.mxu1 %v4762_v62  ;;  %v4812_v34 = vld [vmem:[%s6244_s3 + $0x2e8] sm:$0xff]   ;;  %v4813_v62 = vld [vmem:[%s6244_s3 + $0x2b0] sm:$0xff]  }
 0x16c   :  { %4213 = vmatprep.subr.bf16.mxu0 %v4962_v48  ;;  %4233 = vmatprep.subr.bf16.mxu1 %v4962_v48 }
 0x16f   :  { %4214 = vmatpush3.bf16.msra.mxu0 %v4763_v63  ;;  %4234 = vmatpush3.bf16.msra.mxu1 %v4764_v0  ;;  %v4814_v63 = vld [vmem:[%s6244_s3 + $0x2f0] sm:$0xff]   ;;  %v4815_v0 = vld [vmem:[%s6244_s3 + $0x2b8] sm:$0xff]  }
 0x170   :  { %4215 = vmatprep.subr.bf16.mxu0 %v4962_v48  ;;  %4235 = vmatprep.subr.bf16.mxu1 %v4962_v48 }
 0x173   :  { %4216 = vmatpush3.bf16.msra.mxu0 %v4765_v37  ;;  %4236 = vmatpush3.bf16.msra.mxu1 %v4766_v2  ;;  %v4816_v37 = vld [vmem:[%s6244_s3 + $0x2f8] sm:$0xff]   ;;  %v1727_v2 = vld [vmem:[#allocation2 + $0x14] sm:$0x3] }
 0x174   :  { %4217 = vmatprep.subr.bf16.mxu0 %v4962_v48  ;;  %4237 = vmatprep.subr.bf16.mxu1 %v4962_v48  ;;  %v1728_v7 = vpack.c.bf16 %v1727_v2, %v1727_v2  ;;  %v4859_v2 = vld [vmem:[%s6244_s3 + $0x428] sm:$0xff]  }
 0x177   :  { %4218 = vmatpush3.bf16.msra.mxu0 %v4767_v3  ;;  %4238 = vmatpush3.bf16.msra.mxu1 %v4768_v4  ;;  %v1834_v3 = vld [vmem:[#allocation2 + $0x16] sm:$0x3]  ;;  %v4817_v4 = vld [vmem:[%s6244_s3 + $0x300] sm:$0xff]  }
 0x178   :  { %4243 = vmatprep.subr.bf16.mxu0 %v4962_v48  ;;  %4263 = vmatprep.subr.bf16.mxu1 %v4962_v48 }
 0x17a   :  { %4220 = vmatmul.mubr.bf16.vlgmr.msra.gmra.mrb[40].mxu0 %v1086_v10  ;;  %4240 = vmatmul.mubr.bf16.vlgmr.msra.gmra.mrb[40].mxu1 %v1193_v11  ;;  %v4820_v10 = vld [vmem:[%s6244_s3 + $0x348] sm:$0xff]   ;;  %v4821_v11 = vld [vmem:[%s6244_s3 + $0x310] sm:$0xff]  }
 0x17b   :  { %4244 = vmatpush3.bf16.msra.mxu0 %v4769_v8  ;;  %4264 = vmatpush3.bf16.msra.mxu1 %v4770_v9  ;;  %v1835_v8 = vpack.c.bf16 %v1834_v3, %v1834_v3  ;;  %v4819_v9 = vld [vmem:[%s6244_s3 + $0x308] sm:$0xff]  }
 0x17c   :  { %4245 = vmatprep.subr.bf16.mxu0 %v4962_v48  ;;  %4265 = vmatprep.subr.bf16.mxu1 %v4962_v48  ;;  %v4860_v3 = vld [vmem:[%s6244_s3 + $0x468] sm:$0xff]  }
 0x17d   :  { %4259 = vmatprep.mubr.msk.bf16.mxu0 %vm4963_vm2, %v4962_v48  ;;  %4279 = vmatprep.mubr.msk.bf16.mxu1 %vm4963_vm2, %v4962_v48 }
 0x17f   :  { %4246 = vmatpush3.bf16.msra.mxu0 %v4771_v12  ;;  %4266 = vmatpush3.bf16.msra.mxu1 %v4772_v13  ;;  %v4822_v12 = vld [vmem:[%s6244_s3 + $0x350] sm:$0xff]   ;;  %v4823_v13 = vld [vmem:[%s6244_s3 + $0x318] sm:$0xff]  }
 0x180   :  { %4247 = vmatprep.subr.bf16.mxu0 %v4962_v48  ;;  %4267 = vmatprep.subr.bf16.mxu1 %v4962_v48 }
 0x183   :  { %4248 = vmatpush3.bf16.msra.mxu0 %v4773_v14  ;;  %4268 = vmatpush3.bf16.msra.mxu1 %v4774_v15  ;;  %v4824_v14 = vld [vmem:[%s6244_s3 + $0x358] sm:$0xff]   ;;  %v4825_v15 = vld [vmem:[%s6244_s3 + $0x320] sm:$0xff]  }
 0x184   :  { %4249 = vmatprep.subr.bf16.mxu0 %v4962_v48  ;;  %4269 = vmatprep.subr.bf16.mxu1 %v4962_v48 }
 0x187   :  { %4250 = vmatpush3.bf16.msra.mxu0 %v4775_v17  ;;  %4270 = vmatpush3.bf16.msra.mxu1 %v4776_v18  ;;  %v4826_v17 = vld [vmem:[%s6244_s3 + $0x360] sm:$0xff]   ;;  %v4827_v18 = vld [vmem:[%s6244_s3 + $0x328] sm:$0xff]  }
 0x188   :  { %4251 = vmatprep.subr.bf16.mxu0 %v4962_v48  ;;  %4271 = vmatprep.subr.bf16.mxu1 %v4962_v48 }
 0x18b   :  { %4252 = vmatpush3.bf16.msra.mxu0 %v4777_v20  ;;  %4272 = vmatpush3.bf16.msra.mxu1 %v4778_v21  ;;  %v4828_v20 = vld [vmem:[%s6244_s3 + $0x368] sm:$0xff]   ;;  %v4829_v21 = vld [vmem:[%s6244_s3 + $0x330] sm:$0xff]  }
 0x18c   :  { %4253 = vmatprep.subr.bf16.mxu0 %v4962_v48  ;;  %4273 = vmatprep.subr.bf16.mxu1 %v4962_v48 }
 0x18f   :  { %4254 = vmatpush3.bf16.msra.mxu0 %v4779_v53  ;;  %4274 = vmatpush3.bf16.msra.mxu1 %v4780_v22  ;;  %v4830_v53 = vld [vmem:[%s6244_s3 + $0x370] sm:$0xff]   ;;  %v4831_v22 = vld [vmem:[%s6244_s3 + $0x338] sm:$0xff]  }
 0x190   :  { %4255 = vmatprep.subr.bf16.mxu0 %v4962_v48  ;;  %4275 = vmatprep.subr.bf16.mxu1 %v4962_v48 }
 0x193   :  { %4256 = vmatpush3.bf16.msra.mxu0 %v4781_v23  ;;  %4276 = vmatpush3.bf16.msra.mxu1 %v4782_v56  ;;  %v4832_v23 = vld [vmem:[%s6244_s3 + $0x378] sm:$0xff]  }
 0x194   :  { %4257 = vmatprep.subr.bf16.mxu0 %v4962_v48  ;;  %4277 = vmatprep.subr.bf16.mxu1 %v4962_v48  ;;  %v1941_v56 = vld [vmem:[#allocation2 + $0x18] sm:$0x3] }
 0x195   :  { %v1942_v27 = vpack.c.bf16 %v1941_v56, %v1941_v56 }
 0x197   :  { %4258 = vmatpush3.bf16.msra.mxu0 %v4783_v24  ;;  %4278 = vmatpush3.bf16.msra.mxu1 %v4784_v25  ;;  %v2048_v24 = vld [vmem:[#allocation2 + $0x1a] sm:$0x3]  ;;  %v4833_v25 = vld [vmem:[%s6244_s3 + $0x380] sm:$0xff]  }
 0x198   :  { %4283 = vmatprep.subr.bf16.mxu0 %v4962_v48  ;;  %4303 = vmatprep.subr.bf16.mxu1 %v4962_v48 }
 0x19a   :  { %4260 = vmatmul.mubr.bf16.vlgmr.msra.gmra.mrb[44].mxu0 %v1300_v30  ;;  %4280 = vmatmul.mubr.bf16.vlgmr.msra.gmra.mrb[44].mxu1 %v1407_v1  ;;  %v4836_v30 = vld [vmem:[%s6244_s3 + $0x3c8] sm:$0xff]   ;;  %v4837_v1 = vld [vmem:[%s6244_s3 + $0x390] sm:$0xff]  }
 0x19b   :  { %4284 = vmatpush3.bf16.msra.mxu0 %v4785_v28  ;;  %4304 = vmatpush3.bf16.msra.mxu1 %v4786_v29  ;;  %v2049_v28 = vpack.c.bf16 %v2048_v24, %v2048_v24  ;;  %v4835_v29 = vld [vmem:[%s6244_s3 + $0x388] sm:$0xff]  }
 0x19c   :  { %4285 = vmatprep.subr.bf16.mxu0 %v4962_v48  ;;  %4305 = vmatprep.subr.bf16.mxu1 %v4962_v48 }
 0x19d   :  { %4299 = vmatprep.mubr.msk.bf16.mxu0 %vm4963_vm2, %v4962_v48  ;;  %4319 = vmatprep.mubr.msk.bf16.mxu1 %vm4963_vm2, %v4962_v48 }
 0x19f   :  { %4286 = vmatpush3.bf16.msra.mxu0 %v4787_v31  ;;  %4306 = vmatpush3.bf16.msra.mxu1 %v4788_v32  ;;  %v4838_v31 = vld [vmem:[%s6244_s3 + $0x3d0] sm:$0xff]   ;;  %v4839_v32 = vld [vmem:[%s6244_s3 + $0x398] sm:$0xff]  }
 0x1a0   :  { %4287 = vmatprep.subr.bf16.mxu0 %v4962_v48  ;;  %4307 = vmatprep.subr.bf16.mxu1 %v4962_v48 }
 0x1a3   :  { %4288 = vmatpush3.bf16.msra.mxu0 %v4789_v33  ;;  %4308 = vmatpush3.bf16.msra.mxu1 %v4790_v35  ;;  %v4840_v33 = vld [vmem:[%s6244_s3 + $0x3d8] sm:$0xff]   ;;  %v4841_v35 = vld [vmem:[%s6244_s3 + $0x3a0] sm:$0xff]  }
 0x1a4   :  { %4289 = vmatprep.subr.bf16.mxu0 %v4962_v48  ;;  %4309 = vmatprep.subr.bf16.mxu1 %v4962_v48 }
 0x1a7   :  { %4290 = vmatpush3.bf16.msra.mxu0 %v4791_v36  ;;  %4310 = vmatpush3.bf16.msra.mxu1 %v4792_v38  ;;  %v4842_v36 = vld [vmem:[%s6244_s3 + $0x3e0] sm:$0xff]   ;;  %v4843_v38 = vld [vmem:[%s6244_s3 + $0x3a8] sm:$0xff]  }
 0x1a8   :  { %4291 = vmatprep.subr.bf16.mxu0 %v4962_v48  ;;  %4311 = vmatprep.subr.bf16.mxu1 %v4962_v48 }
 0x1ab   :  { %4292 = vmatpush3.bf16.msra.mxu0 %v4793_v39  ;;  %4312 = vmatpush3.bf16.msra.mxu1 %v4794_v40  ;;  %v4844_v39 = vld [vmem:[%s6244_s3 + $0x3e8] sm:$0xff]  }
 0x1ac   :  { %4293 = vmatprep.subr.bf16.mxu0 %v4962_v48  ;;  %4313 = vmatprep.subr.bf16.mxu1 %v4962_v48 }
 0x1af   :  { %4294 = vmatpush3.bf16.msra.mxu0 %v4795_v16  ;;  %4314 = vmatpush3.bf16.msra.mxu1 %v4796_v6 }
 0x1b0   :  { %4295 = vmatprep.subr.bf16.mxu0 %v4962_v48  ;;  %4315 = vmatprep.subr.bf16.mxu1 %v4962_v48 }
 0x1b3   :  { %4296 = vmatpush3.bf16.msra.mxu0 %v4797_v41  ;;  %4316 = vmatpush3.bf16.msra.mxu1 %v4798_v42 }
 0x1b4   :  { %4297 = vmatprep.subr.bf16.mxu0 %v4962_v48  ;;  %4317 = vmatprep.subr.bf16.mxu1 %v4962_v48 }
 0x1b7   :  { %4298 = vmatpush3.bf16.msra.mxu0 %v4799_v19  ;;  %4318 = vmatpush3.bf16.msra.mxu1 %v4800_v43 }
 0x1b8   :  { %4323 = vmatprep.subr.bf16.mxu0 %v4962_v48  ;;  %4343 = vmatprep.subr.bf16.mxu1 %v4962_v48 }
 0x1ba   :  { %4300 = vmatmul.mubr.bf16.vlgmr.msra.gmra.mrb[48].mxu0 %v1514_v49  ;;  %4320 = vmatmul.mubr.bf16.vlgmr.msra.gmra.mrb[48].mxu1 %v1621_v50  ;;  %v4847_v49 = vld [vmem:[%s6244_s3 + $0x3b8] sm:$0xff]  }
 0x1bb   :  { %4324 = vmatpush3.bf16.msra.mxu0 %v4801_v46  ;;  %4344 = vmatpush3.bf16.msra.mxu1 %v4802_v47  ;;  %v4848_v50 = vld [vmem:[%s6244_s3 + $0x3f8] sm:$0xff]  }
 0x1bc   :  { %4325 = vmatprep.subr.bf16.mxu0 %v4962_v48  ;;  %4345 = vmatprep.subr.bf16.mxu1 %v4962_v48 }
 0x1bd   :  { %4339 = vmatprep.mubr.msk.bf16.mxu0 %vm4963_vm2, %v4962_v48  ;;  %4359 = vmatprep.mubr.msk.bf16.mxu1 %vm4963_vm2, %v4962_v48 }
 0x1bf   :  { %4326 = vmatpush3.bf16.msra.mxu0 %v4803_v51  ;;  %4346 = vmatpush3.bf16.msra.mxu1 %v4804_v52  ;;  %v2155_v51 = vld [vmem:[#allocation2 + $0x1c] sm:$0x3]  ;;  %v2262_v52 = vld [vmem:[#allocation2 + $0x1e] sm:$0x3] }
 0x1c0   :  { %4327 = vmatprep.subr.bf16.mxu0 %v4962_v48  ;;  %4347 = vmatprep.subr.bf16.mxu1 %v4962_v48 }
 0x1c3   :  { %4328 = vmatpush3.bf16.msra.mxu0 %v4805_v54  ;;  %4348 = vmatpush3.bf16.msra.mxu1 %v4806_v55  ;;  %v4849_v54 = vld [vmem:[%s6244_s3 + $0x400] sm:$0xff]  }
 0x1c4   :  { %4329 = vmatprep.subr.bf16.mxu0 %v4962_v48  ;;  %4349 = vmatprep.subr.bf16.mxu1 %v4962_v48  ;;  %v4850_v55 = vld [vmem:[%s6244_s3 + $0x440] sm:$0xff]  }
 0x1c7   :  { %4330 = vmatpush3.bf16.msra.mxu0 %v4807_v57  ;;  %4350 = vmatpush3.bf16.msra.mxu1 %v4808_v58  ;;  %v2156_v57 = vpack.c.bf16 %v2155_v51, %v2155_v51  ;;  %v2263_v58 = vpack.c.bf16 %v2262_v52, %v2262_v52  ;;  %v4882_v51 = vld [vmem:[%s6244_s3 + $0x540] sm:$0xff]  }
 0x1c8   :  { %4331 = vmatprep.subr.bf16.mxu0 %v4962_v48  ;;  %4351 = vmatprep.subr.bf16.mxu1 %v4962_v48 }
 0x1cb   :  { %4332 = vmatpush3.bf16.msra.mxu0 %v4809_v59  ;;  %4352 = vmatpush3.bf16.msra.mxu1 %v4810_v60  ;;  %v4851_v59 = vld [vmem:[%s6244_s3 + $0x408] sm:$0xff]  }
 0x1cc   :  { %4333 = vmatprep.subr.bf16.mxu0 %v4962_v48  ;;  %4353 = vmatprep.subr.bf16.mxu1 %v4962_v48  ;;  %v4852_v60 = vld [vmem:[%s6244_s3 + $0x448] sm:$0xff]  }
 0x1cf   :  { %4334 = vmatpush3.bf16.msra.mxu0 %v4811_v61  ;;  %4354 = vmatpush3.bf16.msra.mxu1 %v4812_v34  ;;  %v4853_v61 = vld [vmem:[%s6244_s3 + $0x410] sm:$0xff]  }
 0x1d0   :  { %4335 = vmatprep.subr.bf16.mxu0 %v4962_v48  ;;  %4355 = vmatprep.subr.bf16.mxu1 %v4962_v48  ;;  %v4854_v34 = vld [vmem:[%s6244_s3 + $0x450] sm:$0xff]  }
 0x1d3   :  { %4336 = vmatpush3.bf16.msra.mxu0 %v4813_v62  ;;  %4356 = vmatpush3.bf16.msra.mxu1 %v4814_v63  ;;  %v4855_v62 = vld [vmem:[%s6244_s3 + $0x418] sm:$0xff]  }
 0x1d4   :  { %4337 = vmatprep.subr.bf16.mxu0 %v4962_v48  ;;  %4357 = vmatprep.subr.bf16.mxu1 %v4962_v48  ;;  %v4856_v63 = vld [vmem:[%s6244_s3 + $0x458] sm:$0xff]  }
 0x1d7   :  { %4338 = vmatpush3.bf16.msra.mxu0 %v4815_v0  ;;  %4358 = vmatpush3.bf16.msra.mxu1 %v4816_v37  ;;  %v4857_v0 = vld [vmem:[%s6244_s3 + $0x420] sm:$0xff]  }
 0x1d8   :  { %4363 = vmatprep.subr.bf16.mxu0 %v4962_v48  ;;  %4383 = vmatprep.subr.bf16.mxu1 %v4962_v48  ;;  %v4858_v37 = vld [vmem:[%s6244_s3 + $0x460] sm:$0xff]  }
 0x1da   :  { %4340 = vmatmul.mubr.bf16.vlgmr.msra.gmra.mrb[52].mxu0 %v1728_v7  ;;  %4360 = vmatmul.mubr.bf16.vlgmr.msra.gmra.mrb[52].mxu1 %v1835_v8 }
 0x1db   :  { %4364 = vmatpush3.bf16.msra.mxu0 %v4817_v4  ;;  %4384 = vmatpush3.bf16.msra.mxu1 %v4818_v5 }
 0x1dc   :  { %4365 = vmatprep.subr.bf16.mxu0 %v4962_v48  ;;  %4385 = vmatprep.subr.bf16.mxu1 %v4962_v48 }
 0x1dd   :  { %4379 = vmatprep.mubr.msk.bf16.mxu0 %vm4963_vm2, %v4962_v48  ;;  %4399 = vmatprep.mubr.msk.bf16.mxu1 %vm4963_vm2, %v4962_v48 }
 0x1df   :  { %4366 = vmatpush3.bf16.msra.mxu0 %v4819_v9  ;;  %4386 = vmatpush3.bf16.msra.mxu1 %v4820_v10 }
 0x1e0   :  { %4367 = vmatprep.subr.bf16.mxu0 %v4962_v48  ;;  %4387 = vmatprep.subr.bf16.mxu1 %v4962_v48 }
 0x1e3   :  { %4368 = vmatpush3.bf16.msra.mxu0 %v4821_v11  ;;  %4388 = vmatpush3.bf16.msra.mxu1 %v4822_v12  ;;  %v4861_v12 = vld [vmem:[%s6244_s3 + $0x430] sm:$0xff]  }
 0x1e4   :  { %4369 = vmatprep.subr.bf16.mxu0 %v4962_v48  ;;  %4389 = vmatprep.subr.bf16.mxu1 %v4962_v48 }
 0x1e7   :  { %4370 = vmatpush3.bf16.msra.mxu0 %v4823_v13  ;;  %4390 = vmatpush3.bf16.msra.mxu1 %v4824_v14  ;;  %v4862_v13 = vld [vmem:[%s6244_s3 + $0x470] sm:$0xff]  }
 0x1e8   :  { %4371 = vmatprep.subr.bf16.mxu0 %v4962_v48  ;;  %4391 = vmatprep.subr.bf16.mxu1 %v4962_v48 }
 0x1eb   :  { %4372 = vmatpush3.bf16.msra.mxu0 %v4825_v15  ;;  %4392 = vmatpush3.bf16.msra.mxu1 %v4826_v17 }
 0x1ec   :  { %4373 = vmatprep.subr.bf16.mxu0 %v4962_v48  ;;  %4393 = vmatprep.subr.bf16.mxu1 %v4962_v48 }
 0x1ef   :  { %4374 = vmatpush3.bf16.msra.mxu0 %v4827_v18  ;;  %4394 = vmatpush3.bf16.msra.mxu1 %v4828_v20  ;;  %v4863_v18 = vld [vmem:[%s6244_s3 + $0x438] sm:$0xff]  }
 0x1f0   :  { %4375 = vmatprep.subr.bf16.mxu0 %v4962_v48  ;;  %4395 = vmatprep.subr.bf16.mxu1 %v4962_v48  ;;  %v4864_v20 = vld [vmem:[%s6244_s3 + $0x478] sm:$0xff]  }
 0x1f3   :  { %4376 = vmatpush3.bf16.msra.mxu0 %v4829_v21  ;;  %4396 = vmatpush3.bf16.msra.mxu1 %v4830_v53  ;;  %v2369_v21 = vld [vmem:[#allocation2 + $0x20] sm:$0x3]  ;;  %v2476_v53 = vld [vmem:[#allocation2 + $0x22] sm:$0x3] }
 0x1f4   :  { %4377 = vmatprep.subr.bf16.mxu0 %v4962_v48  ;;  %4397 = vmatprep.subr.bf16.mxu1 %v4962_v48  ;;  %v2370_v56 = vpack.c.bf16 %v2369_v21, %v2369_v21  ;;  %v2477_v24 = vpack.c.bf16 %v2476_v53, %v2476_v53  ;;  %v4898_v21 = vld [vmem:[%s6244_s3 + $0x5c0] sm:$0xff]  }
 0x1f7   :  { %4378 = vmatpush3.bf16.msra.mxu0 %v4831_v22  ;;  %4398 = vmatpush3.bf16.msra.mxu1 %v4832_v23  ;;  %v4865_v22 = vld [vmem:[%s6244_s3 + $0x480] sm:$0xff]  }
 0x1f8   :  { %4403 = vmatprep.subr.bf16.mxu0 %v4962_v48  ;;  %4423 = vmatprep.subr.bf16.mxu1 %v4962_v48  ;;  %v4866_v23 = vld [vmem:[%s6244_s3 + $0x4c0] sm:$0xff]  }
 0x1fa   :  { %4380 = vmatmul.mubr.bf16.vlgmr.msra.gmra.mrb[56].mxu0 %v1942_v27  ;;  %4400 = vmatmul.mubr.bf16.vlgmr.msra.gmra.mrb[56].mxu1 %v2049_v28  ;;  %v4869_v27 = vld [vmem:[%s6244_s3 + $0x490] sm:$0xff]  }
 0x1fb   :  { %4404 = vmatpush3.bf16.msra.mxu0 %v4833_v25  ;;  %4424 = vmatpush3.bf16.msra.mxu1 %v4834_v26  ;;  %v4867_v25 = vld [vmem:[%s6244_s3 + $0x488] sm:$0xff]   ;;  %v4870_v28 = vld [vmem:[%s6244_s3 + $0x4d0] sm:$0xff]  }
 0x1fc   :  { %4405 = vmatprep.subr.bf16.mxu0 %v4962_v48  ;;  %4425 = vmatprep.subr.bf16.mxu1 %v4962_v48  ;;  %v4868_v26 = vld [vmem:[%s6244_s3 + $0x4c8] sm:$0xff]  }
 0x1fd   :  { %4419 = vmatprep.mubr.msk.bf16.mxu0 %vm4963_vm2, %v4962_v48  ;;  %4439 = vmatprep.mubr.msk.bf16.mxu1 %vm4963_vm2, %v4962_v48 }
 0x1ff   :  { %4406 = vmatpush3.bf16.msra.mxu0 %v4835_v29  ;;  %4426 = vmatpush3.bf16.msra.mxu1 %v4836_v30  ;;  %v4871_v29 = vld [vmem:[%s6244_s3 + $0x498] sm:$0xff]  }
 0x200   :  { %4407 = vmatprep.subr.bf16.mxu0 %v4962_v48  ;;  %4427 = vmatprep.subr.bf16.mxu1 %v4962_v48  ;;  %v4872_v30 = vld [vmem:[%s6244_s3 + $0x4d8] sm:$0xff]  }
 0x203   :  { %4408 = vmatpush3.bf16.msra.mxu0 %v4837_v1  ;;  %4428 = vmatpush3.bf16.msra.mxu1 %v4838_v31  ;;  %v4873_v1 = vld [vmem:[%s6244_s3 + $0x4a0] sm:$0xff]  }
 0x204   :  { %4409 = vmatprep.subr.bf16.mxu0 %v4962_v48  ;;  %4429 = vmatprep.subr.bf16.mxu1 %v4962_v48  ;;  %v4874_v31 = vld [vmem:[%s6244_s3 + $0x4e0] sm:$0xff]  }
 0x207   :  { %4410 = vmatpush3.bf16.msra.mxu0 %v4839_v32  ;;  %4430 = vmatpush3.bf16.msra.mxu1 %v4840_v33  ;;  %v4875_v32 = vld [vmem:[%s6244_s3 + $0x4a8] sm:$0xff]  }
 0x208   :  { %4411 = vmatprep.subr.bf16.mxu0 %v4962_v48  ;;  %4431 = vmatprep.subr.bf16.mxu1 %v4962_v48  ;;  %v4876_v33 = vld [vmem:[%s6244_s3 + $0x4e8] sm:$0xff]  }
 0x20b   :  { %4412 = vmatpush3.bf16.msra.mxu0 %v4841_v35  ;;  %4432 = vmatpush3.bf16.msra.mxu1 %v4842_v36 }
 0x20c   :  { %4413 = vmatprep.subr.bf16.mxu0 %v4962_v48  ;;  %4433 = vmatprep.subr.bf16.mxu1 %v4962_v48 }
 0x20d   :  { %v777_v40 = vpop.f32.mrb[32].mxu0  ;;  %v865_v16 = vpop.f32.mrb[32].mxu1 }
 0x20e   :  { %v5827_v6 = vadd.f32 %v865_v16, %v777_v40  ;;  %v4141_v41 = vpop.f32.mrb[33].mxu0  ;;  %v4161_v42 = vpop.f32.mrb[33].mxu1 }
 0x20f   :  { %4414 = vmatpush3.bf16.msra.mxu0 %v4843_v38  ;;  %4434 = vmatpush3.bf16.msra.mxu1 %v4844_v39  ;;  %v780_v19 = vpop.f32.mrb[34].mxu0  ;;  %v868_v43 = vpop.f32.mrb[34].mxu1  ;;  %v4877_v41 = vld [vmem:[%s6244_s3 + $0x4b0] sm:$0xff]  }
 0x210   :  { %v4142_v46 = vpop.f32.mrb[35].mxu0  ;;  %v4162_v47 = vpop.f32.mrb[35].mxu1  ;;  %4415 = vmatprep.subr.bf16.mxu0 %v4962_v48  ;;  %4435 = vmatprep.subr.bf16.mxu1 %v4962_v48  ;;  %v4878_v42 = vld [vmem:[%s6244_s3 + $0x4f0] sm:$0xff]  }
 0x211   :  { %v4880_v46 = vld [vmem:[%s6244_s3 + $0x4f8] sm:$0xff]   ;;  %v2583_v47 = vld [vmem:[#allocation2 + $0x24] sm:$0x3] }
 0x212   :  { %v2584_v52 = vpack.c.bf16 %v2583_v47, %v2583_v47 }
 0x213   :  { %4416 = vmatpush3.bf16.msra.mxu0 %v4845_v44  ;;  %4436 = vmatpush3.bf16.msra.mxu1 %v4846_v45  ;;  %v4879_v45 = vld [vmem:[%s6244_s3 + $0x4b8] sm:$0xff]  }
 0x214   :  { %4417 = vmatprep.subr.bf16.mxu0 %v4962_v48  ;;  %4437 = vmatprep.subr.bf16.mxu1 %v4962_v48 }
 0x217   :  { %4418 = vmatpush3.bf16.msra.mxu0 %v4847_v49  ;;  %4438 = vmatpush3.bf16.msra.mxu1 %v4848_v50  ;;  %v2690_v49 = vld [vmem:[#allocation2 + $0x26] sm:$0x3] }
 0x218   :  { %4443 = vmatprep.subr.bf16.mxu0 %v4962_v48  ;;  %4463 = vmatprep.subr.bf16.mxu1 %v4962_v48  ;;  %v4881_v50 = vld [vmem:[%s6244_s3 + $0x500] sm:$0xff]  }
 0x21a   :  { %4420 = vmatmul.mubr.bf16.vlgmr.msra.gmra.mrb[60].mxu0 %v2156_v57  ;;  %4440 = vmatmul.mubr.bf16.vlgmr.msra.gmra.mrb[60].mxu1 %v2263_v58  ;;  %v4884_v57 = vld [vmem:[%s6244_s3 + $0x548] sm:$0xff]   ;;  %v4885_v58 = vld [vmem:[%s6244_s3 + $0x510] sm:$0xff]  }
 0x21b   :  { %4444 = vmatpush3.bf16.msra.mxu0 %v4849_v54  ;;  %4464 = vmatpush3.bf16.msra.mxu1 %v4850_v55  ;;  %v2691_v54 = vpack.c.bf16 %v2690_v49, %v2690_v49  ;;  %v4883_v55 = vld [vmem:[%s6244_s3 + $0x508] sm:$0xff]  }
 0x21c   :  { %4445 = vmatprep.subr.bf16.mxu0 %v4962_v48  ;;  %4465 = vmatprep.subr.bf16.mxu1 %v4962_v48 }
 0x21d   :  { %4459 = vmatprep.mubr.msk.bf16.mxu0 %vm4963_vm2, %v4962_v48  ;;  %4479 = vmatprep.mubr.msk.bf16.mxu1 %vm4963_vm2, %v4962_v48 }
 0x21f   :  { %4446 = vmatpush3.bf16.msra.mxu0 %v4851_v59  ;;  %4466 = vmatpush3.bf16.msra.mxu1 %v4852_v60  ;;  %v4886_v59 = vld [vmem:[%s6244_s3 + $0x550] sm:$0xff]   ;;  %v4887_v60 = vld [vmem:[%s6244_s3 + $0x518] sm:$0xff]  }
 0x220   :  { %4447 = vmatprep.subr.bf16.mxu0 %v4962_v48  ;;  %4467 = vmatprep.subr.bf16.mxu1 %v4962_v48 }
 0x223   :  { %4448 = vmatpush3.bf16.msra.mxu0 %v4853_v61  ;;  %4468 = vmatpush3.bf16.msra.mxu1 %v4854_v34  ;;  %v4888_v61 = vld [vmem:[%s6244_s3 + $0x558] sm:$0xff]   ;;  %v4889_v34 = vld [vmem:[%s6244_s3 + $0x520] sm:$0xff]  }
 0x224   :  { %4449 = vmatprep.subr.bf16.mxu0 %v4962_v48  ;;  %4469 = vmatprep.subr.bf16.mxu1 %v4962_v48 }
 0x227   :  { %4450 = vmatpush3.bf16.msra.mxu0 %v4855_v62  ;;  %4470 = vmatpush3.bf16.msra.mxu1 %v4856_v63  ;;  %v4890_v62 = vld [vmem:[%s6244_s3 + $0x560] sm:$0xff]   ;;  %v4891_v63 = vld [vmem:[%s6244_s3 + $0x528] sm:$0xff]  }
 0x228   :  { %4451 = vmatprep.subr.bf16.mxu0 %v4962_v48  ;;  %4471 = vmatprep.subr.bf16.mxu1 %v4962_v48 }
 0x22b   :  { %4452 = vmatpush3.bf16.msra.mxu0 %v4857_v0  ;;  %4472 = vmatpush3.bf16.msra.mxu1 %v4858_v37  ;;  %v4892_v0 = vld [vmem:[%s6244_s3 + $0x568] sm:$0xff]  }
 0x22c   :  { %4453 = vmatprep.subr.bf16.mxu0 %v4962_v48  ;;  %4473 = vmatprep.subr.bf16.mxu1 %v4962_v48 }
 0x22d   :  { %v971_v4 = vpop.f32.mrb[36].mxu0  ;;  %v1078_v5 = vpop.f32.mrb[36].mxu1 }
 0x22e   :  { %v977_v7 = vadd.f32 %v971_v4, %v5827_v6  ;;  %v4181_v8 = vpop.f32.mrb[37].mxu0  ;;  %v4201_v9 = vpop.f32.mrb[37].mxu1 }
 0x22f   :  { %v974_v10 = vpop.f32.mrb[38].mxu0  ;;  %v1081_v11 = vpop.f32.mrb[38].mxu1  ;;  %4454 = vmatpush3.bf16.msra.mxu0 %v4859_v2  ;;  %4474 = vmatpush3.bf16.msra.mxu1 %v4860_v3  ;;  %v4893_v9 = vld [vmem:[%s6244_s3 + $0x530] sm:$0xff]  }
 0x230   :  { %v1084_v14 = vadd.f32 %v1078_v5, %v977_v7  ;;  %v4182_v15 = vpop.f32.mrb[39].mxu0  ;;  %v4202_v17 = vpop.f32.mrb[39].mxu1  ;;  %4455 = vmatprep.subr.bf16.mxu0 %v4962_v48  ;;  %4475 = vmatprep.subr.bf16.mxu1 %v4962_v48  ;;  %v4894_v10 = vld [vmem:[%s6244_s3 + $0x570] sm:$0xff]  }
 0x231   :  { %v4896_v15 = vld [vmem:[%s6244_s3 + $0x578] sm:$0xff]   ;;  %v2797_v17 = vld [vmem:[#allocation2 + $0x28] sm:$0x3] }
 0x232   :  { %v2798_v53 = vpack.c.bf16 %v2797_v17, %v2797_v17 }
 0x233   :  { %4456 = vmatpush3.bf16.msra.mxu0 %v4861_v12  ;;  %4476 = vmatpush3.bf16.msra.mxu1 %v4862_v13 }
 0x234   :  { %4457 = vmatprep.subr.bf16.mxu0 %v4962_v48  ;;  %4477 = vmatprep.subr.bf16.mxu1 %v4962_v48 }
 0x237   :  { %4458 = vmatpush3.bf16.msra.mxu0 %v4863_v18  ;;  %4478 = vmatpush3.bf16.msra.mxu1 %v4864_v20  ;;  %v2904_v18 = vld [vmem:[#allocation2 + $0x2a] sm:$0x3]  ;;  %v4897_v20 = vld [vmem:[%s6244_s3 + $0x580] sm:$0xff]  }
 0x238   :  { %4483 = vmatprep.subr.bf16.mxu0 %v4962_v48  ;;  %4503 = vmatprep.subr.bf16.mxu1 %v4962_v48 }
 0x23a   :  { %4460 = vmatmul.mubr.bf16.vlgmr.msra.gmra.mrb[64].mxu0 %v2370_v56  ;;  %4480 = vmatmul.mubr.bf16.vlgmr.msra.gmra.mrb[64].mxu1 %v2477_v24  ;;  %v4900_v56 = vld [vmem:[%s6244_s3 + $0x5c8] sm:$0xff]   ;;  %v4901_v24 = vld [vmem:[%s6244_s3 + $0x590] sm:$0xff]  }
 0x23b   :  { %4484 = vmatpush3.bf16.msra.mxu0 %v4865_v22  ;;  %4504 = vmatpush3.bf16.msra.mxu1 %v4866_v23  ;;  %v2905_v22 = vpack.c.bf16 %v2904_v18, %v2904_v18  ;;  %v4899_v23 = vld [vmem:[%s6244_s3 + $0x588] sm:$0xff]  }
 0x23c   :  { %4485 = vmatprep.subr.bf16.mxu0 %v4962_v48  ;;  %4505 = vmatprep.subr.bf16.mxu1 %v4962_v48 }
 0x23d   :  { %4499 = vmatprep.mubr.msk.bf16.mxu0 %vm4963_vm2, %v4962_v48  ;;  %4519 = vmatprep.mubr.msk.bf16.mxu1 %vm4963_vm2, %v4962_v48 }
 0x23f   :  { %4486 = vmatpush3.bf16.msra.mxu0 %v4867_v25  ;;  %4506 = vmatpush3.bf16.msra.mxu1 %v4868_v26  ;;  %v4902_v25 = vld [vmem:[%s6244_s3 + $0x5d0] sm:$0xff]   ;;  %v4903_v26 = vld [vmem:[%s6244_s3 + $0x598] sm:$0xff]  }
 0x240   :  { %4487 = vmatprep.subr.bf16.mxu0 %v4962_v48  ;;  %4507 = vmatprep.subr.bf16.mxu1 %v4962_v48 }
 0x243   :  { %4488 = vmatpush3.bf16.msra.mxu0 %v4869_v27  ;;  %4508 = vmatpush3.bf16.msra.mxu1 %v4870_v28  ;;  %v4904_v27 = vld [vmem:[%s6244_s3 + $0x5d8] sm:$0xff]   ;;  %v4905_v28 = vld [vmem:[%s6244_s3 + $0x5a0] sm:$0xff]  }
 0x244   :  { %4489 = vmatprep.subr.bf16.mxu0 %v4962_v48  ;;  %4509 = vmatprep.subr.bf16.mxu1 %v4962_v48 }
 0x247   :  { %4490 = vmatpush3.bf16.msra.mxu0 %v4871_v29  ;;  %4510 = vmatpush3.bf16.msra.mxu1 %v4872_v30  ;;  %v4906_v29 = vld [vmem:[%s6244_s3 + $0x5e0] sm:$0xff]   ;;  %v4907_v30 = vld [vmem:[%s6244_s3 + $0x5a8] sm:$0xff]  }
 0x248   :  { %4491 = vmatprep.subr.bf16.mxu0 %v4962_v48  ;;  %4511 = vmatprep.subr.bf16.mxu1 %v4962_v48 }
 0x24b   :  { %4492 = vmatpush3.bf16.msra.mxu0 %v4873_v1  ;;  %4512 = vmatpush3.bf16.msra.mxu1 %v4874_v31  ;;  %v4908_v1 = vld [vmem:[%s6244_s3 + $0x5e8] sm:$0xff]  }
 0x24c   :  { %4493 = vmatprep.subr.bf16.mxu0 %v4962_v48  ;;  %4513 = vmatprep.subr.bf16.mxu1 %v4962_v48 }
 0x24d   :  { %v1185_v35 = vpop.f32.mrb[40].mxu0  ;;  %v1292_v36 = vpop.f32.mrb[40].mxu1 }
 0x24e   :  { %v1191_v38 = vadd.f32 %v1185_v35, %v1084_v14  ;;  %v4221_v39 = vpop.f32.mrb[41].mxu0  ;;  %v4241_v40 = vpop.f32.mrb[41].mxu1  ;;  %v4895_v14 = vld [vmem:[%s6244_s3 + $0x538] sm:$0xff]  }
 0x24f   :  { %v1188_v16 = vpop.f32.mrb[42].mxu0  ;;  %v1295_v6 = vpop.f32.mrb[42].mxu1  ;;  %4494 = vmatpush3.bf16.msra.mxu0 %v4875_v32  ;;  %4514 = vmatpush3.bf16.msra.mxu1 %v4876_v33  ;;  %v4909_v40 = vld [vmem:[%s6244_s3 + $0x5b0] sm:$0xff]  }
 0x250   :  { %v1298_v19 = vadd.f32 %v1292_v36, %v1191_v38  ;;  %v4222_v43 = vpop.f32.mrb[43].mxu0  ;;  %v4242_v44 = vpop.f32.mrb[43].mxu1  ;;  %4495 = vmatprep.subr.bf16.mxu0 %v4962_v48  ;;  %4515 = vmatprep.subr.bf16.mxu1 %v4962_v48  ;;  %v4910_v16 = vld [vmem:[%s6244_s3 + $0x5f0] sm:$0xff]  }
 0x251   :  { %v4912_v43 = vld [vmem:[%s6244_s3 + $0x5f8] sm:$0xff]   ;;  %v3011_v44 = vld [vmem:[#allocation2 + $0x2c] sm:$0x3] }
 0x252   :  { %v3012_v47 = vpack.c.bf16 %v3011_v44, %v3011_v44  ;;  %v4930_v44 = vld [vmem:[%s6248_s7 + $0x8] sm:$0xff]  }
 0x253   :  { %4496 = vmatpush3.bf16.msra.mxu0 %v4877_v41  ;;  %4516 = vmatpush3.bf16.msra.mxu1 %v4878_v42 }
 0x254   :  { %4497 = vmatprep.subr.bf16.mxu0 %v4962_v48  ;;  %4517 = vmatprep.subr.bf16.mxu1 %v4962_v48 }
 0x257   :  { %4498 = vmatpush3.bf16.msra.mxu0 %v4879_v45  ;;  %4518 = vmatpush3.bf16.msra.mxu1 %v4880_v46  ;;  %v3118_v45 = vld [vmem:[#allocation2 + $0x2e] sm:$0x3]  ;;  %v4913_v46 = vld [vmem:[%s6244_s3 + $0x600] sm:$0xff]  }
 0x258   :  { %4523 = vmatprep.subr.bf16.mxu0 %v4962_v48  ;;  %4543 = vmatprep.subr.bf16.mxu1 %v4962_v48  ;;  %v3119_v49 = vpack.c.bf16 %v3118_v45, %v3118_v45  ;;  %v4931_v45 = vld [vmem:[%s6248_s7 + $0x10] sm:$0xff]  }
 0x25a   :  { %4500 = vmatmul.mubr.bf16.vlgmr.msra.gmra.mrb[68].mxu0 %v2584_v52  ;;  %4520 = vmatmul.mubr.bf16.vlgmr.msra.gmra.mrb[68].mxu1 %v2691_v54  ;;  %v4916_v52 = vld [vmem:[%s6244_s3 + $0x618] sm:$0xff]   ;;  %v4917_v54 = vld [vmem:[%s6244_s3 + $0x620] sm:$0xff]  }
 0x25b   :  { %4524 = vmatpush3.bf16.msra.mxu0 %v4881_v50  ;;  %4544 = vmatpush3.bf16.msra.mxu1 %v4882_v51  ;;  %v4914_v50 = vld [vmem:[%s6244_s3 + $0x608] sm:$0xff]   ;;  %v4915_v51 = vld [vmem:[%s6244_s3 + $0x610] sm:$0xff]  }
 0x25c   :  { %4525 = vmatprep.subr.bf16.mxu0 %v4962_v48  ;;  %4545 = vmatprep.subr.bf16.mxu1 %v4962_v48 }
 0x25d   :  { %4539 = vmatprep.mubr.msk.bf16.mxu0 %vm4963_vm2, %v4962_v48  ;;  %4559 = vmatprep.mubr.msk.bf16.mxu1 %vm4963_vm2, %v4962_v48 }
 0x25f   :  { %4526 = vmatpush3.bf16.msra.mxu0 %v4883_v55  ;;  %4546 = vmatpush3.bf16.msra.mxu1 %v4884_v57  ;;  %v4918_v55 = vld [vmem:[%s6244_s3 + $0x628] sm:$0xff]  }
 0x260   :  { %4527 = vmatprep.subr.bf16.mxu0 %v4962_v48  ;;  %4547 = vmatprep.subr.bf16.mxu1 %v4962_v48 }
 0x263   :  { %4528 = vmatpush3.bf16.msra.mxu0 %v4885_v58  ;;  %4548 = vmatpush3.bf16.msra.mxu1 %v4886_v59 }
 0x264   :  { %4529 = vmatprep.subr.bf16.mxu0 %v4962_v48  ;;  %4549 = vmatprep.subr.bf16.mxu1 %v4962_v48 }
 0x267   :  { %4530 = vmatpush3.bf16.msra.mxu0 %v4887_v60  ;;  %4550 = vmatpush3.bf16.msra.mxu1 %v4888_v61 }
 0x268   :  { %4531 = vmatprep.subr.bf16.mxu0 %v4962_v48  ;;  %4551 = vmatprep.subr.bf16.mxu1 %v4962_v48 }
 0x26b   :  { %4532 = vmatpush3.bf16.msra.mxu0 %v4889_v34  ;;  %4552 = vmatpush3.bf16.msra.mxu1 %v4890_v62 }
 0x26c   :  { %4533 = vmatprep.subr.bf16.mxu0 %v4962_v48  ;;  %4553 = vmatprep.subr.bf16.mxu1 %v4962_v48 }
 0x26d   :  { %v1399_v37 = vpop.f32.mrb[44].mxu0  ;;  %v1506_v2 = vpop.f32.mrb[44].mxu1 }
 0x26e   :  { %v1405_v3 = vadd.f32 %v1399_v37, %v1298_v19  ;;  %v4261_v4 = vpop.f32.mrb[45].mxu0  ;;  %v4281_v5 = vpop.f32.mrb[45].mxu1  ;;  %v4911_v19 = vld [vmem:[%s6244_s3 + $0x5b8] sm:$0xff]  }
 0x26f   :  { %v1402_v7 = vpop.f32.mrb[46].mxu0  ;;  %v1509_v8 = vpop.f32.mrb[46].mxu1  ;;  %4534 = vmatpush3.bf16.msra.mxu0 %v4891_v63  ;;  %4554 = vmatpush3.bf16.msra.mxu1 %v4892_v0  ;;  %v4919_v63 = vld [vmem:[%s6244_s3 + $0x630] sm:$0xff]  }
 0x270   :  { %v1512_v11 = vadd.f32 %v1506_v2, %v1405_v3  ;;  %v4262_v12 = vpop.f32.mrb[47].mxu0  ;;  %v4282_v13 = vpop.f32.mrb[47].mxu1  ;;  %4535 = vmatprep.subr.bf16.mxu0 %v4962_v48  ;;  %4555 = vmatprep.subr.bf16.mxu1 %v4962_v48  ;;  %v4920_v3 = vld [vmem:[%s6244_s3 + $0x638] sm:$0xff]   ;;  %v3225_v4 = vld [vmem:[#allocation2 + $0x30] sm:$0x3] }
 0x271   :  { %v3226_v5 = vpack.c.bf16 %v3225_v4, %v3225_v4 }
 0x273   :  { %4536 = vmatpush3.bf16.msra.mxu0 %v4893_v9  ;;  %4556 = vmatpush3.bf16.msra.mxu1 %v4894_v10 }
 0x274   :  { %4537 = vmatprep.subr.bf16.mxu0 %v4962_v48  ;;  %4557 = vmatprep.subr.bf16.mxu1 %v4962_v48 }
 0x277   :  { %4538 = vmatpush3.bf16.msra.mxu0 %v4895_v14  ;;  %4558 = vmatpush3.bf16.msra.mxu1 %v4896_v15 }
 0x278   :  { %4563 = vmatprep.subr.bf16.mxu0 %v4962_v48  ;;  %4583 = vmatprep.subr.bf16.mxu1 %v4962_v48 }
 0x27a   :  { %4540 = vmatmul.mubr.bf16.vlgmr.msra.gmra.mrb[72].mxu0 %v2798_v53  ;;  %4560 = vmatmul.mubr.bf16.vlgmr.msra.gmra.mrb[72].mxu1 %v2905_v22 }
 0x27b   :  { %4564 = vmatpush3.bf16.msra.mxu0 %v4897_v20  ;;  %4584 = vmatpush3.bf16.msra.mxu1 %v4898_v21 }
 0x27c   :  { %4565 = vmatprep.subr.bf16.mxu0 %v4962_v48  ;;  %4585 = vmatprep.subr.bf16.mxu1 %v4962_v48 }
 0x27d   :  { %4579 = vmatprep.mubr.msk.bf16.mxu0 %vm4963_vm2, %v4962_v48  ;;  %4599 = vmatprep.mubr.msk.bf16.mxu1 %vm4963_vm2, %v4962_v48 }
 0x27f   :  { %4566 = vmatpush3.bf16.msra.mxu0 %v4899_v23  ;;  %4586 = vmatpush3.bf16.msra.mxu1 %v4900_v56 }
 0x280   :  { %4567 = vmatprep.subr.bf16.mxu0 %v4962_v48  ;;  %4587 = vmatprep.subr.bf16.mxu1 %v4962_v48 }
 0x283   :  { %4568 = vmatpush3.bf16.msra.mxu0 %v4901_v24  ;;  %4588 = vmatpush3.bf16.msra.mxu1 %v4902_v25 }
 0x284   :  { %4569 = vmatprep.subr.bf16.mxu0 %v4962_v48  ;;  %4589 = vmatprep.subr.bf16.mxu1 %v4962_v48 }
 0x287   :  { %4570 = vmatpush3.bf16.msra.mxu0 %v4903_v26  ;;  %4590 = vmatpush3.bf16.msra.mxu1 %v4904_v27  ;;  %v4921_v27 = vld [vmem:[%s6246_s5] sm:$0xff]  }
 0x288   :  { %4571 = vmatprep.subr.bf16.mxu0 %v4962_v48  ;;  %4591 = vmatprep.subr.bf16.mxu1 %v4962_v48 }
 0x28b   :  { %4572 = vmatpush3.bf16.msra.mxu0 %v4905_v28  ;;  %4592 = vmatpush3.bf16.msra.mxu1 %v4906_v29  ;;  %v4922_v28 = vld [vmem:[%s6246_s5 + $0x8] sm:$0xff]   ;;  %v4923_v29 = vld [vmem:[%s6246_s5 + $0x10] sm:$0xff]  }
 0x28c   :  { %4573 = vmatprep.subr.bf16.mxu0 %v4962_v48  ;;  %4593 = vmatprep.subr.bf16.mxu1 %v4962_v48 }
 0x28d   :  { %v1613_v31 = vpop.f32.mrb[48].mxu0  ;;  %v1720_v32 = vpop.f32.mrb[48].mxu1 }
 0x28e   :  { %v1619_v33 = vadd.f32 %v1613_v31, %v1512_v11  ;;  %v4301_v35 = vpop.f32.mrb[49].mxu0  ;;  %v4321_v36 = vpop.f32.mrb[49].mxu1  ;;  %v4926_v31 = vld [vmem:[%s6246_s5 + $0x28] sm:$0xff]  }
 0x28f   :  { %v1616_v38 = vpop.f32.mrb[50].mxu0  ;;  %v1723_v39 = vpop.f32.mrb[50].mxu1  ;;  %4574 = vmatpush3.bf16.msra.mxu0 %v4907_v30  ;;  %4594 = vmatpush3.bf16.msra.mxu1 %v4908_v1  ;;  %v4924_v30 = vld [vmem:[%s6246_s5 + $0x18] sm:$0xff]   ;;  %v4925_v1 = vld [vmem:[%s6246_s5 + $0x20] sm:$0xff]   ;;  %v4927_v35 = vld [vmem:[%s6246_s5 + $0x30] sm:$0xff]  }
 0x290   :  { %v1726_v6 = vadd.f32 %v1720_v32, %v1619_v33  ;;  %v4302_v41 = vpop.f32.mrb[51].mxu0  ;;  %v4322_v42 = vpop.f32.mrb[51].mxu1  ;;  %4575 = vmatprep.subr.bf16.mxu0 %v4962_v48  ;;  %4595 = vmatprep.subr.bf16.mxu1 %v4962_v48 }
 0x293   :  { %4576 = vmatpush3.bf16.msra.mxu0 %v4909_v40  ;;  %4596 = vmatpush3.bf16.msra.mxu1 %v4910_v16 }
 0x294   :  { %4577 = vmatprep.subr.bf16.mxu0 %v4962_v48  ;;  %4597 = vmatprep.subr.bf16.mxu1 %v4962_v48 }
 0x297   :  { %4578 = vmatpush3.bf16.msra.mxu0 %v4911_v19  ;;  %4598 = vmatpush3.bf16.msra.mxu1 %v4912_v43  ;;  %v4928_v19 = vld [vmem:[%s6246_s5 + $0x38] sm:$0xff]   ;;  %v4929_v43 = vld [vmem:[%s6248_s7] sm:$0xff]  }
 0x298   :  { %4603 = vmatprep.subr.bf16.mxu0 %v4962_v48  ;;  %4623 = vmatprep.subr.bf16.mxu1 %v4962_v48 }
 0x29a   :  { %4580 = vmatmul.mubr.bf16.vlgmr.msra.gmra.mrb[76].mxu0 %v3012_v47  ;;  %4600 = vmatmul.mubr.bf16.vlgmr.msra.gmra.mrb[76].mxu1 %v3119_v49  ;;  %v4933_v47 = vld [vmem:[%s6248_s7 + $0x20] sm:$0xff]   ;;  %v4934_v49 = vld [vmem:[%s6248_s7 + $0x28] sm:$0xff]  }
 0x29b   :  { %4604 = vmatpush3.bf16.msra.mxu0 %v4913_v46  ;;  %4619 = vmatprep.mubr.msk.bf16.mxu0 %vm4963_vm2, %v4962_v48  ;;  %v4932_v46 = vld [vmem:[%s6248_s7 + $0x18] sm:$0xff]  }
 0x29c   :  { %4605 = vmatprep.subr.bf16.mxu0 %v4962_v48  ;;  %4639 = vmatprep.mubr.msk.bf16.mxu1 %vm4963_vm2, %v4962_v48 }
 0x29d   :  { %4624 = vmatpush3.bf16.msra.mxu1 %v4921_v27  ;;  %v4935_v27 = vld [vmem:[%s6248_s7 + $0x30] sm:$0xff]  }
 0x29e   :  { %4625 = vmatprep.subr.bf16.mxu1 %v4962_v48 }
 0x29f   :  { %4606 = vmatpush3.bf16.msra.mxu0 %v4914_v50 }
 0x2a0   :  { %4607 = vmatprep.subr.bf16.mxu0 %v4962_v48 }
 0x2a1   :  { %4626 = vmatpush3.bf16.msra.mxu1 %v4922_v28  ;;  %v4936_v28 = vld [vmem:[%s6248_s7 + $0x38] sm:$0xff]  }
 0x2a2   :  { %4627 = vmatprep.subr.bf16.mxu1 %v4962_v48 }
 0x2a3   :  { %4608 = vmatpush3.bf16.msra.mxu0 %v4915_v51 }
 0x2a4   :  { %4609 = vmatprep.subr.bf16.mxu0 %v4962_v48 }
 0x2a5   :  { %4628 = vmatpush3.bf16.msra.mxu1 %v4923_v29  ;;  %v3862_v29 = vld [vmem:[%s6247_s6] ss:$0 sm:$0xff]  ;;  %s4937_s6 = scalar_lea.vmem %s3574_s24, 32 }
 0x2a6   :  { %4629 = vmatprep.subr.bf16.mxu1 %v4962_v48  ;;  %p4938_p0 = scmp.ne.s32.totalorder %s3574_s24, %s4937_s6  ;;  %p4943_p2 = scmp.lt.s32.totalorder %s4937_s6, %s4937_s6 }
 0x2a7   :  { %4610 = vmatpush3.bf16.msra.mxu0 %v4916_v52 }
 0x2a8   :  { %4611 = vmatprep.subr.bf16.mxu0 %v4962_v48  ;;  %p4944_p3 = por %p4943_p2, %p4942_p1 }
 0x2a9   :  { %4630 = vmatpush3.bf16.msra.mxu1 %v4924_v30 }
 0x2aa   :  { %4631 = vmatprep.subr.bf16.mxu1 %v4962_v48  ;;  %p4945_p4 = pnand %p4944_p3, %p4938_p0 }
 0x2ab   :  { %4612 = vmatpush3.bf16.msra.mxu0 %v4917_v54 }
 0x2ac   :  { %4613 = vmatprep.subr.bf16.mxu0 %v4962_v48 }
 0x2ad   :  { %v1827_v57 = vpop.f32.mrb[52].mxu0  ;;  %v1934_v58 = vpop.f32.mrb[52].mxu1  ;;  %4632 = vmatpush3.bf16.msra.mxu1 %v4925_v1 }
 0x2ae   :  { %v1833_v59 = vadd.f32 %v1827_v57, %v1726_v6  ;;  %v4341_v60 = vpop.f32.mrb[53].mxu0  ;;  %v4361_v61 = vpop.f32.mrb[53].mxu1  ;;  %4633 = vmatprep.subr.bf16.mxu1 %v4962_v48 }
 0x2af   :  { %v1830_v34 = vpop.f32.mrb[54].mxu0  ;;  %v1937_v62 = vpop.f32.mrb[54].mxu1  ;;  %4614 = vmatpush3.bf16.msra.mxu0 %v4918_v55 }
 0x2b0   :  { %v1940_v0 = vadd.f32 %v1934_v58, %v1833_v59  ;;  %v4342_v37 = vpop.f32.mrb[55].mxu0  ;;  %v4362_v2 = vpop.f32.mrb[55].mxu1  ;;  %4615 = vmatprep.subr.bf16.mxu0 %v4962_v48 }
 0x2b1   :  { %4634 = vmatpush3.bf16.msra.mxu1 %v4926_v31 }
 0x2b2   :  { %4635 = vmatprep.subr.bf16.mxu1 %v4962_v48 }
 0x2b3   :  { %4616 = vmatpush3.bf16.msra.mxu0 %v4919_v63 }
 0x2b4   :  { %4617 = vmatprep.subr.bf16.mxu0 %v4962_v48 }
 0x2b5   :  { %4636 = vmatpush3.bf16.msra.mxu1 %v4927_v35 }
 0x2b6   :  { %4637 = vmatprep.subr.bf16.mxu1 %v4962_v48 }
 0x2b7   :  { %4618 = vmatpush3.bf16.msra.mxu0 %v4920_v3 }
 0x2b8   :  { %4643 = vmatprep.subr.bf16.mxu0 %v4962_v48 }
 0x2b9   :  { %4638 = vmatpush3.bf16.msra.mxu1 %v4928_v19 }
 0x2ba   :  { %4620 = vmatmul.mubr.bf16.vlgmr.msra.gmra.mrb[80].mxu0 %v3226_v5 }
 0x2bb   :  { %4659 = vmatprep.mubr.msk.bf16.mxu0 %vm4963_vm2, %v4962_v48  ;;  %4644 = vmatpush3.bf16.msra.mxu0 %v4929_v43 }
 0x2bc   :  { %4645 = vmatprep.subr.bf16.mxu0 %v4962_v48 }
 0x2bf   :  { %4646 = vmatpush3.bf16.msra.mxu0 %v4930_v44 }
 0x2c0   :  { %4647 = vmatprep.subr.bf16.mxu0 %v4962_v48 }
 0x2c3   :  { %4648 = vmatpush3.bf16.msra.mxu0 %v4931_v45 }
 0x2c4   :  { %4649 = vmatprep.subr.bf16.mxu0 %v4962_v48 }
 0x2c7   :  { %4650 = vmatpush3.bf16.msra.mxu0 %v4932_v46 }
 0x2c8   :  { %4651 = vmatprep.subr.bf16.mxu0 %v4962_v48 }
 0x2cb   :  { %4652 = vmatpush3.bf16.msra.mxu0 %v4933_v47 }
 0x2cc   :  { %4653 = vmatprep.subr.bf16.mxu0 %v4962_v48 }
 0x2cd   :  { %v2041_v7 = vpop.f32.mrb[56].mxu0  ;;  %v2148_v8 = vpop.f32.mrb[56].mxu1 }
 0x2ce   :  { %v2047_v9 = vadd.f32 %v2041_v7, %v1940_v0  ;;  %v4381_v10 = vpop.f32.mrb[57].mxu0  ;;  %v4401_v11 = vpop.f32.mrb[57].mxu1 }
 0x2cf   :  { %v2044_v12 = vpop.f32.mrb[58].mxu0  ;;  %v2151_v13 = vpop.f32.mrb[58].mxu1  ;;  %4654 = vmatpush3.bf16.msra.mxu0 %v4934_v49 }
 0x2d0   :  { %v2154_v14 = vadd.f32 %v2148_v8, %v2047_v9  ;;  %v4382_v15 = vpop.f32.mrb[59].mxu0  ;;  %v4402_v17 = vpop.f32.mrb[59].mxu1  ;;  %4655 = vmatprep.subr.bf16.mxu0 %v4962_v48 }
 0x2d3   :  { %4656 = vmatpush3.bf16.msra.mxu0 %v4935_v27 }
 0x2d4   :  { %4657 = vmatprep.subr.bf16.mxu0 %v4962_v48  ;;  %v3871_v48 = vld [vmem:[%s6249_s8] ss:$0 sm:$0xff] }
 0x2d7   :  { %4658 = vmatpush3.bf16.msra.mxu0 %v4936_v28 }
 0x2ed   :  { %v2255_v18 = vpop.f32.mrb[60].mxu0  ;;  %v2362_v20 = vpop.f32.mrb[60].mxu1 }
 0x2ee   :  { %v2261_v21 = vadd.f32 %v2255_v18, %v2154_v14  ;;  %v4421_v53 = vpop.f32.mrb[61].mxu0  ;;  %v4441_v22 = vpop.f32.mrb[61].mxu1 }
 0x2ef   :  { %v2258_v23 = vpop.f32.mrb[62].mxu0  ;;  %v2365_v56 = vpop.f32.mrb[62].mxu1 }
 0x2f0   :  { %v2368_v24 = vadd.f32 %v2362_v20, %v2261_v21  ;;  %v4422_v25 = vpop.f32.mrb[63].mxu0  ;;  %v4442_v26 = vpop.f32.mrb[63].mxu1  ;;  %v3861_v21 = vld [vmem:[%s6245_s4] ss:$0 sm:$0xff] }
 0x30d   :  { %v2469_v32 = vpop.f32.mrb[64].mxu0  ;;  %v2576_v33 = vpop.f32.mrb[64].mxu1 }
 0x30e   :  { %v2475_v36 = vadd.f32 %v2469_v32, %v2368_v24  ;;  %v4461_v38 = vpop.f32.mrb[65].mxu0  ;;  %v4481_v39 = vpop.f32.mrb[65].mxu1 }
 0x30f   :  { %v2472_v40 = vpop.f32.mrb[66].mxu0  ;;  %v2579_v16 = vpop.f32.mrb[66].mxu1 }
 0x310   :  { %v2582_v6 = vadd.f32 %v2576_v33, %v2475_v36  ;;  %v4462_v41 = vpop.f32.mrb[67].mxu0  ;;  %v4482_v42 = vpop.f32.mrb[67].mxu1 }
 0x32d   :  { %v2683_v50 = vpop.f32.mrb[68].mxu0  ;;  %v2790_v51 = vpop.f32.mrb[68].mxu1 }
 0x32e   :  { %v2689_v52 = vadd.f32 %v2683_v50, %v2582_v6  ;;  %v4501_v54 = vpop.f32.mrb[69].mxu0  ;;  %v4521_v55 = vpop.f32.mrb[69].mxu1 }
 0x32f   :  { %v2686_v57 = vpop.f32.mrb[70].mxu0  ;;  %v2793_v58 = vpop.f32.mrb[70].mxu1 }
 0x330   :  { %v2796_v59 = vadd.f32 %v2790_v51, %v2689_v52  ;;  %v4502_v60 = vpop.f32.mrb[71].mxu0  ;;  %v4522_v61 = vpop.f32.mrb[71].mxu1 }
 0x34d   :  { %v2897_v34 = vpop.f32.mrb[72].mxu0  ;;  %v3004_v62 = vpop.f32.mrb[72].mxu1 }
 0x34e   :  { %v2903_v63 = vadd.f32 %v2897_v34, %v2796_v59  ;;  %v4541_v0 = vpop.f32.mrb[73].mxu0  ;;  %v4561_v37 = vpop.f32.mrb[73].mxu1 }
 0x34f   :  { %v2900_v2 = vpop.f32.mrb[74].mxu0  ;;  %v3007_v3 = vpop.f32.mrb[74].mxu1 }
 0x350   :  { %v3010_v4 = vadd.f32 %v3004_v62, %v2903_v63  ;;  %v4542_v5 = vpop.f32.mrb[75].mxu0  ;;  %v4562_v7 = vpop.f32.mrb[75].mxu1 }
 0x36d   :  { %v3111_v8 = vpop.f32.mrb[76].mxu0  ;;  %v3218_v9 = vpop.f32.mrb[76].mxu1 }
 0x36e   :  { %v3117_v10 = vadd.f32 %v3111_v8, %v3010_v4  ;;  %v4581_v11 = vpop.f32.mrb[77].mxu0  ;;  %v4601_v12 = vpop.f32.mrb[77].mxu1 }
 0x36f   :  { %v3114_v13 = vpop.f32.mrb[78].mxu0  ;;  %v3221_v14 = vpop.f32.mrb[78].mxu1 }
 0x370   :  { %v3224_v15 = vadd.f32 %v3218_v9, %v3117_v10  ;;  %v4582_v17 = vpop.f32.mrb[79].mxu0  ;;  %v4602_v18 = vpop.f32.mrb[79].mxu1 }
 0x38d   :  { %v3325_v20 = vpop.f32.mrb[80].mxu0 }
 0x38e   :  { %v3331_v53 = vadd.f32 %v3325_v20, %v3224_v15  ;;  %v4621_v22 = vpop.f32.mrb[81].mxu0 }
 0x38f   :  { %v3328_v23 = vpop.f32.mrb[82].mxu0 }
 0x390   :  { %v3339_v56 = vadd.f32 %v3861_v21, %v3331_v53  ;;  %v4622_v24 = vpop.f32.mrb[83].mxu0 }
 0x392   :  { %v3340_v25 = vmax.f32 %v3339_v56, 0.0 }
 0x394   :  { %v3341_v26 = vpack.c.bf16 %v3340_v25, %v3340_v25 }
 0x396   :  { %4640 = vmatmul.mubr.bf16.vlgmr.msra.gmra.mrb[80].mxu1 %v3341_v26 }
 0x469   :  { %v3447_v30 = vpop.f32.mrb[80].mxu1 }
 0x46a   :  { %v3448_v1 = vadd.f32 %v3862_v29, %v3447_v30  ;;  %v4641_v31 = vpop.f32.mrb[81].mxu1 }
 0x46b   :  { %v3450_v32 = vpop.f32.mrb[82].mxu1 }
 0x46c   :  { %v3453_v33 = vmax.f32 %v3448_v1, 0.0  ;;  %v4642_v35 = vpop.f32.mrb[83].mxu1 }
 0x46e   :  { %v3454_v36 = vpack.c.bf16 %v3453_v33, %v3453_v33 }
 0x470   :  { %4660 = vmatmul.mubr.bf16.vlgmr.msra.gmra.mrb[84].mxu0 %v3454_v36 }
 0x543   :  { %v3560_v38 = vpop.f32.mrb[84].mxu0 }
 0x544   :  { %v3561_v39 = vadd.f32 %v3871_v48, %v3560_v38  ;;  %v4661_v40 = vpop.f32.mrb[85].mxu0 }
 0x545   :  { %v3563_v16 = vpop.f32.mrb[86].mxu0 }
 0x546   :  { %3566 = vst [vmem:[#allocation3] sm:$0x3] %v3561_v39  ;;  %v4662_v6 = vpop.f32.mrb[87].mxu0 }
 0x547   :  { %4948 = shalt.err (!%p4945_p4)
}
 0x548   :  { %s4949_s8 = scalar_lea.hbm %s6250_s9, 32 }
 0x549   :  { %p4950_p5 = scmp.ne.s32.totalorder %s6250_s9, %s4949_s8  ;;  %p4953_p6 = scmp.lt.u32.totalorder %s4949_s8, %s6250_s9 }
 0x54b   :  { %p4955_p7 = pnand %p4953_p6, %p4950_p5 }
 0x54d   :  { %4958 = shalt.err (!%p4955_p7)
}
 0x54e   :  { %3576 = dma.vmem_to_hbm [thread:$0]  %s3574_s24, 32, %s6250_s9, [#allocation4]  }
 0x54f   :  { %4959 = dma.done.wait [#allocation4], 32  }
 0x550   :  { %4960 = vsyncadd [#allocation4], 4294967264 }
 0x551   :  { %3580 = vsyncpa [#allocation4], 1 }

</bundles_post_ra>
